<compile_context>
chip_gen: v5e
topology: v5e:2x2
jax: 0.10.0
libtpu: 0.0.40
codegen_flags: <defaults>
</compile_context>

<pallas_src>
import functools

import jax
import jax.numpy as jnp
import numpy as np
from jax.experimental import pallas as pl
from jax.experimental.pallas import tpu as pltpu

K1, K2, K3 = 7, 5, 3


def _make_kernel(padding, nb, L, L1, L2, L3, Cin, C1, Cout):
    p = padding
    # ~512-lane chunks of output positions bound the live accumulator size.
    chunk = max(1, 512 // nb)

    def zero_edges(col_ref, c_in, l_in, l_out, k_taps):
        """Zero the im2col columns that read the conv zero-padding."""
        for k in range(k_taps):
            left = min(max(0, p - k), l_out)           # dst positions [0, left)
            if left:
                col_ref[k * c_in:(k + 1) * c_in, :left * nb] = \
                    jnp.zeros((c_in, left * nb), jnp.float32)
            lo = min(max(0, l_in + p - k), l_out)      # first zero dst on right
            if lo < l_out:
                col_ref[k * c_in:(k + 1) * c_in, lo * nb:] = \
                    jnp.zeros((c_in, (l_out - lo) * nb), jnp.float32)

    def scatter(col_ref, val, c_in, pos0, npos, l_out, k_taps):
        """Write activation positions [pos0, pos0+npos) of `val` straight into
        every tap row-block of the next layer's im2col buffer."""
        for k in range(k_taps):
            j_lo = max(0, pos0 + p - k)
            j_hi = min(l_out, pos0 + npos + p - k)
            if j_hi <= j_lo:
                continue
            s_lo = j_lo + k - p - pos0                 # offset into val (positions)
            col_ref[k * c_in:(k + 1) * c_in, j_lo * nb:j_hi * nb] = \
                val[:, s_lo * nb:(s_lo + j_hi - j_lo) * nb]

    def layer(col_in_ref, w_ref, t_ref, l_out, emit):
        """Grouped conv + BN + ReLU as chunked fused im2col matmuls."""
        w = w_ref[...]                                 # hoisted out of the loop
        t = t_ref[...]
        for j0 in range(0, l_out, chunk):
            j1 = min(l_out, j0 + chunk)
            acc = jnp.dot(w, col_in_ref[:, j0 * nb:j1 * nb],
                          preferred_element_type=jnp.float32)
            emit(jnp.maximum(acc + t, 0.0), j0, j1 - j0)

    def kernel(x_ref, w1_ref, t1_ref, w2_ref, t2_ref, w3_ref, t3_ref, o_ref,
               col1, col2, col3):
        # Stage the input (masks/BN already folded into W1) into layer 1's col.
        zero_edges(col1, Cin, L, L1, K1)
        scatter(col1, x_ref[...], Cin, 0, L, L1, K1)

        # Layer 1 -> written directly into layer 2's im2col buffer.
        zero_edges(col2, C1, L1, L2, K2)
        layer(col1, w1_ref, t1_ref, L1,
              lambda v, j0, n: scatter(col2, v, C1, j0, n, L2, K2))

        # Layer 2 -> layer 3's im2col buffer.
        zero_edges(col3, C1, L2, L3, K3)
        layer(col2, w2_ref, t2_ref, L2,
              lambda v, j0, n: scatter(col3, v, C1, j0, n, L3, K3))

        # Layer 3 -> output block (128-aligned lane chunks).
        def emit_out(v, j0, n):
            o_ref[:, j0 * nb:(j0 + n) * nb] = v
        layer(col3, w3_ref, t3_ref, L3, emit_out)

    return kernel


def _fold_bn(bias, bn, eps=1e-5):
    gamma, beta, mean, var = bn
    scale = gamma / jnp.sqrt(var + eps)
    shift = beta + (bias - mean) * scale
    return scale.astype(jnp.float32), shift.astype(jnp.float32)


def _prep_weights(params, masks):
    """Fold masks + BN scale into dense, tap-fused (C_out, K*C_in) weights."""
    B, nf = masks.shape
    C1, Cout = 8 * B, B

    # Layer 1: grouped conv over B replicated+masked copies of x == dense conv
    # over the original nf features with mask-scaled weights.
    s1, t1 = _fold_bn(params['b1'], params['bn1'])
    w1 = params['w1'].astype(jnp.float32)                       # (C1, nf, 7)
    mask_oc = jnp.repeat(masks.astype(jnp.float32), 8, axis=0)  # (C1, nf)
    w1 = w1 * mask_oc[:, :, None] * s1[:, None, None]
    W1 = jnp.transpose(w1, (0, 2, 1)).reshape(C1, K1 * nf)      # cols = (k, c)

    def block_diag(w, out_pg, in_pg, k_taps, c_in_total):
        # grouped weight (B*out_pg, in_pg, K) -> dense (B*out_pg, c_in_total, K)
        dense = jnp.zeros((B * out_pg, c_in_total, k_taps), jnp.float32)
        for b in range(B):
            dense = dense.at[b * out_pg:(b + 1) * out_pg,
                             b * in_pg:(b + 1) * in_pg, :].set(
                w[b * out_pg:(b + 1) * out_pg].astype(jnp.float32))
        return dense

    s2, t2 = _fold_bn(params['b2'], params['bn2'])
    w2 = block_diag(params['w2'], 8, 8, K2, C1) * s2[:, None, None]
    W2 = jnp.transpose(w2, (0, 2, 1)).reshape(C1, K2 * C1)

    s3, t3 = _fold_bn(params['b3'], params['bn3'])
    w3 = block_diag(params['w3'], 1, 8, K3, C1) * s3[:, None, None]
    W3 = jnp.transpose(w3, (0, 2, 1)).reshape(Cout, K3 * C1)

    return (W1, t1.reshape(C1, 1), W2, t2.reshape(C1, 1),
            W3, t3.reshape(Cout, 1))


@functools.partial(jax.jit, static_argnames=("padding", "nb"))
def multi_encoder_forward(x, masks, params, *, padding, nb=None):
    """x: (N, num_features, L) f32, masks: (B, num_features)."""
    B, nf = masks.shape
    N, _, L = x.shape
    C1, Cout = 8 * B, B
    L1 = L + 2 * padding - (K1 - 1)
    L2 = L1 + 2 * padding - (K2 - 1)
    L3 = L2 + 2 * padding - (K3 - 1)

    if nb is None:
        # ~2048 lanes per grid step; nb a multiple of 128 keeps every staging
        # and output lane width 128-aligned (no masked partial stores) and
        # feeds >=512-lane column tiles to the MXU.
        nb = max(128, (2048 // max(L, 1)) // 128 * 128)
        # Keep the largest im2col buffer comfortably inside scoped VMEM
        # (only relevant for very long sequences).
        while nb > 8 and K2 * C1 * L2 * nb * 4 > (6 << 20):
            nb //= 2
    n_pad = -(-N // nb) * nb
    G = n_pad // nb                          # grid steps ("parallel" -> megacore)

    W1, t1, W2, t2, W3, t3 = _prep_weights(params, masks)

    # (N, nf, L) -> (G, nf, L*nb) with (position, sample) lane interleaving.
    xp = jnp.pad(x.astype(jnp.float32), ((0, n_pad - N), (0, 0), (0, 0)))
    xp = xp.reshape(G, nb, nf, L).transpose(0, 2, 3, 1).reshape(G, nf, L * nb)

    kernel = _make_kernel(padding, nb, L, L1, L2, L3, nf, C1, Cout)

    def const_spec(arr):
        return pl.BlockSpec(arr.shape, lambda i: (0,) * arr.ndim)

    out = pl.pallas_call(
        kernel,
        out_shape=jax.ShapeDtypeStruct((G, Cout, L3 * nb), jnp.float32),
        grid=(G,),
        in_specs=[
            pl.BlockSpec((None, nf, L * nb), lambda i: (i, 0, 0)),
            const_spec(W1), const_spec(t1),
            const_spec(W2), const_spec(t2),
            const_spec(W3), const_spec(t3),
        ],
        out_specs=pl.BlockSpec((None, Cout, L3 * nb), lambda i: (i, 0, 0)),
        scratch_shapes=[
            pltpu.VMEM((K1 * nf, L1 * nb), jnp.float32),   # im2col, layer 1
            pltpu.VMEM((K2 * C1, L2 * nb), jnp.float32),   # im2col, layer 2
            pltpu.VMEM((K3 * C1, L3 * nb), jnp.float32),   # im2col, layer 3
        ],
        compiler_params=pltpu.CompilerParams(
            dimension_semantics=("parallel",),
            # Let XLA fuse the lane-interleave transpose of x into the call.
            allow_input_fusion=[True, False, False, False, False, False, False],
            # Lift v5e's 16 MiB default scoped-VMEM ceiling for larger nb.
            vmem_limit_bytes=32 * 1024 * 1024),
    )(xp, W1, t1, W2, t2, W3, t3)

    # (G, Cout, L3*nb) -> (N, Cout, L3)
    out = out.reshape(G, Cout, L3, nb).transpose(0, 3, 1, 2)
    return out.reshape(n_pad, Cout, L3)[:N]


def _ref_forward(x, masks, params, padding):
    """Pure-JAX reference matching the PyTorch forward (eval-mode BN)."""
    B, nf = masks.shape
    h = jnp.tile(x, (1, B, 1)) * masks.reshape(1, -1, 1)

    def gconv(h, w, b):
        out = jax.lax.conv_general_dilated(
            h, w, window_strides=(1,), padding=[(padding, padding)],
            dimension_numbers=('NCH', 'OIH', 'NCH'),
            feature_group_count=B, precision=jax.lax.Precision.HIGHEST)
        return out + b.reshape(1, -1, 1)

    def bn_relu(h, bn, eps=1e-5):
        gamma, beta, mean, var = bn
        y = (h - mean.reshape(1, -1, 1)) / jnp.sqrt(var.reshape(1, -1, 1) + eps)
        return jnp.maximum(y * gamma.reshape(1, -1, 1) + beta.reshape(1, -1, 1), 0.0)

    h = bn_relu(gconv(h, params['w1'], params['b1']), params['bn1'])
    h = bn_relu(gconv(h, params['w2'], params['b2']), params['bn2'])
    h = bn_relu(gconv(h, params['w3'], params['b3']), params['bn3'])
    return h


if __name__ == "__main__":
    # Small but representative shapes: 3 branches, 4 features, seq len 16,
    # 256 samples -> nb=128 gives two 2048-lane grid steps (G=2).
    N, nf, L, B, padding = 256, 4, 16, 3, 3
    key = jax.random.PRNGKey(0)
    ks = jax.random.split(key, 12)

    masks = (jax.random.uniform(ks[0], (B, nf)) > 0.3).astype(jnp.float32)
    x = jax.random.normal(ks[1], (N, nf, L), jnp.float32)

    def bn_params(k, c):
        k1, k2, k3, k4 = jax.random.split(k, 4)
        gamma = jax.random.uniform(k1, (c,), minval=0.75, maxval=1.25)
        beta = jax.random.normal(k2, (c,)) * 0.1
        mean = jax.random.normal(k3, (c,)) * 0.1
        var = jax.random.uniform(k4, (c,), minval=0.75, maxval=1.25)
        return (gamma, beta, mean, var)

    params = {
        'w1': jax.random.normal(ks[2], (8 * B, nf, 7)) * 0.1,
        'b1': jax.random.normal(ks[3], (8 * B,)) * 0.1,
        'bn1': bn_params(ks[4], 8 * B),
        'w2': jax.random.normal(ks[5], (8 * B, 8, 5)) * 0.1,
        'b2': jax.random.normal(ks[6], (8 * B,)) * 0.1,
        'bn2': bn_params(ks[7], 8 * B),
        'w3': jax.random.normal(ks[8], (B, 8, 3)) * 0.1,
        'b3': jax.random.normal(ks[9], (B,)) * 0.1,
        'bn3': bn_params(ks[10], B),
    }

    # TODO(synk): do_max_pool=True variant (MaxPool1d with return_indices) not
    # implemented; this covers the do_max_pool=False encoder.
    out = jax.block_until_ready(
        multi_encoder_forward(x, masks, params, padding=padding))
    ref = _ref_forward(x, masks, params, padding)
    assert out.shape == ref.shape, (out.shape, ref.shape)
    # Tolerance sized for default (single-pass bf16) MXU precision in the
    # kernel vs. a HIGHEST-precision f32 reference.
    np.testing.assert_allclose(np.asarray(out), np.asarray(ref),
                               rtol=4e-2, atol=4e-2)
    print("KERNEL_OK")
</pallas_src>

<mosaic_0001>
module attributes {stable_mosaic.version = 11 : i64} {
  func.func @kernel(%arg0: i32, %arg1: memref<1x4x2048xf32, #tpu.memory_space<vmem>>, %arg2: memref<24x28xf32, #tpu.memory_space<vmem>>, %arg3: memref<24x1xf32, #tpu.memory_space<vmem>>, %arg4: memref<24x120xf32, #tpu.memory_space<vmem>>, %arg5: memref<24x1xf32, #tpu.memory_space<vmem>>, %arg6: memref<3x72xf32, #tpu.memory_space<vmem>>, %arg7: memref<3x1xf32, #tpu.memory_space<vmem>>, %arg8: memref<1x3x2816xf32, #tpu.memory_space<vmem>>, %arg9: memref<28x2048xf32, #tpu.memory_space<vmem>>, %arg10: memref<120x2304xf32, #tpu.memory_space<vmem>>, %arg11: memref<72x2816xf32, #tpu.memory_space<vmem>>) attributes {dimension_semantics = [#tpu.dimension_semantics<parallel>], iteration_bounds = array<i64: 2>, scalar_prefetch = 0 : i64, scratch_operands = 3 : i64, tpu.core_type = #tpu.core_type<tc>, window_params = [{transform_indices = @transform_0, window_bounds = array<i64: 1, 4, 2048>}, {pipeline_mode = #tpu.pipeline_mode<synchronous>, transform_indices = @transform_1, window_bounds = array<i64: 24, 28>}, {pipeline_mode = #tpu.pipeline_mode<synchronous>, transform_indices = @transform_2, window_bounds = array<i64: 24, 1>}, {pipeline_mode = #tpu.pipeline_mode<synchronous>, transform_indices = @transform_3, window_bounds = array<i64: 24, 120>}, {pipeline_mode = #tpu.pipeline_mode<synchronous>, transform_indices = @transform_4, window_bounds = array<i64: 24, 1>}, {pipeline_mode = #tpu.pipeline_mode<synchronous>, transform_indices = @transform_5, window_bounds = array<i64: 3, 72>}, {pipeline_mode = #tpu.pipeline_mode<synchronous>, transform_indices = @transform_6, window_bounds = array<i64: 3, 1>}, {transform_indices = @transform_7, window_bounds = array<i64: 1, 3, 2816>}]} {
    %cst = arith.constant 0.000000e+00 : f32
    %0 = vector.broadcast %cst : f32 to vector<4x384xf32>
    %c0 = arith.constant 0 : index
    %c0_0 = arith.constant 0 : index
    %1 = vector.load %arg9[%c0, %c0_0] : memref<28x2048xf32, #tpu.memory_space<vmem>>, vector<4x384xf32>
    tpu.vector_store %arg9[%c0, %c0_0], %0 {strides = array<i32>} : memref<28x2048xf32, #tpu.memory_space<vmem>>, vector<4x384xf32>,
    %cst_1 = arith.constant 0.000000e+00 : f32
    %2 = vector.broadcast %cst_1 : f32 to vector<4x256xf32>
    %c4 = arith.constant 4 : index
    %c0_2 = arith.constant 0 : index
    %3 = vector.load %arg9[%c4, %c0_2] : memref<28x2048xf32, #tpu.memory_space<vmem>>, vector<4x256xf32>
    tpu.vector_store %arg9[%c4, %c0_2], %2 {strides = array<i32>} : memref<28x2048xf32, #tpu.memory_space<vmem>>, vector<4x256xf32>,
    %cst_3 = arith.constant 0.000000e+00 : f32
    %4 = vector.broadcast %cst_3 : f32 to vector<4x128xf32>
    %c8 = arith.constant 8 : index
    %c0_4 = arith.constant 0 : index
    %5 = vector.load %arg9[%c8, %c0_4] : memref<28x2048xf32, #tpu.memory_space<vmem>>, vector<4x128xf32>
    tpu.vector_store %arg9[%c8, %c0_4], %4 {strides = array<i32>} : memref<28x2048xf32, #tpu.memory_space<vmem>>, vector<4x128xf32>,
    %cst_5 = arith.constant 0.000000e+00 : f32
    %6 = vector.broadcast %cst_5 : f32 to vector<4x128xf32>
    %c16 = arith.constant 16 : index
    %c1920 = arith.constant 1920 : index
    %7 = vector.load %arg9[%c16, %c1920] : memref<28x2048xf32, #tpu.memory_space<vmem>>, vector<4x128xf32>
    tpu.vector_store %arg9[%c16, %c1920], %6 {strides = array<i32>} : memref<28x2048xf32, #tpu.memory_space<vmem>>, vector<4x128xf32>,
    %cst_6 = arith.constant 0.000000e+00 : f32
    %8 = vector.broadcast %cst_6 : f32 to vector<4x256xf32>
    %c20 = arith.constant 20 : index
    %c1792 = arith.constant 1792 : index
    %9 = vector.load %arg9[%c20, %c1792] : memref<28x2048xf32, #tpu.memory_space<vmem>>, vector<4x256xf32>
    tpu.vector_store %arg9[%c20, %c1792], %8 {strides = array<i32>} : memref<28x2048xf32, #tpu.memory_space<vmem>>, vector<4x256xf32>,
    %cst_7 = arith.constant 0.000000e+00 : f32
    %10 = vector.broadcast %cst_7 : f32 to vector<4x384xf32>
    %c24 = arith.constant 24 : index
    %c1664 = arith.constant 1664 : index
    %11 = vector.load %arg9[%c24, %c1664] : memref<28x2048xf32, #tpu.memory_space<vmem>>, vector<4x384xf32>
    tpu.vector_store %arg9[%c24, %c1664], %10 {strides = array<i32>} : memref<28x2048xf32, #tpu.memory_space<vmem>>, vector<4x384xf32>,
    %c0_8 = arith.constant 0 : index
    %c0_9 = arith.constant 0 : index
    %c0_10 = arith.constant 0 : index
    %12 = vector.load %arg1[%c0_8, %c0_9, %c0_10] : memref<1x4x2048xf32, #tpu.memory_space<vmem>>, vector<1x4x2048xf32>
    %13 = vector.shape_cast %12 : vector<1x4x2048xf32> to vector<4x2048xf32>
    %14 = vector.extract_strided_slice %13 {offsets = [0, 0], sizes = [4, 1664], strides = [1, 1]} : vector<4x2048xf32> to vector<4x1664xf32>
    %c0_11 = arith.constant 0 : index
    %c384 = arith.constant 384 : index
    %15 = vector.load %arg9[%c0_11, %c384] : memref<28x2048xf32, #tpu.memory_space<vmem>>, vector<4x1664xf32>
    tpu.vector_store %arg9[%c0_11, %c384], %14 {strides = array<i32>} : memref<28x2048xf32, #tpu.memory_space<vmem>>, vector<4x1664xf32>,
    %16 = vector.extract_strided_slice %13 {offsets = [0, 0], sizes = [4, 1792], strides = [1, 1]} : vector<4x2048xf32> to vector<4x1792xf32>
    %c4_12 = arith.constant 4 : index
    %c256 = arith.constant 256 : index
    %17 = vector.load %arg9[%c4_12, %c256] : memref<28x2048xf32, #tpu.memory_space<vmem>>, vector<4x1792xf32>
    tpu.vector_store %arg9[%c4_12, %c256], %16 {strides = array<i32>} : memref<28x2048xf32, #tpu.memory_space<vmem>>, vector<4x1792xf32>,
    %18 = vector.extract_strided_slice %13 {offsets = [0, 0], sizes = [4, 1920], strides = [1, 1]} : vector<4x2048xf32> to vector<4x1920xf32>
    %c8_13 = arith.constant 8 : index
    %c128 = arith.constant 128 : index
    %19 = vector.load %arg9[%c8_13, %c128] : memref<28x2048xf32, #tpu.memory_space<vmem>>, vector<4x1920xf32>
    tpu.vector_store %arg9[%c8_13, %c128], %18 {strides = array<i32>} : memref<28x2048xf32, #tpu.memory_space<vmem>>, vector<4x1920xf32>,
    %c12 = arith.constant 12 : index
    %c0_14 = arith.constant 0 : index
    %20 = vector.load %arg9[%c12, %c0_14] : memref<28x2048xf32, #tpu.memory_space<vmem>>, vector<4x2048xf32>
    tpu.vector_store %arg9[%c12, %c0_14], %13 {strides = array<i32>} : memref<28x2048xf32, #tpu.memory_space<vmem>>, vector<4x2048xf32>,
    %21 = vector.extract_strided_slice %13 {offsets = [0, 128], sizes = [4, 1920], strides = [1, 1]} : vector<4x2048xf32> to vector<4x1920xf32>
    %c16_15 = arith.constant 16 : index
    %c0_16 = arith.constant 0 : index
    %22 = vector.load %arg9[%c16_15, %c0_16] : memref<28x2048xf32, #tpu.memory_space<vmem>>, vector<4x1920xf32>
    tpu.vector_store %arg9[%c16_15, %c0_16], %21 {strides = array<i32>} : memref<28x2048xf32, #tpu.memory_space<vmem>>, vector<4x1920xf32>,
    %23 = vector.extract_strided_slice %13 {offsets = [0, 256], sizes = [4, 1792], strides = [1, 1]} : vector<4x2048xf32> to vector<4x1792xf32>
    %c20_17 = arith.constant 20 : index
    %c0_18 = arith.constant 0 : index
    %24 = vector.load %arg9[%c20_17, %c0_18] : memref<28x2048xf32, #tpu.memory_space<vmem>>, vector<4x1792xf32>
    tpu.vector_store %arg9[%c20_17, %c0_18], %23 {strides = array<i32>} : memref<28x2048xf32, #tpu.memory_space<vmem>>, vector<4x1792xf32>,
    %25 = vector.extract_strided_slice %13 {offsets = [0, 384], sizes = [4, 1664], strides = [1, 1]} : vector<4x2048xf32> to vector<4x1664xf32>
    %c24_19 = arith.constant 24 : index
    %c0_20 = arith.constant 0 : index
    %26 = vector.load %arg9[%c24_19, %c0_20] : memref<28x2048xf32, #tpu.memory_space<vmem>>, vector<4x1664xf32>
    tpu.vector_store %arg9[%c24_19, %c0_20], %25 {strides = array<i32>} : memref<28x2048xf32, #tpu.memory_space<vmem>>, vector<4x1664xf32>,
    %cst_21 = arith.constant 0.000000e+00 : f32
    %27 = vector.broadcast %cst_21 : f32 to vector<24x384xf32>
    %c0_22 = arith.constant 0 : index
    %c0_23 = arith.constant 0 : index
    %28 = vector.load %arg10[%c0_22, %c0_23] : memref<120x2304xf32, #tpu.memory_space<vmem>>, vector<24x384xf32>
    tpu.vector_store %arg10[%c0_22, %c0_23], %27 {strides = array<i32>} : memref<120x2304xf32, #tpu.memory_space<vmem>>, vector<24x384xf32>,
    %cst_24 = arith.constant 0.000000e+00 : f32
    %29 = vector.broadcast %cst_24 : f32 to vector<24x256xf32>
    %c24_25 = arith.constant 24 : index
    %c0_26 = arith.constant 0 : index
    %30 = vector.load %arg10[%c24_25, %c0_26] : memref<120x2304xf32, #tpu.memory_space<vmem>>, vector<24x256xf32>
    tpu.vector_store %arg10[%c24_25, %c0_26], %29 {strides = array<i32>} : memref<120x2304xf32, #tpu.memory_space<vmem>>, vector<24x256xf32>,
    %cst_27 = arith.constant 0.000000e+00 : f32
    %31 = vector.broadcast %cst_27 : f32 to vector<24x128xf32>
    %c48 = arith.constant 48 : index
    %c0_28 = arith.constant 0 : index
    %32 = vector.load %arg10[%c48, %c0_28] : memref<120x2304xf32, #tpu.memory_space<vmem>>, vector<24x128xf32>
    tpu.vector_store %arg10[%c48, %c0_28], %31 {strides = array<i32>} : memref<120x2304xf32, #tpu.memory_space<vmem>>, vector<24x128xf32>,
    %cst_29 = arith.constant 0.000000e+00 : f32
    %33 = vector.broadcast %cst_29 : f32 to vector<24x128xf32>
    %c48_30 = arith.constant 48 : index
    %c2176 = arith.constant 2176 : index
    %34 = vector.load %arg10[%c48_30, %c2176] : memref<120x2304xf32, #tpu.memory_space<vmem>>, vector<24x128xf32>
    tpu.vector_store %arg10[%c48_30, %c2176], %33 {strides = array<i32>} : memref<120x2304xf32, #tpu.memory_space<vmem>>, vector<24x128xf32>,
    %cst_31 = arith.constant 0.000000e+00 : f32
    %35 = vector.broadcast %cst_31 : f32 to vector<24x256xf32>
    %c72 = arith.constant 72 : index
    %c2048 = arith.constant 2048 : index
    %36 = vector.load %arg10[%c72, %c2048] : memref<120x2304xf32, #tpu.memory_space<vmem>>, vector<24x256xf32>
    tpu.vector_store %arg10[%c72, %c2048], %35 {strides = array<i32>} : memref<120x2304xf32, #tpu.memory_space<vmem>>, vector<24x256xf32>,
    %cst_32 = arith.constant 0.000000e+00 : f32
    %37 = vector.broadcast %cst_32 : f32 to vector<24x384xf32>
    %c96 = arith.constant 96 : index
    %c1920_33 = arith.constant 1920 : index
    %38 = vector.load %arg10[%c96, %c1920_33] : memref<120x2304xf32, #tpu.memory_space<vmem>>, vector<24x384xf32>
    tpu.vector_store %arg10[%c96, %c1920_33], %37 {strides = array<i32>} : memref<120x2304xf32, #tpu.memory_space<vmem>>, vector<24x384xf32>,
    %c0_34 = arith.constant 0 : index
    %c0_35 = arith.constant 0 : index
    %39 = vector.load %arg2[%c0_34, %c0_35] : memref<24x28xf32, #tpu.memory_space<vmem>>, vector<24x28xf32>
    %c0_36 = arith.constant 0 : index
    %c0_37 = arith.constant 0 : index
    %40 = vector.load %arg3[%c0_36, %c0_37] : memref<24x1xf32, #tpu.memory_space<vmem>>, vector<24x1xf32>
    %c0_38 = arith.constant 0 : index
    %c0_39 = arith.constant 0 : index
    %41 = vector.load %arg9[%c0_38, %c0_39] : memref<28x2048xf32, #tpu.memory_space<vmem>>, vector<28x512xf32>
    %cst_40 = arith.constant dense<0.000000e+00> : vector<24x512xf32>
    %42 = tpu.matmul %39, %41, %cst_40 {dimension_numbers = #tpu.dot_dimension_numbers<[1], [0], [0], [1], [0, 0, 1, 1], [], []>} : vector<24x28xf32>, vector<28x512xf32>, vector<24x512xf32> -> vector<24x512xf32>
    %43 = vector.broadcast %40 : vector<24x1xf32> to vector<24x512xf32>
    %44 = arith.addf %42, %43 : vector<24x512xf32>
    %cst_41 = arith.constant 0.000000e+00 : f32
    %45 = vector.broadcast %cst_41 : f32 to vector<24x512xf32>
    %46 = arith.maximumf %44, %45 : vector<24x512xf32>
    %c0_42 = arith.constant 0 : index
    %c384_43 = arith.constant 384 : index
    %47 = vector.load %arg10[%c0_42, %c384_43] : memref<120x2304xf32, #tpu.memory_space<vmem>>, vector<24x512xf32>
    tpu.vector_store %arg10[%c0_42, %c384_43], %46 {strides = array<i32>} : memref<120x2304xf32, #tpu.memory_space<vmem>>, vector<24x512xf32>,
    %c24_44 = arith.constant 24 : index
    %c256_45 = arith.constant 256 : index
    %48 = vector.load %arg10[%c24_44, %c256_45] : memref<120x2304xf32, #tpu.memory_space<vmem>>, vector<24x512xf32>
    tpu.vector_store %arg10[%c24_44, %c256_45], %46 {strides = array<i32>} : memref<120x2304xf32, #tpu.memory_space<vmem>>, vector<24x512xf32>,
    %c48_46 = arith.constant 48 : index
    %c128_47 = arith.constant 128 : index
    %49 = vector.load %arg10[%c48_46, %c128_47] : memref<120x2304xf32, #tpu.memory_space<vmem>>, vector<24x512xf32>
    tpu.vector_store %arg10[%c48_46, %c128_47], %46 {strides = array<i32>} : memref<120x2304xf32, #tpu.memory_space<vmem>>, vector<24x512xf32>,
    %c72_48 = arith.constant 72 : index
    %c0_49 = arith.constant 0 : index
    %50 = vector.load %arg10[%c72_48, %c0_49] : memref<120x2304xf32, #tpu.memory_space<vmem>>, vector<24x512xf32>
    tpu.vector_store %arg10[%c72_48, %c0_49], %46 {strides = array<i32>} : memref<120x2304xf32, #tpu.memory_space<vmem>>, vector<24x512xf32>,
    %51 = vector.extract_strided_slice %46 {offsets = [0, 128], sizes = [24, 384], strides = [1, 1]} : vector<24x512xf32> to vector<24x384xf32>
    %c96_50 = arith.constant 96 : index
    %c0_51 = arith.constant 0 : index
    %52 = vector.load %arg10[%c96_50, %c0_51] : memref<120x2304xf32, #tpu.memory_space<vmem>>, vector<24x384xf32>
    tpu.vector_store %arg10[%c96_50, %c0_51], %51 {strides = array<i32>} : memref<120x2304xf32, #tpu.memory_space<vmem>>, vector<24x384xf32>,
    %c0_52 = arith.constant 0 : index
    %c512 = arith.constant 512 : index
    %53 = vector.load %arg9[%c0_52, %c512] : memref<28x2048xf32, #tpu.memory_space<vmem>>, vector<28x512xf32>
    %cst_53 = arith.constant dense<0.000000e+00> : vector<24x512xf32>
    %54 = tpu.matmul %39, %53, %cst_53 {dimension_numbers = #tpu.dot_dimension_numbers<[1], [0], [0], [1], [0, 0, 1, 1], [], []>} : vector<24x28xf32>, vector<28x512xf32>, vector<24x512xf32> -> vector<24x512xf32>
    %55 = vector.broadcast %40 : vector<24x1xf32> to vector<24x512xf32>
    %56 = arith.addf %54, %55 : vector<24x512xf32>
    %cst_54 = arith.constant 0.000000e+00 : f32
    %57 = vector.broadcast %cst_54 : f32 to vector<24x512xf32>
    %58 = arith.maximumf %56, %57 : vector<24x512xf32>
    %c0_55 = arith.constant 0 : index
    %c896 = arith.constant 896 : index
    %59 = vector.load %arg10[%c0_55, %c896] : memref<120x2304xf32, #tpu.memory_space<vmem>>, vector<24x512xf32>
    tpu.vector_store %arg10[%c0_55, %c896], %58 {strides = array<i32>} : memref<120x2304xf32, #tpu.memory_space<vmem>>, vector<24x512xf32>,
    %c24_56 = arith.constant 24 : index
    %c768 = arith.constant 768 : index
    %60 = vector.load %arg10[%c24_56, %c768] : memref<120x2304xf32, #tpu.memory_space<vmem>>, vector<24x512xf32>
    tpu.vector_store %arg10[%c24_56, %c768], %58 {strides = array<i32>} : memref<120x2304xf32, #tpu.memory_space<vmem>>, vector<24x512xf32>,
    %c48_57 = arith.constant 48 : index
    %c640 = arith.constant 640 : index
    %61 = vector.load %arg10[%c48_57, %c640] : memref<120x2304xf32, #tpu.memory_space<vmem>>, vector<24x512xf32>
    tpu.vector_store %arg10[%c48_57, %c640], %58 {strides = array<i32>} : memref<120x2304xf32, #tpu.memory_space<vmem>>, vector<24x512xf32>,
    %c72_58 = arith.constant 72 : index
    %c512_59 = arith.constant 512 : index
    %62 = vector.load %arg10[%c72_58, %c512_59] : memref<120x2304xf32, #tpu.memory_space<vmem>>, vector<24x512xf32>
    tpu.vector_store %arg10[%c72_58, %c512_59], %58 {strides = array<i32>} : memref<120x2304xf32, #tpu.memory_space<vmem>>, vector<24x512xf32>,
    %c96_60 = arith.constant 96 : index
    %c384_61 = arith.constant 384 : index
    %63 = vector.load %arg10[%c96_60, %c384_61] : memref<120x2304xf32, #tpu.memory_space<vmem>>, vector<24x512xf32>
    tpu.vector_store %arg10[%c96_60, %c384_61], %58 {strides = array<i32>} : memref<120x2304xf32, #tpu.memory_space<vmem>>, vector<24x512xf32>,
    %c0_62 = arith.constant 0 : index
    %c1024 = arith.constant 1024 : index
    %64 = vector.load %arg9[%c0_62, %c1024] : memref<28x2048xf32, #tpu.memory_space<vmem>>, vector<28x512xf32>
    %cst_63 = arith.constant dense<0.000000e+00> : vector<24x512xf32>
    %65 = tpu.matmul %39, %64, %cst_63 {dimension_numbers = #tpu.dot_dimension_numbers<[1], [0], [0], [1], [0, 0, 1, 1], [], []>} : vector<24x28xf32>, vector<28x512xf32>, vector<24x512xf32> -> vector<24x512xf32>
    %66 = vector.broadcast %40 : vector<24x1xf32> to vector<24x512xf32>
    %67 = arith.addf %65, %66 : vector<24x512xf32>
    %cst_64 = arith.constant 0.000000e+00 : f32
    %68 = vector.broadcast %cst_64 : f32 to vector<24x512xf32>
    %69 = arith.maximumf %67, %68 : vector<24x512xf32>
    %c0_65 = arith.constant 0 : index
    %c1408 = arith.constant 1408 : index
    %70 = vector.load %arg10[%c0_65, %c1408] : memref<120x2304xf32, #tpu.memory_space<vmem>>, vector<24x512xf32>
    tpu.vector_store %arg10[%c0_65, %c1408], %69 {strides = array<i32>} : memref<120x2304xf32, #tpu.memory_space<vmem>>, vector<24x512xf32>,
    %c24_66 = arith.constant 24 : index
    %c1280 = arith.constant 1280 : index
    %71 = vector.load %arg10[%c24_66, %c1280] : memref<120x2304xf32, #tpu.memory_space<vmem>>, vector<24x512xf32>
    tpu.vector_store %arg10[%c24_66, %c1280], %69 {strides = array<i32>} : memref<120x2304xf32, #tpu.memory_space<vmem>>, vector<24x512xf32>,
    %c48_67 = arith.constant 48 : index
    %c1152 = arith.constant 1152 : index
    %72 = vector.load %arg10[%c48_67, %c1152] : memref<120x2304xf32, #tpu.memory_space<vmem>>, vector<24x512xf32>
    tpu.vector_store %arg10[%c48_67, %c1152], %69 {strides = array<i32>} : memref<120x2304xf32, #tpu.memory_space<vmem>>, vector<24x512xf32>,
    %c72_68 = arith.constant 72 : index
    %c1024_69 = arith.constant 1024 : index
    %73 = vector.load %arg10[%c72_68, %c1024_69] : memref<120x2304xf32, #tpu.memory_space<vmem>>, vector<24x512xf32>
    tpu.vector_store %arg10[%c72_68, %c1024_69], %69 {strides = array<i32>} : memref<120x2304xf32, #tpu.memory_space<vmem>>, vector<24x512xf32>,
    %c96_70 = arith.constant 96 : index
    %c896_71 = arith.constant 896 : index
    %74 = vector.load %arg10[%c96_70, %c896_71] : memref<120x2304xf32, #tpu.memory_space<vmem>>, vector<24x512xf32>
    tpu.vector_store %arg10[%c96_70, %c896_71], %69 {strides = array<i32>} : memref<120x2304xf32, #tpu.memory_space<vmem>>, vector<24x512xf32>,
    %c0_72 = arith.constant 0 : index
    %c1536 = arith.constant 1536 : index
    %75 = vector.load %arg9[%c0_72, %c1536] : memref<28x2048xf32, #tpu.memory_space<vmem>>, vector<28x512xf32>
    %cst_73 = arith.constant dense<0.000000e+00> : vector<24x512xf32>
    %76 = tpu.matmul %39, %75, %cst_73 {dimension_numbers = #tpu.dot_dimension_numbers<[1], [0], [0], [1], [0, 0, 1, 1], [], []>} : vector<24x28xf32>, vector<28x512xf32>, vector<24x512xf32> -> vector<24x512xf32>
    %77 = vector.broadcast %40 : vector<24x1xf32> to vector<24x512xf32>
    %78 = arith.addf %76, %77 : vector<24x512xf32>
    %cst_74 = arith.constant 0.000000e+00 : f32
    %79 = vector.broadcast %cst_74 : f32 to vector<24x512xf32>
    %80 = arith.maximumf %78, %79 : vector<24x512xf32>
    %81 = vector.extract_strided_slice %80 {offsets = [0, 0], sizes = [24, 384], strides = [1, 1]} : vector<24x512xf32> to vector<24x384xf32>
    %c0_75 = arith.constant 0 : index
    %c1920_76 = arith.constant 1920 : index
    %82 = vector.load %arg10[%c0_75, %c1920_76] : memref<120x2304xf32, #tpu.memory_space<vmem>>, vector<24x384xf32>
    tpu.vector_store %arg10[%c0_75, %c1920_76], %81 {strides = array<i32>} : memref<120x2304xf32, #tpu.memory_space<vmem>>, vector<24x384xf32>,
    %c24_77 = arith.constant 24 : index
    %c1792_78 = arith.constant 1792 : index
    %83 = vector.load %arg10[%c24_77, %c1792_78] : memref<120x2304xf32, #tpu.memory_space<vmem>>, vector<24x512xf32>
    tpu.vector_store %arg10[%c24_77, %c1792_78], %80 {strides = array<i32>} : memref<120x2304xf32, #tpu.memory_space<vmem>>, vector<24x512xf32>,
    %c48_79 = arith.constant 48 : index
    %c1664_80 = arith.constant 1664 : index
    %84 = vector.load %arg10[%c48_79, %c1664_80] : memref<120x2304xf32, #tpu.memory_space<vmem>>, vector<24x512xf32>
    tpu.vector_store %arg10[%c48_79, %c1664_80], %80 {strides = array<i32>} : memref<120x2304xf32, #tpu.memory_space<vmem>>, vector<24x512xf32>,
    %c72_81 = arith.constant 72 : index
    %c1536_82 = arith.constant 1536 : index
    %85 = vector.load %arg10[%c72_81, %c1536_82] : memref<120x2304xf32, #tpu.memory_space<vmem>>, vector<24x512xf32>
    tpu.vector_store %arg10[%c72_81, %c1536_82], %80 {strides = array<i32>} : memref<120x2304xf32, #tpu.memory_space<vmem>>, vector<24x512xf32>,
    %c96_83 = arith.constant 96 : index
    %c1408_84 = arith.constant 1408 : index
    %86 = vector.load %arg10[%c96_83, %c1408_84] : memref<120x2304xf32, #tpu.memory_space<vmem>>, vector<24x512xf32>
    tpu.vector_store %arg10[%c96_83, %c1408_84], %80 {strides = array<i32>} : memref<120x2304xf32, #tpu.memory_space<vmem>>, vector<24x512xf32>,
    %cst_85 = arith.constant 0.000000e+00 : f32
    %87 = vector.broadcast %cst_85 : f32 to vector<24x384xf32>
    %c0_86 = arith.constant 0 : index
    %c0_87 = arith.constant 0 : index
    %88 = vector.load %arg11[%c0_86, %c0_87] : memref<72x2816xf32, #tpu.memory_space<vmem>>, vector<24x384xf32>
    tpu.vector_store %arg11[%c0_86, %c0_87], %87 {strides = array<i32>} : memref<72x2816xf32, #tpu.memory_space<vmem>>, vector<24x384xf32>,
    %cst_88 = arith.constant 0.000000e+00 : f32
    %89 = vector.broadcast %cst_88 : f32 to vector<24x128xf32>
    %c0_89 = arith.constant 0 : index
    %c2688 = arith.constant 2688 : index
    %90 = vector.load %arg11[%c0_89, %c2688] : memref<72x2816xf32, #tpu.memory_space<vmem>>, vector<24x128xf32>
    tpu.vector_store %arg11[%c0_89, %c2688], %89 {strides = array<i32>} : memref<72x2816xf32, #tpu.memory_space<vmem>>, vector<24x128xf32>,
    %cst_90 = arith.constant 0.000000e+00 : f32
    %91 = vector.broadcast %cst_90 : f32 to vector<24x256xf32>
    %c24_91 = arith.constant 24 : index
    %c0_92 = arith.constant 0 : index
    %92 = vector.load %arg11[%c24_91, %c0_92] : memref<72x2816xf32, #tpu.memory_space<vmem>>, vector<24x256xf32>
    tpu.vector_store %arg11[%c24_91, %c0_92], %91 {strides = array<i32>} : memref<72x2816xf32, #tpu.memory_space<vmem>>, vector<24x256xf32>,
    %cst_93 = arith.constant 0.000000e+00 : f32
    %93 = vector.broadcast %cst_93 : f32 to vector<24x256xf32>
    %c24_94 = arith.constant 24 : index
    %c2560 = arith.constant 2560 : index
    %94 = vector.load %arg11[%c24_94, %c2560] : memref<72x2816xf32, #tpu.memory_space<vmem>>, vector<24x256xf32>
    tpu.vector_store %arg11[%c24_94, %c2560], %93 {strides = array<i32>} : memref<72x2816xf32, #tpu.memory_space<vmem>>, vector<24x256xf32>,
    %cst_95 = arith.constant 0.000000e+00 : f32
    %95 = vector.broadcast %cst_95 : f32 to vector<24x128xf32>
    %c48_96 = arith.constant 48 : index
    %c0_97 = arith.constant 0 : index
    %96 = vector.load %arg11[%c48_96, %c0_97] : memref<72x2816xf32, #tpu.memory_space<vmem>>, vector<24x128xf32>
    tpu.vector_store %arg11[%c48_96, %c0_97], %95 {strides = array<i32>} : memref<72x2816xf32, #tpu.memory_space<vmem>>, vector<24x128xf32>,
    %cst_98 = arith.constant 0.000000e+00 : f32
    %97 = vector.broadcast %cst_98 : f32 to vector<24x384xf32>
    %c48_99 = arith.constant 48 : index
    %c2432 = arith.constant 2432 : index
    %98 = vector.load %arg11[%c48_99, %c2432] : memref<72x2816xf32, #tpu.memory_space<vmem>>, vector<24x384xf32>
    tpu.vector_store %arg11[%c48_99, %c2432], %97 {strides = array<i32>} : memref<72x2816xf32, #tpu.memory_space<vmem>>, vector<24x384xf32>,
    %c0_100 = arith.constant 0 : index
    %c0_101 = arith.constant 0 : index
    %99 = vector.load %arg4[%c0_100, %c0_101] : memref<24x120xf32, #tpu.memory_space<vmem>>, vector<24x120xf32>
    %c0_102 = arith.constant 0 : index
    %c0_103 = arith.constant 0 : index
    %100 = vector.load %arg5[%c0_102, %c0_103] : memref<24x1xf32, #tpu.memory_space<vmem>>, vector<24x1xf32>
    %c0_104 = arith.constant 0 : index
    %c0_105 = arith.constant 0 : index
    %101 = vector.load %arg10[%c0_104, %c0_105] : memref<120x2304xf32, #tpu.memory_space<vmem>>, vector<120x512xf32>
    %cst_106 = arith.constant dense<0.000000e+00> : vector<24x512xf32>
    %102 = tpu.matmul %99, %101, %cst_106 {dimension_numbers = #tpu.dot_dimension_numbers<[1], [0], [0], [1], [0, 0, 1, 1], [], []>} : vector<24x120xf32>, vector<120x512xf32>, vector<24x512xf32> -> vector<24x512xf32>
    %103 = vector.broadcast %100 : vector<24x1xf32> to vector<24x512xf32>
    %104 = arith.addf %102, %103 : vector<24x512xf32>
    %cst_107 = arith.constant 0.000000e+00 : f32
    %105 = vector.broadcast %cst_107 : f32 to vector<24x512xf32>
    %106 = arith.maximumf %104, %105 : vector<24x512xf32>
    %c0_108 = arith.constant 0 : index
    %c384_109 = arith.constant 384 : index
    %107 = vector.load %arg11[%c0_108, %c384_109] : memref<72x2816xf32, #tpu.memory_space<vmem>>, vector<24x512xf32>
    tpu.vector_store %arg11[%c0_108, %c384_109], %106 {strides = array<i32>} : memref<72x2816xf32, #tpu.memory_space<vmem>>, vector<24x512xf32>,
    %c24_110 = arith.constant 24 : index
    %c256_111 = arith.constant 256 : index
    %108 = vector.load %arg11[%c24_110, %c256_111] : memref<72x2816xf32, #tpu.memory_space<vmem>>, vector<24x512xf32>
    tpu.vector_store %arg11[%c24_110, %c256_111], %106 {strides = array<i32>} : memref<72x2816xf32, #tpu.memory_space<vmem>>, vector<24x512xf32>,
    %c48_112 = arith.constant 48 : index
    %c128_113 = arith.constant 128 : index
    %109 = vector.load %arg11[%c48_112, %c128_113] : memref<72x2816xf32, #tpu.memory_space<vmem>>, vector<24x512xf32>
    tpu.vector_store %arg11[%c48_112, %c128_113], %106 {strides = array<i32>} : memref<72x2816xf32, #tpu.memory_space<vmem>>, vector<24x512xf32>,
    %c0_114 = arith.constant 0 : index
    %c512_115 = arith.constant 512 : index
    %110 = vector.load %arg10[%c0_114, %c512_115] : memref<120x2304xf32, #tpu.memory_space<vmem>>, vector<120x512xf32>
    %cst_116 = arith.constant dense<0.000000e+00> : vector<24x512xf32>
    %111 = tpu.matmul %99, %110, %cst_116 {dimension_numbers = #tpu.dot_dimension_numbers<[1], [0], [0], [1], [0, 0, 1, 1], [], []>} : vector<24x120xf32>, vector<120x512xf32>, vector<24x512xf32> -> vector<24x512xf32>
    %112 = vector.broadcast %100 : vector<24x1xf32> to vector<24x512xf32>
    %113 = arith.addf %111, %112 : vector<24x512xf32>
    %cst_117 = arith.constant 0.000000e+00 : f32
    %114 = vector.broadcast %cst_117 : f32 to vector<24x512xf32>
    %115 = arith.maximumf %113, %114 : vector<24x512xf32>
    %c0_118 = arith.constant 0 : index
    %c896_119 = arith.constant 896 : index
    %116 = vector.load %arg11[%c0_118, %c896_119] : memref<72x2816xf32, #tpu.memory_space<vmem>>, vector<24x512xf32>
    tpu.vector_store %arg11[%c0_118, %c896_119], %115 {strides = array<i32>} : memref<72x2816xf32, #tpu.memory_space<vmem>>, vector<24x512xf32>,
    %c24_120 = arith.constant 24 : index
    %c768_121 = arith.constant 768 : index
    %117 = vector.load %arg11[%c24_120, %c768_121] : memref<72x2816xf32, #tpu.memory_space<vmem>>, vector<24x512xf32>
    tpu.vector_store %arg11[%c24_120, %c768_121], %115 {strides = array<i32>} : memref<72x2816xf32, #tpu.memory_space<vmem>>, vector<24x512xf32>,
    %c48_122 = arith.constant 48 : index
    %c640_123 = arith.constant 640 : index
    %118 = vector.load %arg11[%c48_122, %c640_123] : memref<72x2816xf32, #tpu.memory_space<vmem>>, vector<24x512xf32>
    tpu.vector_store %arg11[%c48_122, %c640_123], %115 {strides = array<i32>} : memref<72x2816xf32, #tpu.memory_space<vmem>>, vector<24x512xf32>,
    %c0_124 = arith.constant 0 : index
    %c1024_125 = arith.constant 1024 : index
    %119 = vector.load %arg10[%c0_124, %c1024_125] : memref<120x2304xf32, #tpu.memory_space<vmem>>, vector<120x512xf32>
    %cst_126 = arith.constant dense<0.000000e+00> : vector<24x512xf32>
    %120 = tpu.matmul %99, %119, %cst_126 {dimension_numbers = #tpu.dot_dimension_numbers<[1], [0], [0], [1], [0, 0, 1, 1], [], []>} : vector<24x120xf32>, vector<120x512xf32>, vector<24x512xf32> -> vector<24x512xf32>
    %121 = vector.broadcast %100 : vector<24x1xf32> to vector<24x512xf32>
    %122 = arith.addf %120, %121 : vector<24x512xf32>
    %cst_127 = arith.constant 0.000000e+00 : f32
    %123 = vector.broadcast %cst_127 : f32 to vector<24x512xf32>
    %124 = arith.maximumf %122, %123 : vector<24x512xf32>
    %c0_128 = arith.constant 0 : index
    %c1408_129 = arith.constant 1408 : index
    %125 = vector.load %arg11[%c0_128, %c1408_129] : memref<72x2816xf32, #tpu.memory_space<vmem>>, vector<24x512xf32>
    tpu.vector_store %arg11[%c0_128, %c1408_129], %124 {strides = array<i32>} : memref<72x2816xf32, #tpu.memory_space<vmem>>, vector<24x512xf32>,
    %c24_130 = arith.constant 24 : index
    %c1280_131 = arith.constant 1280 : index
    %126 = vector.load %arg11[%c24_130, %c1280_131] : memref<72x2816xf32, #tpu.memory_space<vmem>>, vector<24x512xf32>
    tpu.vector_store %arg11[%c24_130, %c1280_131], %124 {strides = array<i32>} : memref<72x2816xf32, #tpu.memory_space<vmem>>, vector<24x512xf32>,
    %c48_132 = arith.constant 48 : index
    %c1152_133 = arith.constant 1152 : index
    %127 = vector.load %arg11[%c48_132, %c1152_133] : memref<72x2816xf32, #tpu.memory_space<vmem>>, vector<24x512xf32>
    tpu.vector_store %arg11[%c48_132, %c1152_133], %124 {strides = array<i32>} : memref<72x2816xf32, #tpu.memory_space<vmem>>, vector<24x512xf32>,
    %c0_134 = arith.constant 0 : index
    %c1536_135 = arith.constant 1536 : index
    %128 = vector.load %arg10[%c0_134, %c1536_135] : memref<120x2304xf32, #tpu.memory_space<vmem>>, vector<120x512xf32>
    %cst_136 = arith.constant dense<0.000000e+00> : vector<24x512xf32>
    %129 = tpu.matmul %99, %128, %cst_136 {dimension_numbers = #tpu.dot_dimension_numbers<[1], [0], [0], [1], [0, 0, 1, 1], [], []>} : vector<24x120xf32>, vector<120x512xf32>, vector<24x512xf32> -> vector<24x512xf32>
    %130 = vector.broadcast %100 : vector<24x1xf32> to vector<24x512xf32>
    %131 = arith.addf %129, %130 : vector<24x512xf32>
    %cst_137 = arith.constant 0.000000e+00 : f32
    %132 = vector.broadcast %cst_137 : f32 to vector<24x512xf32>
    %133 = arith.maximumf %131, %132 : vector<24x512xf32>
    %c0_138 = arith.constant 0 : index
    %c1920_139 = arith.constant 1920 : index
    %134 = vector.load %arg11[%c0_138, %c1920_139] : memref<72x2816xf32, #tpu.memory_space<vmem>>, vector<24x512xf32>
    tpu.vector_store %arg11[%c0_138, %c1920_139], %133 {strides = array<i32>} : memref<72x2816xf32, #tpu.memory_space<vmem>>, vector<24x512xf32>,
    %c24_140 = arith.constant 24 : index
    %c1792_141 = arith.constant 1792 : index
    %135 = vector.load %arg11[%c24_140, %c1792_141] : memref<72x2816xf32, #tpu.memory_space<vmem>>, vector<24x512xf32>
    tpu.vector_store %arg11[%c24_140, %c1792_141], %133 {strides = array<i32>} : memref<72x2816xf32, #tpu.memory_space<vmem>>, vector<24x512xf32>,
    %c48_142 = arith.constant 48 : index
    %c1664_143 = arith.constant 1664 : index
    %136 = vector.load %arg11[%c48_142, %c1664_143] : memref<72x2816xf32, #tpu.memory_space<vmem>>, vector<24x512xf32>
    tpu.vector_store %arg11[%c48_142, %c1664_143], %133 {strides = array<i32>} : memref<72x2816xf32, #tpu.memory_space<vmem>>, vector<24x512xf32>,
    %c0_144 = arith.constant 0 : index
    %c2048_145 = arith.constant 2048 : index
    %137 = vector.load %arg10[%c0_144, %c2048_145] : memref<120x2304xf32, #tpu.memory_space<vmem>>, vector<120x256xf32>
    %cst_146 = arith.constant dense<0.000000e+00> : vector<24x256xf32>
    %138 = tpu.matmul %99, %137, %cst_146 {dimension_numbers = #tpu.dot_dimension_numbers<[1], [0], [0], [1], [0, 0, 1, 1], [], []>} : vector<24x120xf32>, vector<120x256xf32>, vector<24x256xf32> -> vector<24x256xf32>
    %139 = vector.broadcast %100 : vector<24x1xf32> to vector<24x256xf32>
    %140 = arith.addf %138, %139 : vector<24x256xf32>
    %cst_147 = arith.constant 0.000000e+00 : f32
    %141 = vector.broadcast %cst_147 : f32 to vector<24x256xf32>
    %142 = arith.maximumf %140, %141 : vector<24x256xf32>
    %c0_148 = arith.constant 0 : index
    %c2432_149 = arith.constant 2432 : index
    %143 = vector.load %arg11[%c0_148, %c2432_149] : memref<72x2816xf32, #tpu.memory_space<vmem>>, vector<24x256xf32>
    tpu.vector_store %arg11[%c0_148, %c2432_149], %142 {strides = array<i32>} : memref<72x2816xf32, #tpu.memory_space<vmem>>, vector<24x256xf32>,
    %c24_150 = arith.constant 24 : index
    %c2304 = arith.constant 2304 : index
    %144 = vector.load %arg11[%c24_150, %c2304] : memref<72x2816xf32, #tpu.memory_space<vmem>>, vector<24x256xf32>
    tpu.vector_store %arg11[%c24_150, %c2304], %142 {strides = array<i32>} : memref<72x2816xf32, #tpu.memory_space<vmem>>, vector<24x256xf32>,
    %c48_151 = arith.constant 48 : index
    %c2176_152 = arith.constant 2176 : index
    %145 = vector.load %arg11[%c48_151, %c2176_152] : memref<72x2816xf32, #tpu.memory_space<vmem>>, vector<24x256xf32>
    tpu.vector_store %arg11[%c48_151, %c2176_152], %142 {strides = array<i32>} : memref<72x2816xf32, #tpu.memory_space<vmem>>, vector<24x256xf32>,
    %c0_153 = arith.constant 0 : index
    %c0_154 = arith.constant 0 : index
    %146 = vector.load %arg6[%c0_153, %c0_154] : memref<3x72xf32, #tpu.memory_space<vmem>>, vector<3x72xf32>
    %c0_155 = arith.constant 0 : index
    %c0_156 = arith.constant 0 : index
    %147 = vector.load %arg7[%c0_155, %c0_156] : memref<3x1xf32, #tpu.memory_space<vmem>>, vector<3x1xf32>
    %c0_157 = arith.constant 0 : index
    %c0_158 = arith.constant 0 : index
    %148 = vector.load %arg11[%c0_157, %c0_158] : memref<72x2816xf32, #tpu.memory_space<vmem>>, vector<72x512xf32>
    %cst_159 = arith.constant dense<0.000000e+00> : vector<3x512xf32>
    %149 = tpu.matmul %146, %148, %cst_159 {dimension_numbers = #tpu.dot_dimension_numbers<[1], [0], [0], [1], [0, 0, 1, 1], [], []>} : vector<3x72xf32>, vector<72x512xf32>, vector<3x512xf32> -> vector<3x512xf32>
    %150 = vector.broadcast %147 : vector<3x1xf32> to vector<3x512xf32>
    %151 = arith.addf %149, %150 : vector<3x512xf32>
    %cst_160 = arith.constant 0.000000e+00 : f32
    %152 = vector.broadcast %cst_160 : f32 to vector<3x512xf32>
    %153 = arith.maximumf %151, %152 : vector<3x512xf32>
    %c0_161 = arith.constant 0 : index
    %c0_162 = arith.constant 0 : index
    %c0_163 = arith.constant 0 : index
    %154 = vector.load %arg8[%c0_161, %c0_162, %c0_163] : memref<1x3x2816xf32, #tpu.memory_space<vmem>>, vector<1x3x512xf32>
    %155 = vector.shape_cast %154 : vector<1x3x512xf32> to vector<3x512xf32>
    %156 = vector.shape_cast %153 : vector<3x512xf32> to vector<1x3x512xf32>
    tpu.vector_store %arg8[%c0_161, %c0_162, %c0_163], %156 {strides = array<i32>} : memref<1x3x2816xf32, #tpu.memory_space<vmem>>, vector<1x3x512xf32>,
    %c0_164 = arith.constant 0 : index
    %c512_165 = arith.constant 512 : index
    %157 = vector.load %arg11[%c0_164, %c512_165] : memref<72x2816xf32, #tpu.memory_space<vmem>>, vector<72x512xf32>
    %cst_166 = arith.constant dense<0.000000e+00> : vector<3x512xf32>
    %158 = tpu.matmul %146, %157, %cst_166 {dimension_numbers = #tpu.dot_dimension_numbers<[1], [0], [0], [1], [0, 0, 1, 1], [], []>} : vector<3x72xf32>, vector<72x512xf32>, vector<3x512xf32> -> vector<3x512xf32>
    %159 = vector.broadcast %147 : vector<3x1xf32> to vector<3x512xf32>
    %160 = arith.addf %158, %159 : vector<3x512xf32>
    %cst_167 = arith.constant 0.000000e+00 : f32
    %161 = vector.broadcast %cst_167 : f32 to vector<3x512xf32>
    %162 = arith.maximumf %160, %161 : vector<3x512xf32>
    %c0_168 = arith.constant 0 : index
    %c0_169 = arith.constant 0 : index
    %c512_170 = arith.constant 512 : index
    %163 = vector.load %arg8[%c0_168, %c0_169, %c512_170] : memref<1x3x2816xf32, #tpu.memory_space<vmem>>, vector<1x3x512xf32>
    %164 = vector.shape_cast %163 : vector<1x3x512xf32> to vector<3x512xf32>
    %165 = vector.shape_cast %162 : vector<3x512xf32> to vector<1x3x512xf32>
    tpu.vector_store %arg8[%c0_168, %c0_169, %c512_170], %165 {strides = array<i32>} : memref<1x3x2816xf32, #tpu.memory_space<vmem>>, vector<1x3x512xf32>,
    %c0_171 = arith.constant 0 : index
    %c1024_172 = arith.constant 1024 : index
    %166 = vector.load %arg11[%c0_171, %c1024_172] : memref<72x2816xf32, #tpu.memory_space<vmem>>, vector<72x512xf32>
    %cst_173 = arith.constant dense<0.000000e+00> : vector<3x512xf32>
    %167 = tpu.matmul %146, %166, %cst_173 {dimension_numbers = #tpu.dot_dimension_numbers<[1], [0], [0], [1], [0, 0, 1, 1], [], []>} : vector<3x72xf32>, vector<72x512xf32>, vector<3x512xf32> -> vector<3x512xf32>
    %168 = vector.broadcast %147 : vector<3x1xf32> to vector<3x512xf32>
    %169 = arith.addf %167, %168 : vector<3x512xf32>
    %cst_174 = arith.constant 0.000000e+00 : f32
    %170 = vector.broadcast %cst_174 : f32 to vector<3x512xf32>
    %171 = arith.maximumf %169, %170 : vector<3x512xf32>
    %c0_175 = arith.constant 0 : index
    %c0_176 = arith.constant 0 : index
    %c1024_177 = arith.constant 1024 : index
    %172 = vector.load %arg8[%c0_175, %c0_176, %c1024_177] : memref<1x3x2816xf32, #tpu.memory_space<vmem>>, vector<1x3x512xf32>
    %173 = vector.shape_cast %172 : vector<1x3x512xf32> to vector<3x512xf32>
    %174 = vector.shape_cast %171 : vector<3x512xf32> to vector<1x3x512xf32>
    tpu.vector_store %arg8[%c0_175, %c0_176, %c1024_177], %174 {strides = array<i32>} : memref<1x3x2816xf32, #tpu.memory_space<vmem>>, vector<1x3x512xf32>,
    %c0_178 = arith.constant 0 : index
    %c1536_179 = arith.constant 1536 : index
    %175 = vector.load %arg11[%c0_178, %c1536_179] : memref<72x2816xf32, #tpu.memory_space<vmem>>, vector<72x512xf32>
    %cst_180 = arith.constant dense<0.000000e+00> : vector<3x512xf32>
    %176 = tpu.matmul %146, %175, %cst_180 {dimension_numbers = #tpu.dot_dimension_numbers<[1], [0], [0], [1], [0, 0, 1, 1], [], []>} : vector<3x72xf32>, vector<72x512xf32>, vector<3x512xf32> -> vector<3x512xf32>
    %177 = vector.broadcast %147 : vector<3x1xf32> to vector<3x512xf32>
    %178 = arith.addf %176, %177 : vector<3x512xf32>
    %cst_181 = arith.constant 0.000000e+00 : f32
    %179 = vector.broadcast %cst_181 : f32 to vector<3x512xf32>
    %180 = arith.maximumf %178, %179 : vector<3x512xf32>
    %c0_182 = arith.constant 0 : index
    %c0_183 = arith.constant 0 : index
    %c1536_184 = arith.constant 1536 : index
    %181 = vector.load %arg8[%c0_182, %c0_183, %c1536_184] : memref<1x3x2816xf32, #tpu.memory_space<vmem>>, vector<1x3x512xf32>
    %182 = vector.shape_cast %181 : vector<1x3x512xf32> to vector<3x512xf32>
    %183 = vector.shape_cast %180 : vector<3x512xf32> to vector<1x3x512xf32>
    tpu.vector_store %arg8[%c0_182, %c0_183, %c1536_184], %183 {strides = array<i32>} : memref<1x3x2816xf32, #tpu.memory_space<vmem>>, vector<1x3x512xf32>,
    %c0_185 = arith.constant 0 : index
    %c2048_186 = arith.constant 2048 : index
    %184 = vector.load %arg11[%c0_185, %c2048_186] : memref<72x2816xf32, #tpu.memory_space<vmem>>, vector<72x512xf32>
    %cst_187 = arith.constant dense<0.000000e+00> : vector<3x512xf32>
    %185 = tpu.matmul %146, %184, %cst_187 {dimension_numbers = #tpu.dot_dimension_numbers<[1], [0], [0], [1], [0, 0, 1, 1], [], []>} : vector<3x72xf32>, vector<72x512xf32>, vector<3x512xf32> -> vector<3x512xf32>
    %186 = vector.broadcast %147 : vector<3x1xf32> to vector<3x512xf32>
    %187 = arith.addf %185, %186 : vector<3x512xf32>
    %cst_188 = arith.constant 0.000000e+00 : f32
    %188 = vector.broadcast %cst_188 : f32 to vector<3x512xf32>
    %189 = arith.maximumf %187, %188 : vector<3x512xf32>
    %c0_189 = arith.constant 0 : index
    %c0_190 = arith.constant 0 : index
    %c2048_191 = arith.constant 2048 : index
    %190 = vector.load %arg8[%c0_189, %c0_190, %c2048_191] : memref<1x3x2816xf32, #tpu.memory_space<vmem>>, vector<1x3x512xf32>
    %191 = vector.shape_cast %190 : vector<1x3x512xf32> to vector<3x512xf32>
    %192 = vector.shape_cast %189 : vector<3x512xf32> to vector<1x3x512xf32>
    tpu.vector_store %arg8[%c0_189, %c0_190, %c2048_191], %192 {strides = array<i32>} : memref<1x3x2816xf32, #tpu.memory_space<vmem>>, vector<1x3x512xf32>,
    %c0_192 = arith.constant 0 : index
    %c2560_193 = arith.constant 2560 : index
    %193 = vector.load %arg11[%c0_192, %c2560_193] : memref<72x2816xf32, #tpu.memory_space<vmem>>, vector<72x256xf32>
    %cst_194 = arith.constant dense<0.000000e+00> : vector<3x256xf32>
    %194 = tpu.matmul %146, %193, %cst_194 {dimension_numbers = #tpu.dot_dimension_numbers<[1], [0], [0], [1], [0, 0, 1, 1], [], []>} : vector<3x72xf32>, vector<72x256xf32>, vector<3x256xf32> -> vector<3x256xf32>
    %195 = vector.broadcast %147 : vector<3x1xf32> to vector<3x256xf32>
    %196 = arith.addf %194, %195 : vector<3x256xf32>
    %cst_195 = arith.constant 0.000000e+00 : f32
    %197 = vector.broadcast %cst_195 : f32 to vector<3x256xf32>
    %198 = arith.maximumf %196, %197 : vector<3x256xf32>
    %c0_196 = arith.constant 0 : index
    %c0_197 = arith.constant 0 : index
    %c2560_198 = arith.constant 2560 : index
    %199 = vector.load %arg8[%c0_196, %c0_197, %c2560_198] : memref<1x3x2816xf32, #tpu.memory_space<vmem>>, vector<1x3x256xf32>
    %200 = vector.shape_cast %199 : vector<1x3x256xf32> to vector<3x256xf32>
    %201 = vector.shape_cast %198 : vector<3x256xf32> to vector<1x3x256xf32>
    tpu.vector_store %arg8[%c0_196, %c0_197, %c2560_198], %201 {strides = array<i32>} : memref<1x3x2816xf32, #tpu.memory_space<vmem>>, vector<1x3x256xf32>,
    return
  }
  func.func @transform_0(%arg0: i32) -> (i32, i32, i32) {
    %c0_i32 = arith.constant 0 : i32
    %c0_i32_0 = arith.constant 0 : i32
    %c0_i32_1 = arith.constant 0 : i32
    return %arg0, %c0_i32, %c0_i32_0 : i32, i32, i32
  }
  func.func @transform_1(%arg0: i32) -> (i32, i32) {
    %c0_i32 = arith.constant 0 : i32
    %c0_i32_0 = arith.constant 0 : i32
    %c0_i32_1 = arith.constant 0 : i32
    return %c0_i32, %c0_i32_0 : i32, i32
  }
  func.func @transform_2(%arg0: i32) -> (i32, i32) {
    %c0_i32 = arith.constant 0 : i32
    %c0_i32_0 = arith.constant 0 : i32
    %c0_i32_1 = arith.constant 0 : i32
    return %c0_i32, %c0_i32_0 : i32, i32
  }
  func.func @transform_3(%arg0: i32) -> (i32, i32) {
    %c0_i32 = arith.constant 0 : i32
    %c0_i32_0 = arith.constant 0 : i32
    %c0_i32_1 = arith.constant 0 : i32
    return %c0_i32, %c0_i32_0 : i32, i32
  }
  func.func @transform_4(%arg0: i32) -> (i32, i32) {
    %c0_i32 = arith.constant 0 : i32
    %c0_i32_0 = arith.constant 0 : i32
    %c0_i32_1 = arith.constant 0 : i32
    return %c0_i32, %c0_i32_0 : i32, i32
  }
  func.func @transform_5(%arg0: i32) -> (i32, i32) {
    %c0_i32 = arith.constant 0 : i32
    %c0_i32_0 = arith.constant 0 : i32
    %c0_i32_1 = arith.constant 0 : i32
    return %c0_i32, %c0_i32_0 : i32, i32
  }
  func.func @transform_6(%arg0: i32) -> (i32, i32) {
    %c0_i32 = arith.constant 0 : i32
    %c0_i32_0 = arith.constant 0 : i32
    %c0_i32_1 = arith.constant 0 : i32
    return %c0_i32, %c0_i32_0 : i32, i32
  }
  func.func @transform_7(%arg0: i32) -> (i32, i32, i32) {
    %c0_i32 = arith.constant 0 : i32
    %c0_i32_0 = arith.constant 0 : i32
    %c0_i32_1 = arith.constant 0 : i32
    return %arg0, %c0_i32, %c0_i32_0 : i32, i32, i32
  }
}

</mosaic_0001>

<bundles_post_ra>
// kernel: mul.21
= control target key start
LH: loop header
LB: loop body
LE: loop exit
PB: predicated region body
PF: predicated region fallthrough
CT: control target
= control target key end

     0   :  { %s45_s14 = smov 8   ;;  %vm19_vm0 = vcmask 64512   ;;  %vm25_vm1 = vcmask 195712   ;;  %vm31_vm2 = vcmask 130112   ;;  %s71_s0 = inlined_call_operand.vmem [shape: f32[3,8,4], index: 0, kind: input, shape index: {}]   ;;  %s72_s1 = inlined_call_operand.vmem [shape: f32[24,4], index: 1, kind: output, shape index: {}]  }
   0x1   :  { %v39_v0 = vld [vmem:[%s71_s0 + $0xc] sm:$0xf]  ;;  %v40_v1 = vld [vmem:[%s71_s0 + $0x8] sm:$0xf]  ;;  %v41_v2 = vld [vmem:[%s71_s0 + $0x4] sm:$0xf] }
   0x2   :  { %7 = vst [vmem:[#allocation1 + $0x18] sm:$0xf] %v39_v0  ;;  %v16_v3 = vld [vmem:[%s71_s0] sm:$0xf]  ;;  %s44_s0 = smov 16  }
   0x3   :  { %11 = vst [vmem:[#allocation1 + $0x10] sm:$0xf] %v40_v1 }
   0x4   :  { %15 = vst [vmem:[#allocation1 + $0x8] sm:$0xf] %v41_v2 }
   0x5   :  { %17 = vst [vmem:[#allocation1] sm:$0xf] %v16_v3 }
   0xc   :  { %v22_v4 = vld [vmem:[#allocation1 + $0x2] ss:$8 sm:$0xf]   ;;  %v28_v5 = vld [vmem:[#allocation1 + $0x1] ss:$8 sm:$0xf]  }
   0xd   :  { %23 = vrot.lane.b32.xlu0 %v22_v4, %s44_s0  ;;  %v18_v6 = vld [vmem:[#allocation1] ss:$8 sm:$0xf]  }
   0xe   :  { %20 = vst.msk [vmem:[#allocation0] sm:$0xf] %vm19_vm0, %v18_v6  }
  0x15   :  { %29 = vrot.lane.b32.xlu0 %v28_v5, %s45_s14 }
  0x7f   :  { %v24_v7 = vpop.permute.xlu0 %23  }
  0x80   :  { %26 = vst.msk [vmem:[#allocation0] sm:$0xf] %vm25_vm1, %v24_v7  }
  0x87   :  { %v30_v8 = vpop.permute.xlu0 %29  }
  0x88   :  { %32 = vst.msk [vmem:[#allocation0] sm:$0xf] %vm31_vm2, %v30_v8  }
  0x8f   :  { %v35_v9 = vld [vmem:[#allocation0] sm:$0xf] }
  0x90   :  { %38 = vst [vmem:[%s72_s1] sm:$0xf] %v35_v9 }

// kernel: multi_encoder_forward.1
= control target key start
LH: loop header
LB: loop body
LE: loop exit
PB: predicated region body
PF: predicated region fallthrough
CT: control target
= control target key end

     0   :  { %s3589_s24 = smov 0   ;;  %s4740_s0 = inlined_call_operand.vmem [shape: f32[2,4,2048], index: 0, kind: input, shape index: {}]   ;;  %s4741_s1 = inlined_call_operand.vmem [shape: f32[24,28], index: 1, kind: input, shape index: {}]   ;;  %s4742_s2 = inlined_call_operand.vmem [shape: f32[24,1], index: 2, kind: input, shape index: {}]   ;;  %s4743_s3 = inlined_call_operand.vmem [shape: f32[24,120], index: 3, kind: input, shape index: {}]   ;;  %s4744_s4 = inlined_call_operand.vmem [shape: f32[24,1], index: 4, kind: input, shape index: {}]   ;;  %s4745_s5 = inlined_call_operand.vmem [shape: f32[3,72], index: 5, kind: input, shape index: {}]   ;;  %s4746_s6 = inlined_call_operand.vmem [shape: f32[3,1], index: 6, kind: input, shape index: {}]   ;;  %s4747_s7 = inlined_call_operand.vmem [shape: f32[2,3,2816], index: 7, kind: output, shape index: {}]  }
   0x1 LB: > { %s3374_s25 = sadd.s32 4294967295, %s3545_s24   ;;  %p3378_p0 = scmp.ge.s32.totalorder %s3545_s24, 1  ;;  %s3545_s24 = sphi %s3589_s24, %s17_s24  }
   0x2   : > { %p237_p1 = scmp.lt.s32.totalorder %s3545_s24, 3 }
   0x4   : > { %p238_p2 = pnand %p3378_p0, %p237_p1 }
   0x5   : > { %p269_p3 = scmp.lt.s32.totalorder (!%p238_p2), %s3374_s25, 1 }
   0x6   : > { %241 = sbr.rel (%p238_p2) target bundleno = 845 (0x34d), region = 48 }
   0xb   : > { %s4749_s25 = smov (!%p269_p3, %s3374_s25), 1  ;;  %vm766_vm0 = vcmask 1043456   ;;  %vm756_vm1 = vcmask 228352   ;;  %vm1678_vm2 = vcmask 982016   ;;  %vm2625_vm3 = vcmask 588800  }
   0xc   : > { %s3524_s26 = sshll.u32 %s4749_s25, 6  ;;  %s3525_s14 = smul.u32 88, %s4749_s25 }
   0xd   : > { %s3603_s29 = scalar_lea.vmem %s4740_s0, %s3524_s26 }
   0xe   : > { %v3606_v0 = vld [vmem:[%s3603_s29] sm:$0xff]  ;;  %v3609_v1 = vld [vmem:[%s3603_s29 + $0x8] sm:$0xff]  ;;  %v3612_v2 = vld [vmem:[%s3603_s29 + $0x10] sm:$0xff]  ;;  %s4681_s17 = scalar_lea.vmem %s4747_s7, %s3525_s14 }
   0xf   : > { %306 = vst [vmem:[#allocation1] ss:$2 sm:$0xff] %v3606_v0  ;;  %v3618_v3 = vld [vmem:[%s3603_s29 + $0x20] sm:$0xff]  ;;  %v3621_v6 = vld [vmem:[%s3603_s29 + $0x28] sm:$0xff]  ;;  %v3627_v10 = vld [vmem:[%s3603_s29 + $0x30] sm:$0xff] }
  0x10   : > { %308 = vst [vmem:[#allocation1 + $0x10] ss:$2 sm:$0xff] %v3609_v1  ;;  %v3655_v44 = vld [vmem:[%s3603_s29 + $0x18] sm:$0xff] }
  0x11   : > { %310 = vst [vmem:[#allocation1 + $0x20] ss:$2 sm:$0xff] %v3612_v2 }
  0x12   : > { %312 = vst [vmem:[#allocation1 + $0x30] ss:$2 sm:$0xff] %v3655_v44 }
  0x16   : > { %v313_v4 = vld.sshfl [vmem:[#allocation1] sm:$0xff pattern:$0x75316420]  ;;  %v314_v5 = vld.sshfl [vmem:[#allocation1 + $0x8] sm:$0xff pattern:$0x75316420] }
  0x17   : > { %321 = vst [vmem:[#allocation1] ss:$2 sm:$0xff] %v3618_v3  ;;  %v315_v7 = vld.sshfl [vmem:[#allocation1 + $0x10] sm:$0xff pattern:$0x75316420] }
  0x18   : > { %342 = vst [vmem:[#allocation2 + $0xe8] sm:$0xf] %v313_v4  ;;  %v316_v8 = vld.sshfl [vmem:[#allocation1 + $0x18] sm:$0xff pattern:$0x75316420] }
  0x19   : > { %343 = vst [vmem:[#allocation2 + $0xf0] sm:$0xf] %v314_v5  ;;  %v3624_v9 = vld.sshfl [vmem:[#allocation1 + $0x20] sm:$0xff pattern:$0x75316420] }
  0x1a   : > { %322 = vst [vmem:[#allocation1 + $0x10] ss:$2 sm:$0xff] %v3621_v6  ;;  %v3630_v11 = vld.sshfl [vmem:[#allocation1 + $0x28] sm:$0xff pattern:$0x75316420] }
  0x1b   : > { %344 = vst [vmem:[#allocation2 + $0x68] sm:$0xf] %v315_v7 }
  0x1c   : > { %345 = vst [vmem:[#allocation2 + $0xf8] sm:$0xf] %v316_v8 }
  0x1d   : > { %323 = vst [vmem:[#allocation1 + $0x20] ss:$2 sm:$0xff] %v3627_v10 }
  0x1e   : > { %v324_v12 = vld.sshfl [vmem:[#allocation1] sm:$0xff pattern:$0x75316420]  ;;  %v325_v13 = vld.sshfl [vmem:[#allocation1 + $0x8] sm:$0xff pattern:$0x75316420] }
  0x1f   : > { %356 = vst [vmem:[#allocation1 + $0x1] ss:$2 sm:$0xff] %v3606_v0 }
  0x20   : > { %350 = vst [vmem:[#allocation2 + $0x160] sm:$0xf] %v324_v12 }
  0x21   : > { %351 = vst [vmem:[#allocation2 + $0x110] sm:$0xf] %v325_v13  ;;  %v326_v14 = vld.sshfl [vmem:[#allocation1 + $0x10] sm:$0xff pattern:$0x75316420] }
  0x22   : > { %v327_v15 = vld.sshfl [vmem:[#allocation1 + $0x18] sm:$0xff pattern:$0x75316420]  ;;  %352 = vst [vmem:[#allocation2 + $0x118] sm:$0xf] %v326_v14 }
  0x23   : > { %358 = vst [vmem:[#allocation1 + $0x11] ss:$2 sm:$0xff] %v3609_v1 }
  0x24   : > { %353 = vst [vmem:[#allocation2 + $0x50] sm:$0xf] %v327_v15  ;;  %v3635_v16 = vld.sshfl [vmem:[#allocation1 + $0x20] sm:$0xff pattern:$0x75316420] }
  0x25   : > { %360 = vst [vmem:[#allocation1 + $0x21] ss:$2 sm:$0xff] %v3612_v2 }
  0x26   : > { %v363_v17 = vld.sshfl [vmem:[#allocation1] sm:$0xff pattern:$0x75316420]  ;;  %v364_v18 = vld.sshfl [vmem:[#allocation1 + $0x8] sm:$0xff pattern:$0x75316420] }
  0x27   : > { %371 = vst [vmem:[#allocation1 + $0x1] ss:$2 sm:$0xff] %v3618_v3 }
  0x28   : > { %394 = vst [vmem:[#allocation2 + $0xb0] sm:$0xf0] %v363_v17 }
  0x29   : > { %395 = vst [vmem:[#allocation2 + $0xe8] sm:$0xf0] %v364_v18  ;;  %v3685_v18 = vld [vmem:[%s3603_s29 + $0x38] sm:$0xff] }
  0x2a   : > { %v365_v19 = vld.sshfl [vmem:[#allocation1 + $0x10] sm:$0xff pattern:$0x75316420]  ;;  %v366_v20 = vld.sshfl [vmem:[#allocation1 + $0x18] sm:$0xff pattern:$0x75316420] }
  0x2b   : > { %372 = vst [vmem:[#allocation1 + $0x11] ss:$2 sm:$0xff] %v3621_v6 }
  0x2c   : > { %396 = vst [vmem:[#allocation2 + $0xf0] sm:$0xf0] %v365_v19  ;;  %v3649_v39 = vld.sshfl [vmem:[#allocation1 + $0x20] sm:$0xff pattern:$0x75316420] }
  0x2d   : > { %397 = vst [vmem:[#allocation2 + $0x68] sm:$0xf0] %v366_v20  ;;  %v3652_v42 = vld.sshfl [vmem:[#allocation1 + $0x28] sm:$0xff pattern:$0x75316420] }
  0x2e   : > { %v374_v21 = vld.sshfl [vmem:[#allocation1] sm:$0xff pattern:$0x75316420]  ;;  %v375_v22 = vld.sshfl [vmem:[#allocation1 + $0x8] sm:$0xff pattern:$0x75316420] }
  0x2f   : > { %409 = vst [vmem:[#allocation1] ss:$2 sm:$0xff] %v3606_v0 }
  0x30   : > { %402 = vst [vmem:[#allocation2 + $0xb8] sm:$0xf0] %v374_v21 }
  0x31   : > { %403 = vst [vmem:[#allocation2 + $0x160] sm:$0xf0] %v375_v22 }
  0x32   : > { %v376_v23 = vld.sshfl [vmem:[#allocation1 + $0x10] sm:$0xff pattern:$0x75316420]  ;;  %v377_v24 = vld.sshfl [vmem:[#allocation1 + $0x18] sm:$0xff pattern:$0x75316420] }
  0x33   : > { %411 = vst [vmem:[#allocation1 + $0x10] ss:$2 sm:$0xff] %v3609_v1 }
  0x34   : > { %404 = vst [vmem:[#allocation2 + $0x110] sm:$0xf0] %v376_v23  ;;  %v3547_v23 = vmov 0.0  }
  0x35   : > { %405 = vst [vmem:[#allocation2 + $0x118] sm:$0xf0] %v377_v24 }
  0x36   : > { %v416_v25 = vld.sshfl [vmem:[#allocation1] sm:$0xff pattern:$0x75316420]  ;;  %v417_v26 = vld.sshfl [vmem:[#allocation1 + $0x8] sm:$0xff pattern:$0x75316420] }
  0x37   : > { %424 = vst [vmem:[#allocation1] ss:$2 sm:$0xff] %v3618_v3 }
  0x38   : > { %450 = vst [vmem:[#allocation2 + $0x1a0] sm:$0xf] %v416_v25 }
  0x39   : > { %451 = vst [vmem:[#allocation2 + $0x170] sm:$0xf] %v417_v26 }
  0x3a   : > { %v418_v27 = vld.sshfl [vmem:[#allocation1 + $0x10] sm:$0xff pattern:$0x75316420]  ;;  %v419_v28 = vld.sshfl [vmem:[#allocation1 + $0x18] sm:$0xff pattern:$0x75316420] }
  0x3b   : > { %425 = vst [vmem:[#allocation1 + $0x10] ss:$2 sm:$0xff] %v3621_v6 }
  0x3c   : > { %452 = vst [vmem:[#allocation2 + $0x1d0] sm:$0xf] %v418_v27 }
  0x3d   : > { %453 = vst [vmem:[#allocation2 + $0xd0] sm:$0xf] %v419_v28 }
  0x3e   : > { %v428_v29 = vld.sshfl [vmem:[#allocation1] sm:$0xff pattern:$0x75316420]  ;;  %v429_v30 = vld.sshfl [vmem:[#allocation1 + $0x8] sm:$0xff pattern:$0x75316420] }
  0x3f   : > { %466 = vst [vmem:[#allocation1 + $0x1] ss:$2 sm:$0xff] %v3606_v0 }
  0x40   : > { %458 = vst [vmem:[#allocation2 + $0xc8] sm:$0xf] %v428_v29 }
  0x41   : > { %459 = vst [vmem:[#allocation2 + $0x8] sm:$0xf] %v429_v30 }
  0x42   : > { %v430_v31 = vld.sshfl [vmem:[#allocation1 + $0x10] sm:$0xff pattern:$0x75316420]  ;;  %v431_v32 = vld.sshfl [vmem:[#allocation1 + $0x18] sm:$0xff pattern:$0x75316420] }
  0x43   : > { %468 = vst [vmem:[#allocation1 + $0x11] ss:$2 sm:$0xff] %v3609_v1 }
  0x44   : > { %460 = vst [vmem:[#allocation2 + $0x120] sm:$0xf] %v430_v31 }
  0x45   : > { %461 = vst [vmem:[#allocation2 + $0x1b8] sm:$0xf] %v431_v32  ;;  %v3701_v32 = vld [vmem:[%s4741_s1] sm:$0xff] }
  0x46   : > { %v473_v33 = vld.sshfl [vmem:[#allocation1] sm:$0xff pattern:$0x75316420]  ;;  %v474_v34 = vld.sshfl [vmem:[#allocation1 + $0x8] sm:$0xff pattern:$0x75316420] }
  0x47   : > { %481 = vst [vmem:[#allocation1 + $0x1] ss:$2 sm:$0xff] %v3618_v3 }
  0x48   : > { %509 = vst [vmem:[#allocation2 + $0x80] sm:$0xf0] %v473_v33 }
  0x49   : > { %510 = vst [vmem:[#allocation2 + $0x1a0] sm:$0xf0] %v474_v34 }
  0x4a   : > { %v475_v35 = vld.sshfl [vmem:[#allocation1 + $0x10] sm:$0xff pattern:$0x75316420]  ;;  %v476_v36 = vld.sshfl [vmem:[#allocation1 + $0x18] sm:$0xff pattern:$0x75316420] }
  0x4b   : > { %482 = vst [vmem:[#allocation1 + $0x11] ss:$2 sm:$0xff] %v3621_v6 }
  0x4c   : > { %511 = vst [vmem:[#allocation2 + $0x170] sm:$0xf0] %v475_v35 }
  0x4d   : > { %512 = vst [vmem:[#allocation2 + $0x1d0] sm:$0xf0] %v476_v36 }
  0x4e   : > { %v485_v37 = vld.sshfl [vmem:[#allocation1] sm:$0xff pattern:$0x75316420]  ;;  %v486_v38 = vld.sshfl [vmem:[#allocation1 + $0x8] sm:$0xff pattern:$0x75316420] }
  0x4f   : > { %525 = vst [vmem:[#allocation1] ss:$2 sm:$0xff] %v3606_v0 }
  0x50   : > { %517 = vst [vmem:[#allocation2] sm:$0xf0] %v485_v37 }
  0x51   : > { %518 = vst [vmem:[#allocation2 + $0xc8] sm:$0xf0] %v486_v38  ;;  %v724_v38 = vld [vmem:[%s4742_s2 + $0x10] sm:$0xff] }
  0x52   : > { %v487_v40 = vld.sshfl [vmem:[#allocation1 + $0x10] sm:$0xff pattern:$0x75316420]  ;;  %v488_v41 = vld.sshfl [vmem:[#allocation1 + $0x18] sm:$0xff pattern:$0x75316420] }
  0x53   : > { %527 = vst [vmem:[#allocation1 + $0x10] ss:$2 sm:$0xff] %v3609_v1  ;;  %v731_v28 = vld [vmem:[#allocation2 + $0x170] sm:$0xff] }
  0x54   : > { %519 = vst [vmem:[#allocation2 + $0x8] sm:$0xf0] %v487_v40  ;;  %v3723_v40 = vld [vmem:[%s4741_s1 + $0x8] sm:$0xff] }
  0x55   : > { %520 = vst [vmem:[#allocation2 + $0x120] sm:$0xf0] %v488_v41  ;;  %v3548_v41 = vmov 0  }
  0x56   : > { %v532_v43 = vld.sshfl [vmem:[#allocation1 + $0x8] sm:$0xff pattern:$0x75316420]  ;;  %373 = vst [vmem:[#allocation1 + $0x21] ss:$2 sm:$0xff] %v3627_v10  ;;  %3537 = vset.pattern.permute.xlu1 %v3548_v41  ;;  %3536 = vset.pattern.permute.xlu0 %v3548_v41 }
  0x57   : > { %539 = vst [vmem:[#allocation1] ss:$2 sm:$0xff] %v3618_v3  ;;  %753 = vperm.xlu0 %3536, %v724_v38   ;;  %3538 = vset.pattern.permute.xlu2 %v3548_v41 }
  0x58   : > { %566 = vst [vmem:[#allocation2 + $0x1e0] sm:$0xf] %v532_v43 }
  0x59   : > { %346 = vst [vmem:[#allocation2 + $0x128] sm:$0xf] %v3624_v9  ;;  %v319_v9 = vld.sshfl [vmem:[#allocation1 + $0x30] sm:$0xff pattern:$0x75316420] }
  0x5a   : > { %v533_v45 = vld.sshfl [vmem:[#allocation1 + $0x10] sm:$0xff pattern:$0x75316420]  ;;  %v534_v46 = vld.sshfl [vmem:[#allocation1 + $0x18] sm:$0xff pattern:$0x75316420] }
  0x5b   : > { %540 = vst [vmem:[#allocation1 + $0x10] ss:$2 sm:$0xff] %v3621_v6  ;;  %v1162_v38 = vld [vmem:[#allocation2 + $0x8] sm:$0xff] }
  0x5c   : > { %567 = vst [vmem:[#allocation2 + $0x178] sm:$0xf] %v533_v45 }
  0x5d   : > { %568 = vst [vmem:[#allocation2 + $0x100] sm:$0xf] %v534_v46  ;;  %v378_v57 = vld.sshfl [vmem:[#allocation1 + $0x20] sm:$0xff pattern:$0x75316420]  ;;  %v3736_v46 = vld [vmem:[%s4741_s1 + $0x10] sm:$0xff] }
  0x5e   : > { %v543_v47 = vld.sshfl [vmem:[#allocation1] sm:$0xff pattern:$0x75316420]  ;;  %v544_v48 = vld.sshfl [vmem:[#allocation1 + $0x8] sm:$0xff pattern:$0x75316420] }
  0x5f   : > { %582 = vst [vmem:[#allocation1 + $0x1] ss:$2 sm:$0xff] %v3609_v1  ;;  %v379_v60 = vld.sshfl [vmem:[#allocation1 + $0x28] sm:$0xff pattern:$0x75316420] }
  0x60   : > { %573 = vst [vmem:[#allocation2 + $0x40] sm:$0xf] %v543_v47 }
  0x61   : > { %574 = vst [vmem:[#allocation2 + $0x60] sm:$0xf] %v544_v48 }
  0x62   : > { %v545_v49 = vld.sshfl [vmem:[#allocation1 + $0x10] sm:$0xff pattern:$0x75316420]  ;;  %v546_v50 = vld.sshfl [vmem:[#allocation1 + $0x18] sm:$0xff pattern:$0x75316420] }
  0x63   : > { %584 = vst [vmem:[#allocation1 + $0x11] ss:$2 sm:$0xff] %v3612_v2 }
  0x64   : > { %575 = vst [vmem:[#allocation2 + $0x1c0] sm:$0xf] %v545_v49 }
  0x65   : > { %576 = vst [vmem:[#allocation2 + $0xa8] sm:$0xf] %v546_v50 }
  0x66   : > { %v589_v51 = vld.sshfl [vmem:[#allocation1] sm:$0xff pattern:$0x75316420]  ;;  %v590_v52 = vld.sshfl [vmem:[#allocation1 + $0x8] sm:$0xff pattern:$0x75316420] }
  0x67   : > { %597 = vst [vmem:[#allocation1 + $0x1] ss:$2 sm:$0xff] %v3621_v6 }
  0x68   : > { %620 = vst [vmem:[#allocation2 + $0x1e0] sm:$0xf0] %v589_v51 }
  0x69   : > { %621 = vst [vmem:[#allocation2 + $0x178] sm:$0xf0] %v590_v52 }
  0x6a   : > { %v591_v53 = vld.sshfl [vmem:[#allocation1 + $0x10] sm:$0xff pattern:$0x75316420]  ;;  %v592_v54 = vld.sshfl [vmem:[#allocation1 + $0x18] sm:$0xff pattern:$0x75316420] }
  0x6b   : > { %598 = vst [vmem:[#allocation1 + $0x11] ss:$2 sm:$0xff] %v3627_v10 }
  0x6c   : > { %622 = vst [vmem:[#allocation2 + $0x100] sm:$0xf0] %v591_v53  ;;  %v732_v53 = vld [vmem:[#allocation2 + $0x1d0] sm:$0xff] }
  0x6d   : > { %623 = vst [vmem:[#allocation2 + $0x188] sm:$0xf0] %v592_v54  ;;  %v728_v54 = vld [vmem:[#allocation2 + $0xe8] sm:$0xff] }
  0x6e   : > { %v600_v55 = vld.sshfl [vmem:[#allocation1] sm:$0xff pattern:$0x75316420]  ;;  %v601_v56 = vld.sshfl [vmem:[#allocation1 + $0x8] sm:$0xff pattern:$0x75316420] }
  0x6f   : > { %634 = vst [vmem:[#allocation1] ss:$2 sm:$0xff] %v3609_v1  ;;  %v733_v25 = vld [vmem:[#allocation2 + $0x1e0] sm:$0xff] }
  0x70   : > { %628 = vst [vmem:[#allocation2 + $0x60] sm:$0xf0] %v600_v55  ;;  %v734_v26 = vld [vmem:[#allocation2 + $0x178] sm:$0xff] }
  0x71   : > { %629 = vst [vmem:[#allocation2 + $0x1c0] sm:$0xf0] %v601_v56 }
  0x72   : > { %v602_v58 = vld.sshfl [vmem:[#allocation1 + $0x10] sm:$0xff pattern:$0x75316420]  ;;  %v603_v59 = vld.sshfl [vmem:[#allocation1 + $0x18] sm:$0xff pattern:$0x75316420] }
  0x73   : > { %636 = vst [vmem:[#allocation1 + $0x10] ss:$2 sm:$0xff] %v3612_v2  ;;  %v735_v27 = vld [vmem:[#allocation2 + $0x100] sm:$0xff] }
  0x74   : > { %630 = vst [vmem:[#allocation2 + $0xa8] sm:$0xf0] %v602_v58 }
  0x75   : > { %631 = vst [vmem:[#allocation2 + $0x90] sm:$0xf0] %v603_v59 }
  0x76   : > { %v641_v61 = vld.sshfl [vmem:[#allocation1 + $0x8] sm:$0xff pattern:$0x75316420]  ;;  %413 = vst [vmem:[#allocation1 + $0x20] ss:$2 sm:$0xff] %v3612_v2 }
  0x77   : > { %670 = vst [vmem:[#allocation2 + $0x1b0] sm:$0xf] %v641_v61 }
  0x78   : > { %648 = vst [vmem:[#allocation1] ss:$2 sm:$0xff] %v3621_v6 }
  0x79   : > { %347 = vst [vmem:[#allocation2 + $0xe0] sm:$0xf] %v3630_v11  ;;  %v320_v11 = vld.sshfl [vmem:[#allocation1 + $0x38] sm:$0xff pattern:$0x75316420] }
  0x7a   : > { %v642_v62 = vld.sshfl [vmem:[#allocation1 + $0x10] sm:$0xff pattern:$0x75316420]  ;;  %v643_v63 = vld.sshfl [vmem:[#allocation1 + $0x18] sm:$0xff pattern:$0x75316420] }
  0x7b   : > { %671 = vst [vmem:[#allocation2 + $0x148] sm:$0xf] %v642_v62  ;;  %v952_v62 = vld [vmem:[#allocation2 + $0xf0] sm:$0xff] }
  0x7c   : > { %672 = vst [vmem:[#allocation2 + $0x150] sm:$0xf] %v643_v63 }
  0x7d   : > { %649 = vst [vmem:[#allocation1 + $0x10] ss:$2 sm:$0xff] %v3627_v10  ;;  %v420_v0 = vld.sshfl [vmem:[#allocation1 + $0x20] sm:$0xff pattern:$0x75316420] }
  0x7e   : > { %v737_v1 = vld [vmem:[#allocation2 + $0x1b0] sm:$0xf]  ;;  %v421_v4 = vld.sshfl [vmem:[#allocation1 + $0x28] sm:$0xff pattern:$0x75316420] }
  0x7f   : > { %3382 = vmatpush.msk.msra.mxu0 %vm766_vm0, %v737_v1  ;;  %426 = vst [vmem:[#allocation1 + $0x20] ss:$2 sm:$0xff] %v3627_v10 }
  0x80   : > { %354 = vst [vmem:[#allocation2 + $0x190] sm:$0xf] %v3635_v16 }
  0x81   : > { %398 = vst [vmem:[#allocation2 + $0xf8] sm:$0xf0] %v3649_v39  ;;  %792 = vmatpush.msra.mxu0 %v733_v25  ;;  %v722_v39 = vld [vmem:[%s4742_s2] sm:$0xff] }
  0x82   : > { %v738_v5 = vld [vmem:[#allocation2 + $0x148] sm:$0xf]  ;;  %399 = vst [vmem:[#allocation2 + $0x128] sm:$0xf0] %v3652_v42  ;;  %743 = vperm.xlu1 %3537, %v722_v39  }
  0x83   : > { %3386 = vmatpush.msk.msra.mxu1 %vm766_vm0, %v738_v5  ;;  %v739_v6 = vld [vmem:[#allocation2 + $0x150] sm:$0xf]  ;;  %406 = vst [vmem:[#allocation2 + $0x50] sm:$0xf0] %v378_v57 }
  0x84   : > { %3390 = vmatpush.msk.msra.mxu2 %vm766_vm0, %v739_v6  ;;  %407 = vst [vmem:[#allocation2 + $0x190] sm:$0xf0] %v379_v60  ;;  %v651_v57 = vld.sshfl [vmem:[#allocation1] sm:$0xff pattern:$0x75316420]  ;;  %v723_v60 = vld [vmem:[%s4742_s2 + $0x8] sm:$0xff] }
  0x85   : > { %454 = vst [vmem:[#allocation2 + $0x138] sm:$0xf] %v420_v0  ;;  %818 = vmatpush.msra.mxu1 %v734_v26  ;;  %748 = vperm.xlu0 %3536, %v723_v60   ;;  %v652_v5 = vld.sshfl [vmem:[#allocation1 + $0x8] sm:$0xff pattern:$0x75316420] }
  0x86   : > { %v432_v7 = vld.sshfl [vmem:[#allocation1 + $0x20] sm:$0xff pattern:$0x75316420]  ;;  %v433_v8 = vld.sshfl [vmem:[#allocation1 + $0x28] sm:$0xff pattern:$0x75316420]  ;;  %844 = vmatpush.msra.mxu2 %v735_v27 }
  0x87   : > { %470 = vst [vmem:[#allocation1 + $0x21] ss:$2 sm:$0xff] %v3612_v2  ;;  %v653_v6 = vld.sshfl [vmem:[#allocation1 + $0x10] sm:$0xff pattern:$0x75316420]  ;;  %v1163_v26 = vld [vmem:[#allocation2 + $0x120] sm:$0xff] }
  0x88   : > { %455 = vst [vmem:[#allocation2 + $0x1e8] sm:$0xf] %v421_v4  ;;  %845 = vmatpush.msra.mxu2 %v731_v28  ;;  %v953_v28 = vld [vmem:[#allocation2 + $0x68] sm:$0xff] }
  0x89   : > { %462 = vst [vmem:[#allocation2 + $0xd8] sm:$0xf] %v432_v7  ;;  %v654_v7 = vld.sshfl [vmem:[#allocation1 + $0x18] sm:$0xff pattern:$0x75316420] }
  0x8a   : > { %463 = vst [vmem:[#allocation2 + $0xa0] sm:$0xf] %v433_v8 }
  0x8b   : > { %362 = vst [vmem:[#allocation1 + $0x31] ss:$2 sm:$0xff] %v3655_v44 }
  0x8c   : > { %348 = vst [vmem:[#allocation2 + $0x30] sm:$0xf] %v319_v9 }
  0x8d   : > { %349 = vst [vmem:[#allocation2 + $0xb8] sm:$0xf] %v320_v11 }
  0x8e   : > { %v477_v12 = vld.sshfl [vmem:[#allocation1 + $0x20] sm:$0xff pattern:$0x75316420]  ;;  %v478_v13 = vld.sshfl [vmem:[#allocation1 + $0x28] sm:$0xff pattern:$0x75316420] }
  0x8f   : > { %483 = vst [vmem:[#allocation1 + $0x21] ss:$2 sm:$0xff] %v3627_v10 }
  0x90   : > { %513 = vst [vmem:[#allocation2 + $0xd0] sm:$0xf0] %v477_v12 }
  0x91   : > { %514 = vst [vmem:[#allocation2 + $0x138] sm:$0xf0] %v478_v13 }
  0x92   : > { %v369_v14 = vld.sshfl [vmem:[#allocation1 + $0x30] sm:$0xff pattern:$0x75316420]  ;;  %v370_v15 = vld.sshfl [vmem:[#allocation1 + $0x38] sm:$0xff pattern:$0x75316420] }
  0x93   : > { %415 = vst [vmem:[#allocation1 + $0x30] ss:$2 sm:$0xff] %v3655_v44 }
  0x94   : > { %400 = vst [vmem:[#allocation2 + $0xe0] sm:$0xf0] %v369_v14  ;;  %v1164_v14 = vld [vmem:[#allocation2 + $0x60] sm:$0xff]  ;;  %v1158_v39 = vld [vmem:[#allocation2 + $0xb8] sm:$0xff] }
  0x95   : > { %401 = vst [vmem:[#allocation2 + $0x30] sm:$0xf0] %v370_v15  ;;  %v2583_v15 = vld [vmem:[%s4746_s6] sm:$0x7] }
  0x96   : > { %v489_v16 = vld.sshfl [vmem:[#allocation1 + $0x20] sm:$0xff pattern:$0x75316420]  ;;  %v490_v17 = vld.sshfl [vmem:[#allocation1 + $0x28] sm:$0xff pattern:$0x75316420]  ;;  %2622 = vperm.xlu0 %3536, %v2583_v15  }
  0x97   : > { %529 = vst [vmem:[#allocation1 + $0x20] ss:$2 sm:$0xff] %v3612_v2 }
  0x98   : > { %521 = vst [vmem:[#allocation2 + $0x1b8] sm:$0xf0] %v489_v16  ;;  %v955_v16 = vld [vmem:[#allocation2 + $0x128] sm:$0xff]  ;;  %v957_v25 = vld [vmem:[#allocation2 + $0x138] sm:$0xff] }
  0x99   : > { %522 = vst [vmem:[#allocation2 + $0xd8] sm:$0xf0] %v490_v17 }
  0x9a   : > { %v422_v19 = vld.sshfl [vmem:[#allocation1 + $0x30] sm:$0xff pattern:$0x75316420]  ;;  %v423_v20 = vld.sshfl [vmem:[#allocation1 + $0x38] sm:$0xff pattern:$0x75316420] }
  0x9b   : > { %427 = vst [vmem:[#allocation1 + $0x30] ss:$2 sm:$0xff] %v3685_v18 }
  0x9c   : > { %456 = vst [vmem:[#allocation2 + $0x1c8] sm:$0xf] %v422_v19  ;;  %v1156_v19 = vld [vmem:[#allocation2 + $0xe0] sm:$0xff]  ;;  %v1157_v41 = vld [vmem:[#allocation2 + $0x30] sm:$0xff] }
  0x9d   : > { %457 = vst [vmem:[#allocation2] sm:$0xf] %v423_v20 }
  0x9e   : > { %v535_v21 = vld.sshfl [vmem:[#allocation1 + $0x20] sm:$0xff pattern:$0x75316420]  ;;  %v536_v22 = vld.sshfl [vmem:[#allocation1 + $0x28] sm:$0xff pattern:$0x75316420] }
  0x9f   : > { %541 = vst [vmem:[#allocation1 + $0x20] ss:$2 sm:$0xff] %v3627_v10  ;;  %v730_v10 = vld [vmem:[#allocation2 + $0x1a0] sm:$0xff] }
  0xa0   : > { %569 = vst [vmem:[#allocation2 + $0x188] sm:$0xf] %v535_v21  ;;  %819 = vmatpush.msra.mxu1 %v730_v10  ;;  %v1602_v10 = vld [vmem:[%s4744_s4 + $0x10] sm:$0xff] }
  0xa1   : > { %570 = vst [vmem:[#allocation2 + $0x1d8] sm:$0xf] %v536_v22  ;;  %1675 = vperm.xlu1 %3537, %v1602_v10  }
  0xa2   : > { %284 = vst [vmem:[#allocation2 + $0x80] sm:$0xf] %v3547_v23  ;;  %v434_v42 = vld.sshfl [vmem:[#allocation1 + $0x30] sm:$0xff pattern:$0x75316420] }
  0xa3   : > { %279 = vst [vmem:[#allocation2 + $0x88] sm:$0xf] %v3547_v23 }
  0xa4   : > { %280 = vst [vmem:[#allocation2 + $0x198] sm:$0xf] %v3547_v23  ;;  %v1160_v17 = vld [vmem:[#allocation2] sm:$0xff] }
  0xa5   : > { %281 = vst [vmem:[#allocation2 + $0xb0] sm:$0xf] %v3547_v23 }
  0xa6   : > { %v547_v2 = vld.sshfl [vmem:[#allocation1 + $0x20] sm:$0xff pattern:$0x75316420]  ;;  %v548_v24 = vld.sshfl [vmem:[#allocation1 + $0x28] sm:$0xff pattern:$0x75316420] }
  0xa7   : > { %586 = vst [vmem:[#allocation1 + $0x21] ss:$2 sm:$0xff] %v3655_v44  ;;  %v736_v50 = vld [vmem:[#allocation2 + $0x188] sm:$0xff] }
  0xa8   : > { %577 = vst [vmem:[#allocation2 + $0x90] sm:$0xf] %v547_v2 }
  0xa9   : > { %578 = vst [vmem:[#allocation2 + $0x58] sm:$0xf] %v548_v24  ;;  %v729_v29 = vld [vmem:[#allocation2 + $0x80] sm:$0xff] }
  0xaa   : > { %793 = vmatpush.msra.mxu0 %v729_v29  ;;  %282 = vst [vmem:[#allocation2 + $0x88] sm:$0xf0] %v3547_v23  ;;  %v1159_v29 = vld [vmem:[#allocation2 + $0x160] sm:$0xff] }
  0xab   : > { %283 = vst [vmem:[#allocation2 + $0x198] sm:$0xf0] %v3547_v23 }
  0xac   : > { %285 = vst [vmem:[#allocation2 + $0x20] sm:$0xf] %v3547_v23  ;;  %v727_v33 = vld [vmem:[#allocation2 + $0xb0] sm:$0xff] }
  0xad   : > { %286 = vst [vmem:[#allocation2 + $0x140] sm:$0xf0] %v3547_v23  ;;  %846 = vmatpush.msra.mxu2 %v727_v33 }
  0xae   : > { %v593_v30 = vld.sshfl [vmem:[#allocation1 + $0x20] sm:$0xff pattern:$0x75316420]  ;;  %v594_v31 = vld.sshfl [vmem:[#allocation1 + $0x28] sm:$0xff pattern:$0x75316420]  ;;  %3391 = vmatmul.msk.f32.vlgmr.msra.gmra.mxu2 %vm756_vm1, %v3701_v32 }
  0xaf   : > { %599 = vst [vmem:[#allocation1 + $0x21] ss:$2 sm:$0xff] %v3685_v18  ;;  %v1167_v22 = vld [vmem:[#allocation2 + $0x90] sm:$0xff] }
  0xb0   : > { %624 = vst [vmem:[#allocation2 + $0x1d8] sm:$0xf0] %v593_v30  ;;  %v954_v30 = vld [vmem:[#allocation2 + $0xf8] sm:$0xff] }
  0xb1   : > { %625 = vst [vmem:[#allocation2 + $0xc0] sm:$0xf0] %v594_v31  ;;  %v725_v34 = vld [vmem:[#allocation2 + $0x88] sm:$0xff] }
  0xb2   : > { %287 = vst [vmem:[#allocation2 + $0x20] sm:$0xf0] %v3547_v23  ;;  %794 = vmatpush.msra.mxu0 %v725_v34  ;;  %v726_v35 = vld [vmem:[#allocation2 + $0x198] sm:$0xff]  ;;  %v1165_v34 = vld [vmem:[#allocation2 + $0x1c0] sm:$0xff] }
  0xb3   : > { %288 = vst [vmem:[#allocation2 + $0x108] sm:$0xf] %v3547_v23  ;;  %820 = vmatpush.msra.mxu1 %v726_v35  ;;  %3383 = vmatmul.msk.f32.vlgmr.msra.gmra.mxu0 %vm756_vm1, %v3701_v32  ;;  %v1166_v35 = vld [vmem:[#allocation2 + $0xa8] sm:$0xff] }
  0xb4   : > { %289 = vst [vmem:[#allocation2 + $0x18] sm:$0xf] %v3547_v23  ;;  %3387 = vmatmul.msk.f32.vlgmr.msra.gmra.mxu1 %vm756_vm1, %v3701_v32 }
  0xb5   : > { %290 = vst [vmem:[#allocation2 + $0x158] sm:$0xf] %v3547_v23 }
  0xb6   : > { %v604_v36 = vld.sshfl [vmem:[#allocation1 + $0x20] sm:$0xff pattern:$0x75316420]  ;;  %v605_v37 = vld.sshfl [vmem:[#allocation1 + $0x28] sm:$0xff pattern:$0x75316420]  ;;  %3392 = vmatmul.msk.f32.gmra.mxu2 %vm756_vm1, %v3723_v40 }
  0xb7   : > { %638 = vst [vmem:[#allocation1 + $0x20] ss:$2 sm:$0xff] %v3655_v44  ;;  %v960_v52 = vld [vmem:[#allocation2 + $0x1d8] sm:$0xff] }
  0xb8   : > { %632 = vst [vmem:[#allocation2 + $0x58] sm:$0xf0] %v604_v36 }
  0xb9   : > { %633 = vst [vmem:[#allocation2 + $0x78] sm:$0xf0] %v605_v37  ;;  %v1161_v37 = vld [vmem:[#allocation2 + $0xc8] sm:$0xff] }
  0xba   : > { %472 = vst [vmem:[#allocation1 + $0x31] ss:$2 sm:$0xff] %v3655_v44 }
  0xbb   : > { %3384 = vmatmul.msk.f32.gmra.mxu0 %vm756_vm1, %v3723_v40  ;;  %464 = vst [vmem:[#allocation2 + $0x1f8] sm:$0xf] %v434_v42 }
  0xbc   : > { %3388 = vmatmul.msk.f32.gmra.mxu1 %vm756_vm1, %v3723_v40  ;;  %677 = vst [vmem:[#allocation2 + $0x98] sm:$0xf] %v651_v57  ;;  %v1361_v57 = vld [vmem:[#allocation2 + $0x118] sm:$0xff] }
  0xbd   : > { %678 = vst [vmem:[#allocation2 + $0x1a8] sm:$0xf] %v652_v5 }
  0xbe   : > { %v644_v43 = vld.sshfl [vmem:[#allocation1 + $0x20] sm:$0xff pattern:$0x75316420]  ;;  %v645_v45 = vld.sshfl [vmem:[#allocation1 + $0x28] sm:$0xff pattern:$0x75316420]  ;;  %3393 = vmatmul.msk.f32.gmra.mxu2 %vm756_vm1, %v3736_v46 }
  0xbf   : > { %673 = vst [vmem:[#allocation2 + $0x38] sm:$0xf] %v644_v43  ;;  %v1368_v43 = vld [vmem:[#allocation2 + $0x58] sm:$0xff] }
  0xc0   : > { %674 = vst [vmem:[#allocation2 + $0x168] sm:$0xf] %v645_v45  ;;  %v1373_v45 = vld [vmem:[#allocation2 + $0x108] sm:$0xf] }
  0xc1   : > { %650 = vst [vmem:[#allocation1 + $0x20] ss:$2 sm:$0xff] %v3685_v18  ;;  %v479_v47 = vld.sshfl [vmem:[#allocation1 + $0x30] sm:$0xff pattern:$0x75316420] }
  0xc2   : > { %v480_v48 = vld.sshfl [vmem:[#allocation1 + $0x38] sm:$0xff pattern:$0x75316420]  ;;  %515 = vst [vmem:[#allocation2 + $0x1e8] sm:$0xf0] %v479_v47 }
  0xc3   : > { %484 = vst [vmem:[#allocation1 + $0x31] ss:$2 sm:$0xff] %v3685_v18  ;;  %3385 = vmatmul.msk.f32.gmra.mxu0 %vm756_vm1, %v3736_v46  ;;  %v967_v61 = vld [vmem:[#allocation2 + $0x98] sm:$0xf] }
  0xc4   : > { %3389 = vmatmul.msk.f32.gmra.mxu1 %vm756_vm1, %v3736_v46  ;;  %516 = vst [vmem:[#allocation2 + $0x1c8] sm:$0xf0] %v480_v48  ;;  %v1374_v47 = vld [vmem:[#allocation2 + $0x18] sm:$0xf] }
  0xc5   : > { %679 = vst [vmem:[#allocation2 + $0x130] sm:$0xf] %v653_v6  ;;  %v1375_v48 = vld [vmem:[#allocation2 + $0x158] sm:$0xf] }
  0xc6   : > { %v740_v49 = vld [vmem:[#allocation2 + $0x38] sm:$0xf]  ;;  %680 = vst [vmem:[#allocation2 + $0x10] sm:$0xf] %v654_v7 }
  0xc7   : > { %3394 = vmatpush.msk.msra.mxu3 %vm766_vm0, %v740_v49  ;;  %v964_v51 = vld [vmem:[#allocation2 + $0x168] sm:$0xf] }
  0xc8   : > { %3398 = vmatpush.msk.msrb.mxu0 %vm766_vm0, %v964_v51  ;;  %v655_v8 = vld.sshfl [vmem:[#allocation1 + $0x20] sm:$0xff pattern:$0x75316420]  ;;  %v656_v36 = vld.sshfl [vmem:[#allocation1 + $0x28] sm:$0xff pattern:$0x75316420] }
  0xc9   : > { %870 = vmatpush.msra.mxu3 %v736_v50  ;;  %681 = vst [vmem:[#allocation2 + $0x28] sm:$0xf] %v655_v8  ;;  %v958_v27 = vld [vmem:[#allocation2 + $0x1e8] sm:$0xff]  ;;  %v1371_v51 = vld [vmem:[#allocation2 + $0x20] sm:$0xff] }
  0xca   : > { %993 = vmatpush.msrb.mxu0 %v960_v52  ;;  %v491_v55 = vld.sshfl [vmem:[#allocation1 + $0x30] sm:$0xff pattern:$0x75316420]  ;;  %v492_v56 = vld.sshfl [vmem:[#allocation1 + $0x38] sm:$0xff pattern:$0x75316420] }
  0xcb   : > { %871 = vmatpush.msra.mxu3 %v732_v53  ;;  %531 = vst [vmem:[#allocation1 + $0x30] ss:$2 sm:$0xff] %v3655_v44  ;;  %v956_v44 = vld [vmem:[#allocation2 + $0xd0] sm:$0xff]  ;;  %v959_v13 = vld [vmem:[#allocation2 + $0x1c8] sm:$0xff]  ;;  %v1364_v52 = vld [vmem:[#allocation2 + $0x1b8] sm:$0xff] }
  0xcc   : > { %523 = vst [vmem:[#allocation2 + $0xa0] sm:$0xf0] %v491_v55  ;;  %994 = vmatpush.msrb.mxu0 %v956_v44  ;;  %v1169_v31 = vld [vmem:[#allocation2 + $0x130] sm:$0xf]  ;;  %v1365_v53 = vld [vmem:[#allocation2 + $0xd8] sm:$0xff] }
  0xcd   : > { %872 = vmatpush.msra.mxu3 %v728_v54  ;;  %524 = vst [vmem:[#allocation2 + $0x1f8] sm:$0xf0] %v492_v56  ;;  %v1170_v33 = vld [vmem:[#allocation2 + $0x10] sm:$0xf] }
  0xce   : > { %3395 = vmatmul.msk.f32.vlgmr.msra.gmra.mxu3 %vm756_vm1, %v3701_v32  ;;  %995 = vmatpush.msrb.mxu0 %v952_v62  ;;  %682 = vst [vmem:[#allocation2 + $0x70] sm:$0xf] %v656_v36  ;;  %v1360_v56 = vld [vmem:[#allocation2 + $0x110] sm:$0xff] }
  0xcf   : > { %3410 = vmatpush.msk.msrb.mxu3 %vm766_vm0, %v967_v61  ;;  %3399 = vmatmul.msk.f32.vlgmr.msrb.gmra.mxu0 %vm756_vm1, %v3701_v32 }
  0xd2   : > { %v537_v58 = vld.sshfl [vmem:[#allocation1 + $0x30] sm:$0xff pattern:$0x75316420]  ;;  %v538_v59 = vld.sshfl [vmem:[#allocation1 + $0x38] sm:$0xff pattern:$0x75316420] }
  0xd3   : > { %542 = vst [vmem:[#allocation1 + $0x30] ss:$2 sm:$0xff] %v3685_v18  ;;  %v1171_v18 = vld [vmem:[#allocation2 + $0x28] sm:$0xf]  ;;  %v1366_v54 = vld [vmem:[#allocation2 + $0xa0] sm:$0xff] }
  0xd4   : > { %571 = vst [vmem:[#allocation2 + $0xc0] sm:$0xf] %v537_v58  ;;  %v1367_v55 = vld [vmem:[#allocation2 + $0x1f8] sm:$0xff]  ;;  %v1362_v58 = vld [vmem:[#allocation2 + $0x50] sm:$0xff] }
  0xd5   : > { %572 = vst [vmem:[#allocation2 + $0x48] sm:$0xf] %v538_v59  ;;  %v1372_v42 = vld [vmem:[#allocation2 + $0x70] sm:$0xf] }
  0xd6   : > { %3396 = vmatmul.msk.f32.gmra.mxu3 %vm756_vm1, %v3723_v40  ;;  %v1363_v59 = vld [vmem:[#allocation2 + $0x190] sm:$0xff] }
  0xd7   : > { %3400 = vmatmul.msk.f32.gmra.mxu0 %vm756_vm1, %v3723_v40 }
  0xda   : > { %v549_v63 = vld.sshfl [vmem:[#allocation1 + $0x30] sm:$0xff pattern:$0x75316420]  ;;  %v550_v0 = vld.sshfl [vmem:[#allocation1 + $0x38] sm:$0xff pattern:$0x75316420] }
  0xdb   : > { %588 = vst [vmem:[#allocation1 + $0x31] ss:$2 sm:$0xff] %v3618_v3  ;;  %v961_v21 = vld [vmem:[#allocation2 + $0xc0] sm:$0xff] }
  0xdc   : > { %579 = vst [vmem:[#allocation2 + $0x78] sm:$0xf] %v549_v63 }
  0xdd   : > { %580 = vst [vmem:[#allocation2 + $0x140] sm:$0xf] %v550_v0 }
  0xde   : > { %3397 = vmatmul.msk.f32.gmra.mxu3 %vm756_vm1, %v3736_v46 }
  0xdf   : > { %3401 = vmatmul.msk.f32.gmra.mxu0 %vm756_vm1, %v3736_v46 }
  0xe2   : > { %v595_v1 = vld.sshfl [vmem:[#allocation1 + $0x30] sm:$0xff pattern:$0x75316420]  ;;  %v596_v4 = vld.sshfl [vmem:[#allocation1 + $0x38] sm:$0xff pattern:$0x75316420] }
  0xe3   : > { %640 = vst [vmem:[#allocation1 + $0x30] ss:$2 sm:$0xff] %v3618_v3  ;;  %v1168_v3 = vld [vmem:[#allocation2 + $0x1a8] sm:$0xf]  ;;  %v1369_v49 = vld [vmem:[#allocation2 + $0x78] sm:$0xff] }
  0xe4   : > { %626 = vst [vmem:[#allocation2 + $0x48] sm:$0xf0] %v595_v1  ;;  %3414 = vmatpush.msk.msra.mxu0 %vm766_vm0, %v1168_v3  ;;  %v1370_v50 = vld [vmem:[#allocation2 + $0x140] sm:$0xff] }
  0xe5   : > { %627 = vst [vmem:[#allocation2 + $0x40] sm:$0xf0] %v596_v4 }
  0xe6   : > { %1197 = vmatpush.msra.mxu0 %v1164_v14 }
  0xe8   : > { %1198 = vmatpush.msra.mxu0 %v1160_v17 }
  0xea   : > { %v646_v9 = vld.sshfl [vmem:[#allocation1 + $0x30] sm:$0xff pattern:$0x75316420]  ;;  %v647_v11 = vld.sshfl [vmem:[#allocation1 + $0x38] sm:$0xff pattern:$0x75316420]  ;;  %1199 = vmatpush.msra.mxu0 %v1156_v19 }
  0xeb   : > { %675 = vst [vmem:[#allocation2 + $0x180] sm:$0xf] %v646_v9  ;;  %v962_v24 = vld [vmem:[#allocation2 + $0x48] sm:$0xff]  ;;  %3415 = vmatmul.msk.f32.vlgmr.msra.gmra.mxu0 %vm756_vm1, %v3701_v32 }
  0xec   : > { %676 = vst [vmem:[#allocation2 + $0x1f0] sm:$0xf] %v647_v11  ;;  %v963_v12 = vld [vmem:[#allocation2 + $0x40] sm:$0xff]  ;;  %3430 = vmatpush.msk.msrb.mxu0 %vm766_vm0, %v1372_v42 }
  0xed   : > { %1071 = vmatpush.msrb.mxu3 %v963_v12 }
  0xee   : > { %1401 = vmatpush.msrb.mxu0 %v1368_v43  ;;  %v3943_v43 = vld [vmem:[%s4743_s3] sm:$0xff] }
  0xef   : > { %1072 = vmatpush.msrb.mxu3 %v959_v13 }
  0xf0   : > { %1402 = vmatpush.msrb.mxu0 %v1364_v52 }
  0xf1   : > { %1073 = vmatpush.msrb.mxu3 %v955_v16 }
  0xf2   : > { %v965_v20 = vld [vmem:[#allocation2 + $0x180] sm:$0xf]  ;;  %3411 = vmatmul.msk.f32.vlgmr.msrb.gmra.mxu3 %vm756_vm1, %v3701_v32  ;;  %1403 = vmatpush.msrb.mxu0 %v1360_v56 }
  0xf3   : > { %3402 = vmatpush.msk.msrb.mxu1 %vm766_vm0, %v965_v20  ;;  %v966_v2 = vld [vmem:[#allocation2 + $0x1f0] sm:$0xf]  ;;  %3426 = vmatpush.msk.msra.mxu3 %vm766_vm0, %v1171_v18 }
  0xf4   : > { %3406 = vmatpush.msk.msrb.mxu2 %vm766_vm0, %v966_v2  ;;  %3416 = vmatmul.msk.f32.gmra.mxu0 %vm756_vm1, %v3723_v40 }
  0xf5   : > { %1019 = vmatpush.msrb.mxu1 %v961_v21  ;;  %1275 = vmatpush.msra.mxu3 %v1167_v22 }
  0xf6   : > { %1045 = vmatpush.msrb.mxu2 %v962_v24 }
  0xf7   : > { %1020 = vmatpush.msrb.mxu1 %v957_v25  ;;  %1276 = vmatpush.msra.mxu3 %v1163_v26 }
  0xf8   : > { %1046 = vmatpush.msrb.mxu2 %v958_v27 }
  0xf9   : > { %1021 = vmatpush.msrb.mxu1 %v953_v28  ;;  %1277 = vmatpush.msra.mxu3 %v1159_v29 }
  0xfa   : > { %1047 = vmatpush.msrb.mxu2 %v954_v30  ;;  %3403 = vmatmul.msk.f32.vlgmr.msrb.gmra.mxu1 %vm756_vm1, %v3701_v32 }
  0xfb   : > { %3407 = vmatmul.msk.f32.vlgmr.msrb.gmra.mxu2 %vm756_vm1, %v3701_v32  ;;  %3412 = vmatmul.msk.f32.gmra.mxu3 %vm756_vm1, %v3723_v40 }
  0xfc   : > { %3418 = vmatpush.msk.msra.mxu1 %vm766_vm0, %v1169_v31  ;;  %3422 = vmatpush.msk.msra.mxu2 %vm766_vm0, %v1170_v33 }
  0xfd   : > { %3442 = vmatpush.msk.msrb.mxu3 %vm766_vm0, %v1375_v48  ;;  %3417 = vmatmul.msk.f32.gmra.mxu0 %vm756_vm1, %v3736_v46 }
  0xfe   : > { %1223 = vmatpush.msra.mxu1 %v1165_v34  ;;  %1249 = vmatpush.msra.mxu2 %v1166_v35 }
  0xff   : > { %1479 = vmatpush.msrb.mxu3 %v1371_v51 }
 0x100   : > { %1224 = vmatpush.msra.mxu1 %v1161_v37  ;;  %1250 = vmatpush.msra.mxu2 %v1162_v38 }
 0x101   : > { %1480 = vmatpush.msrb.mxu3 %v1367_v55 }
 0x102   : > { %3404 = vmatmul.msk.f32.gmra.mxu1 %vm756_vm1, %v3723_v40  ;;  %1251 = vmatpush.msra.mxu2 %v1158_v39 }
 0x103   : > { %3408 = vmatmul.msk.f32.gmra.mxu2 %vm756_vm1, %v3723_v40  ;;  %3413 = vmatmul.msk.f32.gmra.mxu3 %vm756_vm1, %v3736_v46 }
 0x104   : > { %1225 = vmatpush.msra.mxu1 %v1157_v41  ;;  %3438 = vmatpush.msk.msrb.mxu2 %vm766_vm0, %v1374_v47 }
 0x105   : > { %1481 = vmatpush.msrb.mxu3 %v1363_v59  ;;  %3431 = vmatmul.msk.f32.vlgmr.msrb.gmra.mxu0 %vm756_vm1, %v3701_v32 }
 0x106   : > { %3434 = vmatpush.msk.msrb.mxu1 %vm766_vm0, %v1373_v45  ;;  %1453 = vmatpush.msrb.mxu2 %v1370_v50 }
 0x108   : > { %1427 = vmatpush.msrb.mxu1 %v1369_v49  ;;  %1454 = vmatpush.msrb.mxu2 %v1366_v54  ;;  %v3960_v49 = vld [vmem:[%s4743_s3 + $0x8] sm:$0xff]  ;;  %v3977_v54 = vld [vmem:[%s4743_s3 + $0x10] sm:$0xff] }
 0x10a   : > { %1428 = vmatpush.msrb.mxu1 %v1365_v53  ;;  %1455 = vmatpush.msrb.mxu2 %v1362_v58 }
 0x10b   : > { %3405 = vmatmul.msk.f32.gmra.mxu1 %vm756_vm1, %v3736_v46  ;;  %3409 = vmatmul.msk.f32.gmra.mxu2 %vm756_vm1, %v3736_v46 }
 0x10c   : > { %3427 = vmatmul.msk.f32.vlgmr.msra.gmra.mxu3 %vm756_vm1, %v3701_v32  ;;  %1429 = vmatpush.msrb.mxu1 %v1361_v57 }
 0x10d   : > { %3432 = vmatmul.msk.f32.gmra.mxu0 %vm756_vm1, %v3723_v40 }
 0x113   : > { %3419 = vmatmul.msk.f32.vlgmr.msra.gmra.mxu1 %vm756_vm1, %v3701_v32  ;;  %3423 = vmatmul.msk.f32.vlgmr.msra.gmra.mxu2 %vm756_vm1, %v3701_v32 }
 0x114   : > { %3428 = vmatmul.msk.f32.gmra.mxu3 %vm756_vm1, %v3723_v40 }
 0x115   : > { %3433 = vmatmul.msk.f32.gmra.mxu0 %vm756_vm1, %v3736_v46 }
 0x11b   : > { %3420 = vmatmul.msk.f32.gmra.mxu1 %vm756_vm1, %v3723_v40  ;;  %3424 = vmatmul.msk.f32.gmra.mxu2 %vm756_vm1, %v3723_v40 }
 0x11c   : > { %3429 = vmatmul.msk.f32.gmra.mxu3 %vm756_vm1, %v3736_v46 }
 0x123   : > { %3421 = vmatmul.msk.f32.gmra.mxu1 %vm756_vm1, %v3736_v46  ;;  %3425 = vmatmul.msk.f32.gmra.mxu2 %vm756_vm1, %v3736_v46 }
 0x124   : > { %3443 = vmatmul.msk.f32.vlgmr.msrb.gmra.mxu3 %vm756_vm1, %v3701_v32 }
 0x12b   : > { %3435 = vmatmul.msk.f32.vlgmr.msrb.gmra.mxu1 %vm756_vm1, %v3701_v32  ;;  %3439 = vmatmul.msk.f32.vlgmr.msrb.gmra.mxu2 %vm756_vm1, %v3701_v32  ;;  %v3850_v32 = vpop.permute.xlu0 %753 }
 0x12c   : > { %3444 = vmatmul.msk.f32.gmra.mxu3 %vm756_vm1, %v3723_v40 }
 0x130   : > { %v796_v61 = vpop.f32.mrf.mxu0 }
 0x131   : > { %v822_v60 = vpop.f32.mrf.mxu1  ;;  %v848_v44 = vpop.f32.mrf.mxu2 }
 0x133   : > { %3436 = vmatmul.msk.f32.gmra.mxu1 %vm756_vm1, %v3723_v40  ;;  %3440 = vmatmul.msk.f32.gmra.mxu2 %vm756_vm1, %v3723_v40  ;;  %v3853_v40 = vpop.permute.xlu1 %743  ;;  %v3859_v9 = vpop.permute.xlu0 %748 }
 0x134   : > { %3445 = vmatmul.msk.f32.gmra.mxu3 %vm756_vm1, %v3736_v46  ;;  %v823_v6 = vadd.f32 %v822_v60, %v3853_v40  ;;  %v849_v8 = vadd.f32 %v848_v44, %v3853_v40  ;;  %v797_v20 = vadd.f32 %v796_v61, %v3853_v40 }
 0x136   : > { %v3867_v14 = vmax.f32 %v823_v6, 0.0  ;;  %v3874_v18 = vmax.f32 %v849_v8, 0.0  ;;  %v3889_v24 = vmax.f32 %v797_v20, 0.0 }
 0x138   : > { %v799_v63 = vpop.f32.mrf.mxu0 }
 0x139   : > { %v825_v62 = vpop.f32.mrf.mxu1  ;;  %v851_v0 = vpop.f32.mrf.mxu2  ;;  %v800_v19 = vadd.f32 %v799_v63, %v3859_v9 }
 0x13a   : > { %v826_v12 = vadd.f32 %v825_v62, %v3859_v9  ;;  %v852_v13 = vadd.f32 %v851_v0, %v3859_v9 }
 0x13b   : > { %3437 = vmatmul.msk.f32.gmra.mxu1 %vm756_vm1, %v3736_v46  ;;  %3441 = vmatmul.msk.f32.gmra.mxu2 %vm756_vm1, %v3736_v46  ;;  %v3885_v22 = vmax.f32 %v800_v19, 0.0 }
 0x13c   : > { %v3869_v15 = vmax.f32 %v826_v12, 0.0  ;;  %v3871_v16 = vmax.f32 %v852_v13, 0.0 }
 0x140   : > { %v802_v11 = vpop.f32.mrf.mxu0 }
 0x141   : > { %v828_v1 = vpop.f32.mrf.mxu1  ;;  %v854_v7 = vpop.f32.mrf.mxu2  ;;  %v803_v17 = vadd.f32 %v802_v11, %v3850_v32 }
 0x142   : > { %v829_v4 = vadd.f32 %v828_v1, %v3850_v32  ;;  %v855_v46 = vadd.f32 %v854_v7, %v3850_v32 }
 0x143   : > { %v3881_v21 = vmax.f32 %v803_v17, 0.0 }
 0x144   : > { %v3855_v5 = vmax.f32 %v829_v4, 0.0  ;;  %v3865_v3 = vmax.f32 %v855_v46, 0.0 }
 0x146   : > { %1689 = vmatpush.msra.mxu0 %v3855_v5  ;;  %1715 = vmatpush.msra.mxu1 %v3865_v3 }
 0x148   : > { %1690 = vmatpush.msra.mxu0 %v3869_v15  ;;  %1716 = vmatpush.msra.mxu1 %v3871_v16 }
 0x14a   : > { %1691 = vmatpush.msra.mxu0 %v3867_v14  ;;  %1717 = vmatpush.msra.mxu1 %v3874_v18 }
 0x14c   : > { %1692 = vmatpush.msra.mxu0 %v3881_v21  ;;  %1718 = vmatpush.msra.mxu1 %v3855_v5  ;;  %v997_v25 = vpop.f32.mrf.mxu0 }
 0x14d   : > { %v998_v38 = vadd.f32 %v997_v25, %v3853_v40 }
 0x14e   : > { %1693 = vmatpush.msra.mxu0 %v3885_v22  ;;  %1719 = vmatpush.msra.mxu1 %v3869_v15 }
 0x14f   : > { %v3935_v42 = vmax.f32 %v998_v38, 0.0 }
 0x150   : > { %1694 = vmatpush.msra.mxu0 %v3889_v24  ;;  %1720 = vmatpush.msra.mxu1 %v3867_v14 }
 0x151   : > { %v874_v2 = vpop.f32.mrf.mxu3 }
 0x152   : > { %1695 = vmatpush.msra.mxu0 %v3547_v23  ;;  %1721 = vmatpush.msra.mxu1 %v3881_v21  ;;  %v875_v29 = vadd.f32 %v874_v2, %v3853_v40 }
 0x154   : > { %1696 = vmatpush.msra.mxu0 %v3547_v23  ;;  %1722 = vmatpush.msra.mxu1 %v3885_v22  ;;  %v1000_v10 = vpop.f32.mrf.mxu0  ;;  %v3918_v34 = vmax.f32 %v875_v29, 0.0 }
 0x155   : > { %v1001_v36 = vadd.f32 %v1000_v10, %v3859_v9 }
 0x156   : > { %1697 = vmatpush.msra.mxu0 %v3547_v23  ;;  %1723 = vmatpush.msra.mxu1 %v3889_v24 }
 0x157   : > { %v3931_v41 = vmax.f32 %v1001_v36, 0.0 }
 0x158   : > { %1698 = vmatpush.msra.mxu0 %v3547_v23  ;;  %1724 = vmatpush.msra.mxu1 %v3547_v23 }
 0x159   : > { %v877_v26 = vpop.f32.mrf.mxu3 }
 0x15a   : > { %1699 = vmatpush.msra.mxu0 %v3547_v23  ;;  %1725 = vmatpush.msra.mxu1 %v3547_v23  ;;  %v878_v27 = vadd.f32 %v877_v26, %v3859_v9 }
 0x15c   : > { %1700 = vmatpush.msra.mxu0 %v3547_v23  ;;  %1726 = vmatpush.msra.mxu1 %v3547_v23  ;;  %v3912_v31 = vmax.f32 %v878_v27, 0.0  ;;  %v1003_v35 = vpop.f32.mrf.mxu0 }
 0x15d   : > { %v1004_v37 = vadd.f32 %v1003_v35, %v3850_v32 }
 0x15e   : > { %1701 = vmatpush.msra.mxu0 %v3547_v23  ;;  %1727 = vmatpush.msra.mxu1 %v3547_v23 }
 0x15f   : > { %v3928_v39 = vmax.f32 %v1004_v37, 0.0 }
 0x160   : > { %1702 = vmatpush.msra.mxu0 %v3547_v23  ;;  %1728 = vmatpush.msra.mxu1 %v3547_v23 }
 0x161   : > { %v880_v28 = vpop.f32.mrf.mxu3  ;;  %1767 = vmatpush.msra.mxu3 %v3928_v39 }
 0x162   : > { %v881_v30 = vadd.f32 %v880_v28, %v3850_v32  ;;  %1703 = vmatpush.msra.mxu0 %v3547_v23  ;;  %1729 = vmatpush.msra.mxu1 %v3547_v23 }
 0x163   : > { %1768 = vmatpush.msra.mxu3 %v3931_v41  ;;  %3446 = vmatmul.msk.f32.vlgmr.msra.gmra.mxu0 %vm1678_vm2, %v3943_v43 }
 0x164   : > { %v3914_v33 = vmax.f32 %v881_v30, 0.0  ;;  %3449 = vmatmul.msk.f32.vlgmr.msra.gmra.mxu1 %vm1678_vm2, %v3943_v43 }
 0x165   : > { %1769 = vmatpush.msra.mxu3 %v3935_v42 }
 0x166   : > { %1741 = vmatpush.msra.mxu2 %v3914_v33 }
 0x167   : > { %1770 = vmatpush.msra.mxu3 %v3914_v33 }
 0x168   : > { %1742 = vmatpush.msra.mxu2 %v3912_v31  ;;  %v1201_v45 = vpop.f32.mrf.mxu0 }
 0x169   : > { %1771 = vmatpush.msra.mxu3 %v3912_v31  ;;  %v1202_v4 = vadd.f32 %v1201_v45, %v3853_v40 }
 0x16a   : > { %1743 = vmatpush.msra.mxu2 %v3918_v34 }
 0x16b   : > { %1772 = vmatpush.msra.mxu3 %v3918_v34  ;;  %3447 = vmatmul.msk.f32.gmra.mxu0 %vm1678_vm2, %v3960_v49  ;;  %v4020_v17 = vmax.f32 %v1202_v4, 0.0 }
 0x16c   : > { %1744 = vmatpush.msra.mxu2 %v3865_v3  ;;  %3450 = vmatmul.msk.f32.gmra.mxu1 %vm1678_vm2, %v3960_v49 }
 0x16d   : > { %1773 = vmatpush.msra.mxu3 %v3865_v3 }
 0x16e   : > { %1745 = vmatpush.msra.mxu2 %v3871_v16 }
 0x16f   : > { %1774 = vmatpush.msra.mxu3 %v3871_v16 }
 0x170   : > { %1746 = vmatpush.msra.mxu2 %v3874_v18 }
 0x171   : > { %v1204_v50 = vpop.f32.mrf.mxu0  ;;  %1775 = vmatpush.msra.mxu3 %v3874_v18 }
 0x172   : > { %1747 = vmatpush.msra.mxu2 %v3855_v5  ;;  %v1205_v44 = vadd.f32 %v1204_v50, %v3859_v9 }
 0x173   : > { %1776 = vmatpush.msra.mxu3 %v3855_v5  ;;  %3448 = vmatmul.msk.f32.gmra.mxu0 %vm1678_vm2, %v3977_v54 }
 0x174   : > { %1748 = vmatpush.msra.mxu2 %v3869_v15  ;;  %3451 = vmatmul.msk.f32.gmra.mxu1 %vm1678_vm2, %v3977_v54  ;;  %v4009_v46 = vmax.f32 %v1205_v44, 0.0 }
 0x175   : > { %v1075_v47 = vpop.f32.mrf.mxu3  ;;  %1777 = vmatpush.msra.mxu3 %v3869_v15 }
 0x176   : > { %1749 = vmatpush.msra.mxu2 %v3867_v14  ;;  %v1076_v0 = vadd.f32 %v1075_v47, %v3853_v40  ;;  %v1601_v47 = vld [vmem:[%s4744_s4 + $0x8] sm:$0xff] }
 0x177   : > { %v1023_v48 = vpop.f32.mrf.mxu1  ;;  %1778 = vmatpush.msra.mxu3 %v3867_v14  ;;  %1670 = vperm.xlu2 %3538, %v1601_v47  }
 0x178   : > { %1750 = vmatpush.msra.mxu2 %v3881_v21  ;;  %v1024_v7 = vadd.f32 %v1023_v48, %v3853_v40  ;;  %v4018_v13 = vmax.f32 %v1076_v0, 0.0  ;;  %v1600_v0 = vld [vmem:[%s4744_s4] sm:$0xff] }
 0x179   : > { %1779 = vmatpush.msra.mxu3 %v3881_v21 }
 0x17a   : > { %1751 = vmatpush.msra.mxu2 %v3885_v22  ;;  %v1207_v55 = vpop.f32.mrf.mxu0  ;;  %v4024_v19 = vmax.f32 %v1024_v7, 0.0 }
 0x17b   : > { %v1208_v56 = vadd.f32 %v1207_v55, %v3850_v32  ;;  %1780 = vmatpush.msra.mxu3 %v3885_v22 }
 0x17c   : > { %1752 = vmatpush.msra.mxu2 %v3889_v24 }
 0x17d   : > { %v3999_v6 = vmax.f32 %v1208_v56, 0.0  ;;  %1781 = vmatpush.msra.mxu3 %v3889_v24 }
 0x17e   : > { %v1049_v51 = vpop.f32.mrf.mxu2  ;;  %v1078_v52 = vpop.f32.mrf.mxu3  ;;  %1753 = vmatpush.msra.mxu2 %v3547_v23  ;;  %3455 = vmatmul.msk.f32.vlgmr.msra.gmra.mxu3 %vm1678_vm2, %v3943_v43 }
 0x17f   : > { %v1026_v53 = vpop.f32.mrf.mxu1  ;;  %v1079_v59 = vadd.f32 %v1078_v52, %v3859_v9  ;;  %1979 = vmatpush.msrb.mxu3 %v3999_v6  ;;  %v1050_v25 = vadd.f32 %v1049_v51, %v3853_v40  ;;  %1665 = vperm.xlu2 %3538, %v1600_v0  }
 0x180   : > { %1754 = vmatpush.msra.mxu2 %v3547_v23  ;;  %v1027_v62 = vadd.f32 %v1026_v53, %v3859_v9 }
 0x181   : > { %v4007_v11 = vmax.f32 %v1079_v59, 0.0  ;;  %1980 = vmatpush.msrb.mxu3 %v4009_v46  ;;  %v4050_v10 = vmax.f32 %v1050_v25, 0.0 }
 0x182   : > { %1755 = vmatpush.msra.mxu2 %v3547_v23  ;;  %v4013_v12 = vmax.f32 %v1027_v62, 0.0  ;;  %v4078_v36 = vpop.f32.mrf.mxu0 }
 0x183   : > { %3452 = vmatmul.msk.f32.vlgmr.msra.gmra.mxu2 %vm1678_vm2, %v3943_v43  ;;  %1981 = vmatpush.msrb.mxu3 %v4020_v17 }
 0x186   : > { %v1052_v57 = vpop.f32.mrf.mxu2  ;;  %v1081_v58 = vpop.f32.mrf.mxu3  ;;  %3456 = vmatmul.msk.f32.gmra.mxu3 %vm1678_vm2, %v3960_v49 }
 0x187   : > { %v1082_v61 = vadd.f32 %v1081_v58, %v3850_v32  ;;  %v1053_v21 = vadd.f32 %v1052_v57, %v3859_v9 }
 0x188   : > { %v1029_v60 = vpop.f32.mrf.mxu1 }
 0x189   : > { %v1030_v63 = vadd.f32 %v1029_v60, %v3850_v32  ;;  %v3996_v1 = vmax.f32 %v1082_v61, 0.0  ;;  %v4043_v27 = vmax.f32 %v1053_v21, 0.0 }
 0x18b   : > { %v4003_v8 = vmax.f32 %v1030_v63, 0.0  ;;  %1953 = vmatpush.msrb.mxu2 %v3996_v1  ;;  %1982 = vmatpush.msrb.mxu3 %v3996_v1 }
 0x18c   : > { %3453 = vmatmul.msk.f32.gmra.mxu2 %vm1678_vm2, %v3960_v49 }
 0x18d   : > { %1901 = vmatpush.msrb.mxu0 %v4003_v8  ;;  %1954 = vmatpush.msrb.mxu2 %v4007_v11 }
 0x18e   : > { %v1055_v20 = vpop.f32.mrf.mxu2  ;;  %1983 = vmatpush.msrb.mxu3 %v4007_v11 }
 0x18f   : > { %1902 = vmatpush.msrb.mxu0 %v4013_v12  ;;  %v1056_v22 = vadd.f32 %v1055_v20, %v3850_v32  ;;  %v4031_v24 = vpop.f32.mrf.mxu3  ;;  %1955 = vmatpush.msrb.mxu2 %v4018_v13  ;;  %v1406_v20 = vadd.f32 %v4078_v36, %v3853_v40 }
 0x190   : > { %v4029_v2 = vpop.f32.mrf.mxu1  ;;  %1984 = vmatpush.msrb.mxu3 %v4018_v13  ;;  %v1280_v56 = vadd.f32 %v4031_v24, %v3853_v40 }
 0x191   : > { %1903 = vmatpush.msrb.mxu0 %v4024_v19  ;;  %v4037_v26 = vmax.f32 %v1056_v22, 0.0  ;;  %3457 = vmatmul.msk.f32.gmra.mxu3 %vm1678_vm2, %v3977_v54 }
 0x192   : > { %v4141_v60 = vmax.f32 %v1280_v56, 0.0 }
 0x193   : > { %1904 = vmatpush.msrb.mxu0 %v3928_v39  ;;  %1927 = vmatpush.msrb.mxu1 %v4037_v26 }
 0x194   : > { %1956 = vmatpush.msrb.mxu2 %v4037_v26  ;;  %1985 = vmatpush.msrb.mxu3 %v4037_v26 }
 0x195   : > { %1905 = vmatpush.msrb.mxu0 %v3931_v41  ;;  %3454 = vmatmul.msk.f32.gmra.mxu2 %vm1678_vm2, %v3977_v54 }
 0x196   : > { %1928 = vmatpush.msrb.mxu1 %v4043_v27  ;;  %1957 = vmatpush.msrb.mxu2 %v4043_v27  ;;  %v4054_v28 = vpop.f32.mrf.mxu2 }
 0x197   : > { %1906 = vmatpush.msrb.mxu0 %v3935_v42  ;;  %v1282_v30 = vpop.f32.mrf.mxu3  ;;  %1986 = vmatpush.msrb.mxu3 %v4043_v27 }
 0x198   : > { %v1230_v29 = vpop.f32.mrf.mxu1  ;;  %1929 = vmatpush.msrb.mxu1 %v4050_v10  ;;  %1958 = vmatpush.msrb.mxu2 %v4050_v10 }
 0x199   : > { %1907 = vmatpush.msrb.mxu0 %v3914_v33  ;;  %1987 = vmatpush.msrb.mxu3 %v4050_v10  ;;  %v1231_v48 = vadd.f32 %v1230_v29, %v3859_v9 }
 0x19a   : > { %1930 = vmatpush.msrb.mxu1 %v4003_v8  ;;  %1959 = vmatpush.msrb.mxu2 %v4003_v8 }
 0x19b   : > { %1908 = vmatpush.msrb.mxu0 %v3912_v31  ;;  %1988 = vmatpush.msrb.mxu3 %v4003_v8 }
 0x19c   : > { %1931 = vmatpush.msrb.mxu1 %v4013_v12  ;;  %1960 = vmatpush.msrb.mxu2 %v4013_v12 }
 0x19d   : > { %1909 = vmatpush.msrb.mxu0 %v3918_v34  ;;  %1989 = vmatpush.msrb.mxu3 %v4013_v12 }
 0x19e   : > { %1932 = vmatpush.msrb.mxu1 %v4024_v19  ;;  %1961 = vmatpush.msrb.mxu2 %v4024_v19  ;;  %v1256_v35 = vpop.f32.mrf.mxu2 }
 0x19f   : > { %1910 = vmatpush.msrb.mxu0 %v3865_v3  ;;  %v1285_v38 = vpop.f32.mrf.mxu3  ;;  %1990 = vmatpush.msrb.mxu3 %v4024_v19 }
 0x1a0   : > { %1933 = vmatpush.msrb.mxu1 %v3928_v39  ;;  %1962 = vmatpush.msrb.mxu2 %v3928_v39  ;;  %v1233_v37 = vpop.f32.mrf.mxu1  ;;  %v1286_v50 = vadd.f32 %v1285_v38, %v3850_v32 }
 0x1a1   : > { %1911 = vmatpush.msrb.mxu0 %v3871_v16  ;;  %v1234_v45 = vadd.f32 %v1233_v37, %v3850_v32  ;;  %1991 = vmatpush.msrb.mxu3 %v3928_v39 }
 0x1a2   : > { %1934 = vmatpush.msrb.mxu1 %v3931_v41  ;;  %1963 = vmatpush.msrb.mxu2 %v3931_v41  ;;  %v4112_v53 = vmax.f32 %v1286_v50, 0.0 }
 0x1a3   : > { %1912 = vmatpush.msrb.mxu0 %v3874_v18  ;;  %v4104_v51 = vmax.f32 %v1234_v45, 0.0  ;;  %1992 = vmatpush.msrb.mxu3 %v3931_v41 }
 0x1a4   : > { %1935 = vmatpush.msrb.mxu1 %v3935_v42  ;;  %1964 = vmatpush.msrb.mxu2 %v3935_v42 }
 0x1a5   : > { %1913 = vmatpush.msrb.mxu0 %v3855_v5  ;;  %v1228_v5 = vadd.f32 %v4029_v2, %v3853_v40  ;;  %1993 = vmatpush.msrb.mxu3 %v3935_v42  ;;  %v4205_v2 = vmax.f32 %v1406_v20, 0.0 }
 0x1a6   : > { %1936 = vmatpush.msrb.mxu1 %v3914_v33  ;;  %1965 = vmatpush.msrb.mxu2 %v3914_v33  ;;  %v1283_v33 = vadd.f32 %v1282_v30, %v3859_v9  ;;  %v1259_v52 = vpop.f32.mrf.mxu2 }
 0x1a7   : > { %1914 = vmatpush.msrb.mxu0 %v3869_v15  ;;  %v4110_v15 = vmax.f32 %v1231_v48, 0.0  ;;  %v1260_v55 = vadd.f32 %v1259_v52, %v3850_v32  ;;  %v4157_v41 = vpop.f32.mrf.mxu3  ;;  %3467 = vmatmul.msk.f32.vlgmr.msrb.gmra.mxu3 %vm1678_vm2, %v3943_v43 }
 0x1a8   : > { %1937 = vmatpush.msrb.mxu1 %v3912_v31  ;;  %1966 = vmatpush.msrb.mxu2 %v3912_v31  ;;  %v1408_v31 = vpop.f32.mrf.mxu0  ;;  %v4124_v57 = vmax.f32 %v1283_v33, 0.0  ;;  %v4126_v58 = vpop.f32.mrf.mxu1 }
 0x1a9   : > { %1915 = vmatpush.msrb.mxu0 %v3867_v14  ;;  %v4120_v14 = vmax.f32 %v1228_v5, 0.0  ;;  %v4137_v59 = vmax.f32 %v1260_v55, 0.0  ;;  %v1409_v63 = vadd.f32 %v1408_v31, %v3859_v9 }
 0x1aa   : > { %1938 = vmatpush.msrb.mxu1 %v3918_v34  ;;  %3458 = vmatmul.msk.f32.vlgmr.msrb.gmra.mxu0 %vm1678_vm2, %v3943_v43 }
 0x1ab   : > { %2113 = vmatpush.msra.mxu0 %v4104_v51  ;;  %1967 = vmatpush.msrb.mxu2 %v3918_v34  ;;  %v1257_v34 = vadd.f32 %v1256_v35, %v3859_v9  ;;  %v4198_v21 = vmax.f32 %v1409_v63, 0.0 }
 0x1ac   : > { %1939 = vmatpush.msrb.mxu1 %v3865_v3  ;;  %3464 = vmatmul.msk.f32.vlgmr.msrb.gmra.mxu2 %vm1678_vm2, %v3943_v43  ;;  %v1254_v3 = vadd.f32 %v4054_v28, %v3853_v40 }
 0x1ad   : > { %2114 = vmatpush.msra.mxu0 %v4110_v15  ;;  %2165 = vmatpush.msra.mxu2 %v4112_v53 }
 0x1ae   : > { %1940 = vmatpush.msrb.mxu1 %v3871_v16  ;;  %v4146_v16 = vmax.f32 %v1257_v34, 0.0  ;;  %v4155_v39 = vpop.f32.mrf.mxu2 }
 0x1af   : > { %2115 = vmatpush.msra.mxu0 %v4120_v14  ;;  %2166 = vmatpush.msra.mxu2 %v4124_v57  ;;  %v1486_v7 = vpop.f32.mrf.mxu3 }
 0x1b0   : > { %1941 = vmatpush.msrb.mxu1 %v3874_v18  ;;  %v4153_v18 = vmax.f32 %v1254_v3, 0.0  ;;  %v1411_v61 = vpop.f32.mrf.mxu0  ;;  %v1434_v44 = vpop.f32.mrf.mxu1  ;;  %3468 = vmatmul.msk.f32.gmra.mxu3 %vm1678_vm2, %v3960_v49 }
 0x1b1   : > { %3461 = vmatmul.msk.f32.vlgmr.msrb.gmra.mxu1 %vm1678_vm2, %v3943_v43  ;;  %2116 = vmatpush.msra.mxu0 %v3999_v6  ;;  %v1412_v62 = vadd.f32 %v1411_v61, %v3850_v32  ;;  %v1435_v25 = vadd.f32 %v1434_v44, %v3859_v9 }
 0x1b2   : > { %2139 = vmatpush.msra.mxu1 %v4137_v59  ;;  %3459 = vmatmul.msk.f32.gmra.mxu0 %vm1678_vm2, %v3960_v49 }
 0x1b3   : > { %2117 = vmatpush.msra.mxu0 %v4009_v46  ;;  %2167 = vmatpush.msra.mxu2 %v4141_v60  ;;  %v4180_v42 = vmax.f32 %v1412_v62, 0.0 }
 0x1b4   : > { %2140 = vmatpush.msra.mxu1 %v4146_v16  ;;  %3465 = vmatmul.msk.f32.gmra.mxu2 %vm1678_vm2, %v3960_v49 }
 0x1b5   : > { %2118 = vmatpush.msra.mxu0 %v4020_v17  ;;  %2168 = vmatpush.msra.mxu2 %v4137_v59 }
 0x1b6   : > { %2141 = vmatpush.msra.mxu1 %v4153_v18  ;;  %v1460_v4 = vpop.f32.mrf.mxu2  ;;  %2191 = vmatpush.msra.mxu3 %v4180_v42 }
 0x1b7   : > { %2119 = vmatpush.msra.mxu0 %v3996_v1  ;;  %2169 = vmatpush.msra.mxu2 %v4146_v16  ;;  %v1489_v30 = vpop.f32.mrf.mxu3  ;;  %v1461_v37 = vadd.f32 %v1460_v4, %v3859_v9 }
 0x1b8   : > { %2142 = vmatpush.msra.mxu1 %v4104_v51  ;;  %v1437_v22 = vpop.f32.mrf.mxu1  ;;  %2192 = vmatpush.msra.mxu3 %v4198_v21  ;;  %v1490_v35 = vadd.f32 %v1489_v30, %v3850_v32 }
 0x1b9   : > { %3462 = vmatmul.msk.f32.gmra.mxu1 %vm1678_vm2, %v3960_v49  ;;  %2120 = vmatpush.msra.mxu0 %v4007_v11  ;;  %v1438_v24 = vadd.f32 %v1437_v22, %v3850_v32 }
 0x1ba   : > { %2143 = vmatpush.msra.mxu1 %v4110_v15  ;;  %3460 = vmatmul.msk.f32.gmra.mxu0 %vm1678_vm2, %v3977_v54  ;;  %v4251_v38 = vmax.f32 %v1490_v35, 0.0 }
 0x1bb   : > { %2121 = vmatpush.msra.mxu0 %v4018_v13  ;;  %2170 = vmatpush.msra.mxu2 %v4153_v18  ;;  %v4221_v28 = vmax.f32 %v1438_v24, 0.0 }
 0x1bc   : > { %2144 = vmatpush.msra.mxu1 %v4120_v14  ;;  %3466 = vmatmul.msk.f32.gmra.mxu2 %vm1678_vm2, %v3977_v54 }
 0x1bd   : > { %2122 = vmatpush.msra.mxu0 %v4037_v26  ;;  %2171 = vmatpush.msra.mxu2 %v4104_v51 }
 0x1be   : > { %2145 = vmatpush.msra.mxu1 %v3999_v6  ;;  %2193 = vmatpush.msra.mxu3 %v4205_v2  ;;  %v1463_v29 = vpop.f32.mrf.mxu2 }
 0x1bf   : > { %2123 = vmatpush.msra.mxu0 %v4043_v27  ;;  %2172 = vmatpush.msra.mxu2 %v4110_v15 }
 0x1c0   : > { %2146 = vmatpush.msra.mxu1 %v4009_v46  ;;  %2194 = vmatpush.msra.mxu3 %v4112_v53 }
 0x1c1   : > { %3463 = vmatmul.msk.f32.gmra.mxu1 %vm1678_vm2, %v3977_v54  ;;  %2124 = vmatpush.msra.mxu0 %v4050_v10 }
 0x1c2   : > { %2147 = vmatpush.msra.mxu1 %v4020_v17  ;;  %2173 = vmatpush.msra.mxu2 %v4120_v14 }
 0x1c3   : > { %2125 = vmatpush.msra.mxu0 %v4003_v8  ;;  %v1432_v8 = vadd.f32 %v4126_v58, %v3853_v40  ;;  %2195 = vmatpush.msra.mxu3 %v4124_v57 }
 0x1c4   : > { %2148 = vmatpush.msra.mxu1 %v3996_v1  ;;  %2174 = vmatpush.msra.mxu2 %v3999_v6 }
 0x1c5   : > { %2126 = vmatpush.msra.mxu0 %v4013_v12  ;;  %v4229_v12 = vmax.f32 %v1435_v25, 0.0  ;;  %v4237_v36 = vmax.f32 %v1432_v8, 0.0  ;;  %2196 = vmatpush.msra.mxu3 %v4141_v60 }
 0x1c6   : > { %2149 = vmatpush.msra.mxu1 %v4007_v11  ;;  %2175 = vmatpush.msra.mxu2 %v4009_v46 }
 0x1c7   : > { %2127 = vmatpush.msra.mxu0 %v4024_v19  ;;  %v1464_v19 = vadd.f32 %v1463_v29, %v3850_v32  ;;  %v1458_v32 = vadd.f32 %v4155_v39, %v3853_v40  ;;  %2197 = vmatpush.msra.mxu3 %v4137_v59 }
 0x1c8   : > { %2150 = vmatpush.msra.mxu1 %v4018_v13  ;;  %2176 = vmatpush.msra.mxu2 %v4020_v17 }
 0x1c9   : > { %3470 = vmatmul.msk.f32.vlgmr.msra.gmra.mxu0 %vm1678_vm2, %v3943_v43  ;;  %2198 = vmatpush.msra.mxu3 %v4146_v16 }
 0x1ca   : > { %2325 = vmatpush.msrb.mxu0 %v4221_v28  ;;  %2151 = vmatpush.msra.mxu1 %v4037_v26  ;;  %v1487_v26 = vadd.f32 %v1486_v7, %v3859_v9  ;;  %v4261_v9 = vmax.f32 %v1461_v37, 0.0 }
 0x1cb   : > { %2177 = vmatpush.msra.mxu2 %v3996_v1  ;;  %v4249_v1 = vmax.f32 %v1464_v19, 0.0  ;;  %3469 = vmatmul.msk.f32.gmra.mxu3 %vm1678_vm2, %v3977_v54 }
 0x1cc   : > { %2326 = vmatpush.msrb.mxu0 %v4229_v12  ;;  %2152 = vmatpush.msra.mxu1 %v4043_v27  ;;  %v4265_v27 = vmax.f32 %v1487_v26, 0.0 }
 0x1cd   : > { %2178 = vmatpush.msra.mxu2 %v4007_v11  ;;  %v1484_v11 = vadd.f32 %v4157_v41, %v3853_v40  ;;  %2199 = vmatpush.msra.mxu3 %v4153_v18 }
 0x1ce   : > { %2327 = vmatpush.msrb.mxu0 %v4237_v36  ;;  %2153 = vmatpush.msra.mxu1 %v4050_v10  ;;  %v4374_v10 = vpop.permute.xlu1 %1675 }
 0x1cf   : > { %2179 = vmatpush.msra.mxu2 %v4018_v13  ;;  %3473 = vmatmul.msk.f32.vlgmr.msra.gmra.mxu1 %vm1678_vm2, %v3943_v43  ;;  %v4270_v13 = vmax.f32 %v1458_v32, 0.0  ;;  %v4274_v40 = vmax.f32 %v1484_v11, 0.0 }
 0x1d0   : > { %3476 = vmatmul.msk.f32.vlgmr.msra.gmra.mxu2 %vm1678_vm2, %v3943_v43  ;;  %2328 = vmatpush.msrb.mxu0 %v4180_v42 }
 0x1d1   : > { %2351 = vmatpush.msrb.mxu1 %v4249_v1  ;;  %2377 = vmatpush.msrb.mxu2 %v4251_v38  ;;  %v4391_v5 = vpop.permute.xlu2 %1670 }
 0x1d2   : > { %3471 = vmatmul.msk.f32.gmra.mxu0 %vm1678_vm2, %v3960_v49  ;;  %2200 = vmatpush.msra.mxu3 %v4104_v51 }
 0x1d3   : > { %2329 = vmatpush.msrb.mxu0 %v4198_v21  ;;  %2352 = vmatpush.msrb.mxu1 %v4261_v9 }
 0x1d4   : > { %2378 = vmatpush.msrb.mxu2 %v4265_v27  ;;  %2201 = vmatpush.msra.mxu3 %v4110_v15 }
 0x1d5   : > { %2330 = vmatpush.msrb.mxu0 %v4205_v2  ;;  %2353 = vmatpush.msrb.mxu1 %v4270_v13 }
 0x1d6   : > { %2379 = vmatpush.msrb.mxu2 %v4274_v40  ;;  %2202 = vmatpush.msra.mxu3 %v4120_v14 }
 0x1d7   : > { %2331 = vmatpush.msrb.mxu0 %v4112_v53  ;;  %2354 = vmatpush.msrb.mxu1 %v4221_v28 }
 0x1d8   : > { %2380 = vmatpush.msrb.mxu2 %v4249_v1  ;;  %3474 = vmatmul.msk.f32.gmra.mxu1 %vm1678_vm2, %v3960_v49 }
 0x1d9   : > { %3477 = vmatmul.msk.f32.gmra.mxu2 %vm1678_vm2, %v3960_v49  ;;  %2332 = vmatpush.msrb.mxu0 %v4124_v57  ;;  %v4428_v34 = vpop.permute.xlu2 %1665 }
 0x1da   : > { %2355 = vmatpush.msrb.mxu1 %v4229_v12  ;;  %2381 = vmatpush.msrb.mxu2 %v4261_v9 }
 0x1db   : > { %3472 = vmatmul.msk.f32.gmra.mxu0 %vm1678_vm2, %v3977_v54  ;;  %2203 = vmatpush.msra.mxu3 %v3999_v6 }
 0x1dc   : > { %2333 = vmatpush.msrb.mxu0 %v4141_v60  ;;  %2356 = vmatpush.msrb.mxu1 %v4237_v36 }
 0x1dd   : > { %2382 = vmatpush.msrb.mxu2 %v4270_v13  ;;  %2204 = vmatpush.msra.mxu3 %v4009_v46 }
 0x1de   : > { %2334 = vmatpush.msrb.mxu0 %v4137_v59  ;;  %2357 = vmatpush.msrb.mxu1 %v4180_v42 }
 0x1df   : > { %2383 = vmatpush.msrb.mxu2 %v4221_v28  ;;  %2205 = vmatpush.msra.mxu3 %v4020_v17 }
 0x1e0   : > { %2335 = vmatpush.msrb.mxu0 %v4146_v16  ;;  %2358 = vmatpush.msrb.mxu1 %v4198_v21  ;;  %v4345_v6 = vpop.f32.mrf.mxu0 }
 0x1e1   : > { %2384 = vmatpush.msrb.mxu2 %v4229_v12  ;;  %3475 = vmatmul.msk.f32.gmra.mxu1 %vm1678_vm2, %v3977_v54  ;;  %v1731_v46 = vpop.f32.mrf.mxu1 }
 0x1e2   : > { %3478 = vmatmul.msk.f32.gmra.mxu2 %vm1678_vm2, %v3977_v54  ;;  %2336 = vmatpush.msrb.mxu0 %v4153_v18 }
 0x1e3   : > { %2359 = vmatpush.msrb.mxu1 %v4205_v2  ;;  %2385 = vmatpush.msrb.mxu2 %v4237_v36 }
 0x1e4   : > { %3479 = vmatmul.msk.f32.vlgmr.msra.gmra.mxu3 %vm1678_vm2, %v3943_v43  ;;  %2337 = vmatpush.msrb.mxu0 %v4104_v51  ;;  %v4399_v51 = vld [vmem:[%s4745_s5] sm:$0x7] }
 0x1e5   : > { %2360 = vmatpush.msrb.mxu1 %v4112_v53  ;;  %2386 = vmatpush.msrb.mxu2 %v4180_v42 }
 0x1e6   : > { %2406 = vmatpush.msrb.mxu3 %v4251_v38  ;;  %2338 = vmatpush.msrb.mxu0 %v4110_v15 }
 0x1e7   : > { %2361 = vmatpush.msrb.mxu1 %v4124_v57  ;;  %2387 = vmatpush.msrb.mxu2 %v4198_v21 }
 0x1e8   : > { %2407 = vmatpush.msrb.mxu3 %v4265_v27  ;;  %2339 = vmatpush.msrb.mxu0 %v4120_v14  ;;  %v1708_v17 = vpop.f32.mrf.mxu0 }
 0x1e9   : > { %2362 = vmatpush.msrb.mxu1 %v4141_v60  ;;  %2388 = vmatpush.msrb.mxu2 %v4205_v2  ;;  %v1734_v45 = vpop.f32.mrf.mxu1  ;;  %v1709_v33 = vadd.f32 %v1708_v17, %v4391_v5 }
 0x1ea   : > { %2408 = vmatpush.msrb.mxu3 %v4274_v40  ;;  %3482 = vmatmul.msk.f32.vlgmr.msrb.gmra.mxu0 %vm1678_vm2, %v3943_v43  ;;  %v1735_v52 = vadd.f32 %v1734_v45, %v4391_v5 }
 0x1eb   : > { %2542 = vmatpush.msra.mxu0 %v4251_v38  ;;  %2363 = vmatpush.msrb.mxu1 %v4137_v59  ;;  %v1706_v59 = vadd.f32 %v4345_v6, %v4428_v34 }
 0x1ec   : > { %2389 = vmatpush.msrb.mxu2 %v4112_v53  ;;  %2409 = vmatpush.msrb.mxu3 %v4249_v1  ;;  %v4404_v53 = vmax.f32 %v1709_v33, 0.0  ;;  %v4412_v55 = vmax.f32 %v1735_v52, 0.0 }
 0x1ed   : > { %2543 = vmatpush.msra.mxu0 %v4265_v27  ;;  %3480 = vmatmul.msk.f32.gmra.mxu3 %vm1678_vm2, %v3960_v49 }
 0x1ee   : > { %2364 = vmatpush.msrb.mxu1 %v4146_v16  ;;  %2390 = vmatpush.msrb.mxu2 %v4124_v57  ;;  %v4433_v16 = vmax.f32 %v1706_v59, 0.0 }
 0x1ef   : > { %2410 = vmatpush.msrb.mxu3 %v4261_v9  ;;  %2544 = vmatpush.msra.mxu0 %v4274_v40 }
 0x1f0   : > { %2365 = vmatpush.msrb.mxu1 %v4153_v18  ;;  %2391 = vmatpush.msrb.mxu2 %v4141_v60  ;;  %v1711_v47 = vpop.f32.mrf.mxu0  ;;  %v1732_v60 = vadd.f32 %v1731_v46, %v4428_v34 }
 0x1f1   : > { %2411 = vmatpush.msrb.mxu3 %v4270_v13  ;;  %3485 = vmatmul.msk.f32.vlgmr.msrb.gmra.mxu1 %vm1678_vm2, %v3943_v43  ;;  %v1712_v48 = vadd.f32 %v1711_v47, %v4374_v10  ;;  %v1737_v15 = vpop.f32.mrf.mxu1 }
 0x1f2   : > { %3488 = vmatmul.msk.f32.vlgmr.msrb.gmra.mxu2 %vm1678_vm2, %v3943_v43  ;;  %2545 = vmatpush.msra.mxu0 %v4249_v1  ;;  %v1738_v31 = vadd.f32 %v1737_v15, %v4374_v10  ;;  %v1793_v18 = vmax.f32 %v1732_v60, 0.0 }
 0x1f3   : > { %2412 = vmatpush.msrb.mxu3 %v4221_v28  ;;  %3483 = vmatmul.msk.f32.gmra.mxu0 %vm1678_vm2, %v3960_v49  ;;  %v4386_v50 = vmax.f32 %v1712_v48, 0.0 }
 0x1f4   : > { %2546 = vmatpush.msra.mxu0 %v4261_v9  ;;  %2644 = vmatpush.msra.mxu1 %v3547_v23  ;;  %v4414_v14 = vmax.f32 %v1738_v31, 0.0 }
 0x1f5   : > { %2413 = vmatpush.msrb.mxu3 %v4229_v12  ;;  %2656 = vmatpush.msra.mxu2 %v4386_v50 }
 0x1f6   : > { %2547 = vmatpush.msra.mxu0 %v4270_v13  ;;  %3481 = vmatmul.msk.f32.gmra.mxu3 %vm1678_vm2, %v3977_v54 }
 0x1f7   : > { %2414 = vmatpush.msrb.mxu3 %v4237_v36  ;;  %2657 = vmatpush.msra.mxu2 %v4404_v53 }
 0x1f8   : > { %2676 = vmatpush.msrb.mxu1 %v4414_v14 }
 0x1f9   : > { %2415 = vmatpush.msrb.mxu3 %v4180_v42  ;;  %3486 = vmatmul.msk.f32.gmra.mxu1 %vm1678_vm2, %v3960_v49 }
 0x1fa   : > { %3489 = vmatmul.msk.f32.gmra.mxu2 %vm1678_vm2, %v3960_v49  ;;  %2677 = vmatpush.msrb.mxu1 %v4412_v55 }
 0x1fb   : > { %2416 = vmatpush.msrb.mxu3 %v4198_v21  ;;  %3484 = vmatmul.msk.f32.gmra.mxu0 %vm1678_vm2, %v3977_v54 }
 0x1fc   : > { %2658 = vmatpush.msra.mxu2 %v4433_v16  ;;  %2678 = vmatpush.msrb.mxu1 %v1793_v18 }
 0x1fd   : > { %2417 = vmatpush.msrb.mxu3 %v4205_v2 }
 0x1fe   : > { %3491 = vmatmul.msk.f32.vlgmr.msrb.gmra.mxu3 %vm1678_vm2, %v3943_v43  ;;  %2659 = vmatpush.msra.mxu2 %v3547_v23 }
 0x1ff   : > { %2513 = vmatpush.msra.mxu3 %v4251_v38  ;;  %2679 = vmatpush.msrb.mxu1 %v4386_v50 }
 0x200   : > { %2660 = vmatpush.msra.mxu2 %v3547_v23 }
 0x201   : > { %2514 = vmatpush.msra.mxu3 %v4265_v27  ;;  %3487 = vmatmul.msk.f32.gmra.mxu1 %vm1678_vm2, %v3977_v54  ;;  %v1783_v56 = vpop.f32.mrf.mxu3 }
 0x202   : > { %3490 = vmatmul.msk.f32.gmra.mxu2 %vm1678_vm2, %v3977_v54  ;;  %2680 = vmatpush.msrb.mxu1 %v4404_v53  ;;  %v1784_v0 = vadd.f32 %v1783_v56, %v4428_v34 }
 0x203   : > { %2515 = vmatpush.msra.mxu3 %v4274_v40  ;;  %3497 = vmatmul.msk.f32.vlgmr.msra.gmra.mxu0 %vm1678_vm2, %v3943_v43 }
 0x204   : > { %2661 = vmatpush.msra.mxu2 %v3547_v23  ;;  %2681 = vmatpush.msrb.mxu1 %v4433_v16  ;;  %v4467_v21 = vmax.f32 %v1784_v0, 0.0 }
 0x205   : > { %2516 = vmatpush.msra.mxu3 %v4249_v1 }
 0x206   : > { %3492 = vmatmul.msk.f32.gmra.mxu3 %vm1678_vm2, %v3960_v49  ;;  %v1757_v57 = vpop.f32.mrf.mxu2  ;;  %2662 = vmatpush.msra.mxu2 %v3547_v23 }
 0x207   : > { %2517 = vmatpush.msra.mxu3 %v4261_v9  ;;  %2682 = vmatpush.msrb.mxu1 %v3547_v23  ;;  %v1758_v4 = vadd.f32 %v1757_v57, %v4428_v34 }
 0x208   : > { %2663 = vmatpush.msra.mxu2 %v3547_v23 }
 0x209   : > { %2518 = vmatpush.msra.mxu3 %v4270_v13  ;;  %3500 = vmatmul.msk.f32.vlgmr.msra.gmra.mxu1 %vm2625_vm3, %v4399_v51  ;;  %v1786_v58 = vpop.f32.mrf.mxu3 }
 0x20a   : > { %2683 = vmatpush.msrb.mxu1 %v3547_v23  ;;  %2664 = vmatpush.msra.mxu2 %v3547_v23 }
 0x20b   : > { %2519 = vmatpush.msra.mxu3 %v4221_v28  ;;  %3498 = vmatmul.msk.f32.gmra.mxu0 %vm1678_vm2, %v3960_v49 }
 0x20c   : > { %3501 = vmatmul.msk.f32.vlgmr.msra.gmra.mxu2 %vm2625_vm3, %v4399_v51  ;;  %2684 = vmatpush.msrb.mxu1 %v3547_v23 }
 0x20d   : > { %2520 = vmatpush.msra.mxu3 %v4229_v12 }
 0x20e   : > { %3493 = vmatmul.msk.f32.gmra.mxu3 %vm1678_vm2, %v3977_v54 }
 0x20f   : > { %2521 = vmatpush.msra.mxu3 %v4237_v36  ;;  %v1760_v3 = vpop.f32.mrf.mxu2 }
 0x210   : > { %v1761_v62 = vadd.f32 %v1760_v3, %v4391_v5 }
 0x211   : > { %3502 = vmatmul.msk.f32.vlgmr.msrb.gmra.mxu1 %vm2625_vm3, %v4399_v51 }
 0x212   : > { %v4462_v7 = vmax.f32 %v1761_v62, 0.0 }
 0x213   : > { %3499 = vmatmul.msk.f32.gmra.mxu0 %vm1678_vm2, %v3977_v54 }
 0x214   : > { %v1789_v39 = vpop.f32.mrf.mxu3 }
 0x215   : > { %v1790_v41 = vadd.f32 %v1789_v39, %v4374_v10 }
 0x216   : > { %3494 = vmatmul.msk.f32.vlgmr.msra.gmra.mxu3 %vm1678_vm2, %v3943_v43  ;;  %v1787_v43 = vadd.f32 %v1786_v58, %v4391_v5 }
 0x217   : > { %v4445_v44 = vmax.f32 %v1790_v41, 0.0 }
 0x218   : > { %v1763_v61 = vpop.f32.mrf.mxu2 }
 0x219   : > { %v1764_v42 = vadd.f32 %v1763_v61, %v4374_v10  ;;  %2768 = vmatpush.msrb.mxu3 %v4445_v44 }
 0x21b   : > { %v4464_v20 = vmax.f32 %v1764_v42, 0.0 }
 0x21d   : > { %2696 = vmatpush.msrb.mxu2 %v4464_v20 }
 0x21e   : > { %3495 = vmatmul.msk.f32.gmra.mxu3 %vm1678_vm2, %v3960_v49  ;;  %v4448_v49 = vmax.f32 %v1787_v43, 0.0 }
 0x21f   : > { %2697 = vmatpush.msrb.mxu2 %v4462_v7 }
 0x220   : > { %2769 = vmatpush.msrb.mxu3 %v4448_v49 }
 0x222   : > { %2770 = vmatpush.msrb.mxu3 %v4467_v21 }
 0x224   : > { %2771 = vmatpush.msrb.mxu3 %v4464_v20 }
 0x226   : > { %3496 = vmatmul.msk.f32.gmra.mxu3 %vm1678_vm2, %v3977_v54  ;;  %v4473_v54 = vmax.f32 %v1758_v4, 0.0 }
 0x227   : > { %v1917_v63 = vpop.f32.mrf.mxu0  ;;  %2772 = vmatpush.msrb.mxu3 %v4462_v7 }
 0x228   : > { %2698 = vmatpush.msrb.mxu2 %v4473_v54  ;;  %v1918_v30 = vadd.f32 %v1917_v63, %v4428_v34 }
 0x229   : > { %2773 = vmatpush.msrb.mxu3 %v4473_v54 }
 0x22a   : > { %2699 = vmatpush.msrb.mxu2 %v4414_v14  ;;  %v2004_v36 = vmax.f32 %v1918_v30, 0.0  ;;  %v1995_v47 = vpop.f32.mrf.mxu3 }
 0x22b   : > { %2774 = vmatpush.msrb.mxu3 %v4414_v14  ;;  %v1996_v59 = vadd.f32 %v1995_v47, %v4428_v34 }
 0x22c   : > { %2700 = vmatpush.msrb.mxu2 %v4412_v55 }
 0x22d   : > { %2775 = vmatpush.msrb.mxu3 %v4412_v55  ;;  %v2007_v61 = vmax.f32 %v1996_v59, 0.0 }
 0x22e   : > { %v1943_v22 = vpop.f32.mrf.mxu1  ;;  %2701 = vmatpush.msrb.mxu2 %v1793_v18 }
 0x22f   : > { %v1920_v2 = vpop.f32.mrf.mxu0  ;;  %v1969_v24 = vpop.f32.mrf.mxu2  ;;  %2776 = vmatpush.msrb.mxu3 %v1793_v18  ;;  %v1944_v1 = vadd.f32 %v1943_v22, %v4428_v34 }
 0x230   : > { %v1921_v25 = vadd.f32 %v1920_v2, %v4391_v5  ;;  %2702 = vmatpush.msrb.mxu2 %v4386_v50  ;;  %3504 = vmatmul.msk.f32.vlgmr.msrb.gmra.mxu3 %vm2625_vm3, %v4399_v51  ;;  %v1970_v9 = vadd.f32 %v1969_v24, %v4428_v34 }
 0x231   : > { %v4512_v17 = vmax.f32 %v1944_v1, 0.0 }
 0x232   : > { %v2008_v19 = vmax.f32 %v1921_v25, 0.0  ;;  %2703 = vmatpush.msrb.mxu2 %v4404_v53  ;;  %v4515_v45 = vmax.f32 %v1970_v9, 0.0 }
 0x233   : > { %v1998_v52 = vpop.f32.mrf.mxu3 }
 0x234   : > { %2704 = vmatpush.msrb.mxu2 %v4433_v16  ;;  %v1999_v56 = vadd.f32 %v1998_v52, %v4391_v5 }
 0x235   : > { %3503 = vmatmul.msk.f32.vlgmr.msrb.gmra.mxu2 %vm2625_vm3, %v4399_v51 }
 0x236   : > { %v1946_v8 = vpop.f32.mrf.mxu1  ;;  %v2011_v39 = vmax.f32 %v1999_v56, 0.0 }
 0x237   : > { %v1923_v28 = vpop.f32.mrf.mxu0  ;;  %v1972_v29 = vpop.f32.mrf.mxu2  ;;  %v1947_v37 = vadd.f32 %v1946_v8, %v4391_v5 }
 0x238   : > { %v1924_v12 = vadd.f32 %v1923_v28, %v4374_v10  ;;  %v1973_v26 = vadd.f32 %v1972_v29, %v4391_v5 }
 0x239   : > { %v4503_v13 = vmax.f32 %v1947_v37, 0.0 }
 0x23a   : > { %v2012_v35 = vmax.f32 %v1924_v12, 0.0  ;;  %v4507_v6 = vmax.f32 %v1973_v26, 0.0 }
 0x23c   : > { %2788 = vmatpush.msrb.mxu0 %v2012_v35 }
 0x23e   : > { %v1949_v32 = vpop.f32.mrf.mxu1  ;;  %2789 = vmatpush.msrb.mxu0 %v2008_v19 }
 0x23f   : > { %v1950_v38 = vadd.f32 %v1949_v32, %v4374_v10  ;;  %v1975_v11 = vpop.f32.mrf.mxu2 }
 0x240   : > { %2790 = vmatpush.msrb.mxu0 %v2004_v36  ;;  %v1976_v27 = vadd.f32 %v1975_v11, %v4374_v10 }
 0x241   : > { %v4505_v40 = vmax.f32 %v1950_v38, 0.0 }
 0x242   : > { %2791 = vmatpush.msrb.mxu0 %v4445_v44  ;;  %v4510_v46 = vmax.f32 %v1976_v27, 0.0 }
 0x243   : > { %2808 = vmatpush.msra.mxu1 %v4505_v40 }
 0x244   : > { %2792 = vmatpush.msrb.mxu0 %v4448_v49  ;;  %2828 = vmatpush.msra.mxu2 %v4510_v46 }
 0x245   : > { %2809 = vmatpush.msra.mxu1 %v4503_v13 }
 0x246   : > { %v2129_v48 = vpop.f32.mrf.mxu0  ;;  %2793 = vmatpush.msrb.mxu0 %v4467_v21  ;;  %2829 = vmatpush.msra.mxu2 %v4507_v6 }
 0x247   : > { %2810 = vmatpush.msra.mxu1 %v4512_v17  ;;  %v2130_v3 = vadd.f32 %v2129_v48, %v4428_v34 }
 0x248   : > { %2794 = vmatpush.msrb.mxu0 %v4464_v20  ;;  %2830 = vmatpush.msra.mxu2 %v4515_v45 }
 0x249   : > { %2811 = vmatpush.msra.mxu1 %v2012_v35  ;;  %v2216_v41 = vmax.f32 %v2130_v3, 0.0 }
 0x24a   : > { %2795 = vmatpush.msrb.mxu0 %v4462_v7  ;;  %2831 = vmatpush.msra.mxu2 %v4505_v40 }
 0x24b   : > { %2812 = vmatpush.msra.mxu1 %v2008_v19 }
 0x24c   : > { %v2155_v50 = vpop.f32.mrf.mxu1  ;;  %2796 = vmatpush.msrb.mxu0 %v4473_v54  ;;  %2832 = vmatpush.msra.mxu2 %v4503_v13 }
 0x24d   : > { %2813 = vmatpush.msra.mxu1 %v2004_v36  ;;  %3505 = vmatmul.msk.f32.vlgmr.msrb.gmra.mxu0 %vm2625_vm3, %v4399_v51  ;;  %v2156_v42 = vadd.f32 %v2155_v50, %v4428_v34 }
 0x24e   : > { %2833 = vmatpush.msra.mxu2 %v4512_v17  ;;  %v2001_v55 = vpop.f32.mrf.mxu3 }
 0x24f   : > { %v2132_v33 = vpop.f32.mrf.mxu0  ;;  %2814 = vmatpush.msra.mxu1 %v4445_v44  ;;  %v2002_v58 = vadd.f32 %v2001_v55, %v4374_v10  ;;  %v4555_v7 = vmax.f32 %v2156_v42, 0.0 }
 0x250   : > { %2834 = vmatpush.msra.mxu2 %v2012_v35  ;;  %v2133_v14 = vadd.f32 %v2132_v33, %v4391_v5 }
 0x251   : > { %2815 = vmatpush.msra.mxu1 %v4448_v49  ;;  %v2015_v16 = vmax.f32 %v2002_v58, 0.0 }
 0x252   : > { %2835 = vmatpush.msra.mxu2 %v2008_v19  ;;  %v2220_v43 = vmax.f32 %v2133_v14, 0.0 }
 0x253   : > { %v2181_v15 = vpop.f32.mrf.mxu2  ;;  %2816 = vmatpush.msra.mxu1 %v4467_v21  ;;  %2900 = vmatpush.msra.mxu3 %v2015_v16 }
 0x254   : > { %3506 = vmatmul.msk.f32.vlgmr.msra.gmra.mxu1 %vm2625_vm3, %v4399_v51  ;;  %2836 = vmatpush.msra.mxu2 %v2004_v36  ;;  %v2182_v54 = vadd.f32 %v2181_v15, %v4428_v34 }
 0x255   : > { %3507 = vmatmul.msk.f32.vlgmr.msra.gmra.mxu2 %vm2625_vm3, %v4399_v51  ;;  %v2158_v53 = vpop.f32.mrf.mxu1  ;;  %2901 = vmatpush.msra.mxu3 %v2011_v39 }
 0x256   : > { %v2159_v49 = vadd.f32 %v2158_v53, %v4391_v5  ;;  %v4572_v8 = vmax.f32 %v2182_v54, 0.0 }
 0x257   : > { %2902 = vmatpush.msra.mxu3 %v2007_v61 }
 0x258   : > { %v2135_v31 = vpop.f32.mrf.mxu0  ;;  %v4551_v0 = vmax.f32 %v2159_v49, 0.0 }
 0x259   : > { %v2136_v57 = vadd.f32 %v2135_v31, %v4374_v10  ;;  %2903 = vmatpush.msra.mxu3 %v4510_v46 }
 0x25b   : > { %v2224_v60 = vmax.f32 %v2136_v57, 0.0  ;;  %2904 = vmatpush.msra.mxu3 %v4507_v6 }
 0x25c   : > { %v2184_v18 = vpop.f32.mrf.mxu2 }
 0x25d   : > { %2920 = vmatpush.msra.mxu0 %v2224_v60  ;;  %v2185_v20 = vadd.f32 %v2184_v18, %v4391_v5  ;;  %2905 = vmatpush.msra.mxu3 %v4515_v45 }
 0x25e   : > { %v2161_v44 = vpop.f32.mrf.mxu1 }
 0x25f   : > { %2921 = vmatpush.msra.mxu0 %v2220_v43  ;;  %v2162_v62 = vadd.f32 %v2161_v44, %v4374_v10  ;;  %2906 = vmatpush.msra.mxu3 %v4505_v40  ;;  %v4567_v25 = vmax.f32 %v2185_v20, 0.0 }
 0x261   : > { %2922 = vmatpush.msra.mxu0 %v2216_v41  ;;  %v4548_v63 = vmax.f32 %v2162_v62, 0.0  ;;  %2907 = vmatpush.msra.mxu3 %v4503_v13 }
 0x263   : > { %2923 = vmatpush.msra.mxu0 %v2015_v16  ;;  %2940 = vmatpush.msrb.mxu1 %v4548_v63 }
 0x264   : > { %2908 = vmatpush.msra.mxu3 %v4512_v17 }
 0x265   : > { %v2187_v4 = vpop.f32.mrf.mxu2  ;;  %2924 = vmatpush.msra.mxu0 %v2011_v39  ;;  %2941 = vmatpush.msrb.mxu1 %v4551_v0 }
 0x266   : > { %v2188_v21 = vadd.f32 %v2187_v4, %v4374_v10  ;;  %3508 = vmatmul.msk.f32.vlgmr.msra.gmra.mxu3 %vm2625_vm3, %v4399_v51 }
 0x267   : > { %2925 = vmatpush.msra.mxu0 %v2007_v61  ;;  %v2341_v2 = vpop.f32.mrf.mxu0  ;;  %v2207_v24 = vpop.f32.mrf.mxu3  ;;  %2942 = vmatpush.msrb.mxu1 %v4555_v7 }
 0x268   : > { %v4562_v22 = vmax.f32 %v2188_v21, 0.0  ;;  %v2342_v38 = vadd.f32 %v2341_v2, %v4428_v34  ;;  %v2208_v9 = vadd.f32 %v2207_v24, %v4428_v34 }
 0x269   : > { %2926 = vmatpush.msra.mxu0 %v4510_v46  ;;  %2943 = vmatpush.msrb.mxu1 %v2224_v60 }
 0x26a   : > { %2960 = vmatpush.msrb.mxu2 %v4562_v22  ;;  %v4600_v17 = vmax.f32 %v2342_v38, 0.0  ;;  %v2219_v48 = vmax.f32 %v2208_v9, 0.0 }
 0x26b   : > { %2927 = vmatpush.msra.mxu0 %v4507_v6  ;;  %2944 = vmatpush.msrb.mxu1 %v2220_v43 }
 0x26c   : > { %2961 = vmatpush.msrb.mxu2 %v4567_v25 }
 0x26d   : > { %2928 = vmatpush.msra.mxu0 %v4515_v45  ;;  %2945 = vmatpush.msrb.mxu1 %v2216_v41 }
 0x26e   : > { %2962 = vmatpush.msrb.mxu2 %v4572_v8  ;;  %v2367_v28 = vpop.f32.mrf.mxu1  ;;  %3509 = vmatmul.msk.f32.vlgmr.msra.gmra.mxu0 %vm2625_vm3, %v4399_v51 }
 0x26f   : > { %2946 = vmatpush.msrb.mxu1 %v2015_v16  ;;  %v2368_v33 = vadd.f32 %v2367_v28, %v4428_v34 }
 0x270   : > { %2963 = vmatpush.msrb.mxu2 %v4548_v63  ;;  %v2344_v29 = vpop.f32.mrf.mxu0  ;;  %v2210_v30 = vpop.f32.mrf.mxu3 }
 0x271   : > { %2947 = vmatpush.msrb.mxu1 %v2011_v39  ;;  %v2345_v36 = vadd.f32 %v2344_v29, %v4391_v5  ;;  %v2211_v32 = vadd.f32 %v2210_v30, %v4391_v5  ;;  %v4613_v31 = vmax.f32 %v2368_v33, 0.0 }
 0x272   : > { %2964 = vmatpush.msrb.mxu2 %v4551_v0 }
 0x273   : > { %2948 = vmatpush.msrb.mxu1 %v2007_v61  ;;  %v4597_v13 = vmax.f32 %v2345_v36, 0.0  ;;  %v2223_v6 = vmax.f32 %v2211_v32, 0.0 }
 0x274   : > { %2965 = vmatpush.msrb.mxu2 %v4555_v7  ;;  %3510 = vmatmul.msk.f32.vlgmr.msrb.gmra.mxu1 %vm2625_vm3, %v4399_v51 }
 0x275   : > { %v2393_v12 = vpop.f32.mrf.mxu2 }
 0x276   : > { %2966 = vmatpush.msrb.mxu2 %v2224_v60  ;;  %v2370_v19 = vpop.f32.mrf.mxu1  ;;  %v2394_v57 = vadd.f32 %v2393_v12, %v4428_v34 }
 0x277   : > { %v2371_v45 = vadd.f32 %v2370_v19, %v4391_v5 }
 0x278   : > { %2967 = vmatpush.msrb.mxu2 %v2220_v43  ;;  %v2347_v35 = vpop.f32.mrf.mxu0  ;;  %v4632_v16 = vmax.f32 %v2394_v57, 0.0 }
 0x279   : > { %v2348_v37 = vadd.f32 %v2347_v35, %v4374_v10  ;;  %v2213_v26 = vpop.f32.mrf.mxu3  ;;  %v4609_v53 = vmax.f32 %v2371_v45, 0.0 }
 0x27a   : > { %2968 = vmatpush.msrb.mxu2 %v2216_v41  ;;  %v2214_v1 = vadd.f32 %v2213_v26, %v4374_v10 }
 0x27b   : > { %3511 = vmatmul.msk.f32.vlgmr.msrb.gmra.mxu2 %vm2625_vm3, %v4399_v51  ;;  %v4594_v11 = vmax.f32 %v2348_v37, 0.0 }
 0x27c   : > { %v2227_v27 = vmax.f32 %v2214_v1, 0.0 }
 0x27d   : > { %v2396_v40 = vpop.f32.mrf.mxu2  ;;  %3052 = vmatpush.msrb.mxu0 %v4594_v11 }
 0x27e   : > { %v2373_v46 = vpop.f32.mrf.mxu1  ;;  %3032 = vmatpush.msrb.mxu3 %v2227_v27  ;;  %v2397_v14 = vadd.f32 %v2396_v40, %v4391_v5 }
 0x27f   : > { %v2374_v47 = vadd.f32 %v2373_v46, %v4374_v10  ;;  %3053 = vmatpush.msrb.mxu0 %v4597_v13 }
 0x280   : > { %v2549_v50 = vpop.f32.mrf.mxu0  ;;  %3033 = vmatpush.msrb.mxu3 %v2223_v6  ;;  %v4626_v59 = vmax.f32 %v2397_v14, 0.0 }
 0x281   : > { %v4606_v52 = vmax.f32 %v2374_v47, 0.0  ;;  %3054 = vmatpush.msrb.mxu0 %v4600_v17  ;;  %v2419_v15 = vpop.f32.mrf.mxu3  ;;  %v2550_v62 = vadd.f32 %v2549_v50, %v4428_v34 }
 0x282   : > { %3034 = vmatpush.msrb.mxu3 %v2219_v48  ;;  %v2420_v42 = vadd.f32 %v2419_v15, %v4428_v34 }
 0x283   : > { %3055 = vmatpush.msrb.mxu0 %v2227_v27  ;;  %3072 = vmatpush.msra.mxu1 %v4606_v52 }
 0x284   : > { %3035 = vmatpush.msrb.mxu3 %v4562_v22  ;;  %v2431_v20 = vmax.f32 %v2420_v42, 0.0 }
 0x285   : > { %v2399_v55 = vpop.f32.mrf.mxu2  ;;  %3056 = vmatpush.msrb.mxu0 %v2223_v6  ;;  %3073 = vmatpush.msra.mxu1 %v4609_v53 }
 0x286   : > { %v2400_v56 = vadd.f32 %v2399_v55, %v4374_v10  ;;  %3036 = vmatpush.msrb.mxu3 %v4567_v25  ;;  %v2646_v2 = vpop.f32.mrf.mxu1 }
 0x287   : > { %3057 = vmatpush.msrb.mxu0 %v2219_v48  ;;  %3074 = vmatpush.msra.mxu1 %v4613_v31 }
 0x288   : > { %v4621_v58 = vmax.f32 %v2400_v56, 0.0  ;;  %v2552_v3 = vpop.f32.mrf.mxu0  ;;  %3037 = vmatpush.msrb.mxu3 %v4572_v8 }
 0x289   : > { %3058 = vmatpush.msrb.mxu0 %v4562_v22  ;;  %3075 = vmatpush.msra.mxu1 %v4594_v11  ;;  %v2422_v60 = vpop.f32.mrf.mxu3  ;;  %v2553_v39 = vadd.f32 %v2552_v3, %v4391_v5 }
 0x28a   : > { %3092 = vmatpush.msra.mxu2 %v4621_v58  ;;  %3038 = vmatpush.msrb.mxu3 %v4548_v63  ;;  %v2423_v61 = vadd.f32 %v2422_v60, %v4391_v5 }
 0x28b   : > { %3059 = vmatpush.msrb.mxu0 %v4567_v25  ;;  %3076 = vmatpush.msra.mxu1 %v4597_v13 }
 0x28c   : > { %3093 = vmatpush.msra.mxu2 %v4626_v59  ;;  %3039 = vmatpush.msrb.mxu3 %v4551_v0  ;;  %v2561_v0 = vmax.f32 %v2553_v39, 0.0  ;;  %v2435_v4 = vmax.f32 %v2423_v61, 0.0 }
 0x28d   : > { %3060 = vmatpush.msrb.mxu0 %v4572_v8  ;;  %3077 = vmatpush.msra.mxu1 %v4600_v17  ;;  %v4670_v8 = vpop.permute.xlu0 %2622 }
 0x28e   : > { %3094 = vmatpush.msra.mxu2 %v4632_v16  ;;  %3040 = vmatpush.msrb.mxu3 %v4555_v7  ;;  %v2559_v7 = vmax.f32 %v2550_v62, 0.0  ;;  %v2647_v12 = vadd.f32 %v2646_v2, %v4670_v8  ;;  %v2686_v26 = vpop.f32.mrf.mxu1 }
 0x28f   : > { %3513 = vmatmul.msk.f32.vlgmr.msrb.gmra.mxu0 %vm2625_vm3, %v4399_v51  ;;  %3512 = vmatmul.msk.f32.vlgmr.msrb.gmra.mxu3 %vm2625_vm3, %v4399_v51  ;;  %v2666_v30 = vpop.f32.mrf.mxu2  ;;  %v2687_v1 = vadd.f32 %v2686_v26, %v4670_v8 }
 0x290   : > { %3078 = vmatpush.msra.mxu1 %v2227_v27  ;;  %3095 = vmatpush.msra.mxu2 %v4606_v52  ;;  %v2555_v18 = vpop.f32.mrf.mxu0  ;;  %v2667_v19 = vadd.f32 %v2666_v30, %v4670_v8 }
 0x291   : > { %v2556_v43 = vadd.f32 %v2555_v18, %v4374_v10  ;;  %v2425_v41 = vpop.f32.mrf.mxu3  ;;  %v2711_v9 = vmax.f32 %v2687_v1, 0.0 }
 0x292   : > { %3079 = vmatpush.msra.mxu1 %v2223_v6  ;;  %3096 = vmatpush.msra.mxu2 %v4609_v53  ;;  %v2426_v49 = vadd.f32 %v2425_v41, %v4374_v10 }
 0x293   : > { %v2563_v44 = vmax.f32 %v2556_v43, 0.0 }
 0x294   : > { %3080 = vmatpush.msra.mxu1 %v2219_v48  ;;  %3097 = vmatpush.msra.mxu2 %v4613_v31  ;;  %v2439_v63 = vmax.f32 %v2426_v49, 0.0 }
 0x295   : > { %3514 = vmatmul.msk.f32.vlgmr.msra.gmra.mxu1 %vm2625_vm3, %v4399_v51 }
 0x296   : > { %3098 = vmatpush.msra.mxu2 %v4594_v11  ;;  %3204 = vmatpush.msrb.mxu1 %v2563_v44 }
 0x297   : > { %3164 = vmatpush.msra.mxu3 %v2439_v63 }
 0x298   : > { %3099 = vmatpush.msra.mxu2 %v4597_v13  ;;  %3205 = vmatpush.msrb.mxu1 %v2561_v0 }
 0x299   : > { %3165 = vmatpush.msra.mxu3 %v2435_v4  ;;  %v2523_v21 = vpop.f32.mrf.mxu3 }
 0x29a   : > { %3100 = vmatpush.msra.mxu2 %v4600_v17  ;;  %3206 = vmatpush.msrb.mxu1 %v2559_v7  ;;  %v2524_v28 = vadd.f32 %v2523_v21, %v4428_v34  ;;  %v2709_v34 = vmax.f32 %v2647_v12, 0.0 }
 0x29b   : > { %3515 = vmatmul.msk.f32.vlgmr.msra.gmra.mxu2 %vm2625_vm3, %v4399_v51  ;;  %3166 = vmatpush.msra.mxu3 %v2431_v20 }
 0x29c   : > { %3227 = vmatpush.msrb.mxu2 %v2563_v44 }
 0x29d   : > { %3167 = vmatpush.msra.mxu3 %v4621_v58 }
 0x29e   : > { %3228 = vmatpush.msrb.mxu2 %v2561_v0 }
 0x29f   : > { %3168 = vmatpush.msra.mxu3 %v4626_v59 }
 0x2a0   : > { %3229 = vmatpush.msrb.mxu2 %v2559_v7 }
 0x2a1   : > { %3169 = vmatpush.msra.mxu3 %v4632_v16  ;;  %v2526_v54 = vpop.f32.mrf.mxu3 }
 0x2a2   : > { %v2527_v24 = vadd.f32 %v2526_v54, %v4391_v5  ;;  %v2558_v5 = vmax.f32 %v2524_v28, 0.0 }
 0x2a3   : > { %3170 = vmatpush.msra.mxu3 %v4606_v52 }
 0x2a4   : > { %v2560_v35 = vmax.f32 %v2527_v24, 0.0 }
 0x2a5   : > { %3171 = vmatpush.msra.mxu3 %v4609_v53 }
 0x2a7   : > { %3172 = vmatpush.msra.mxu3 %v4613_v31 }
 0x2a8   : > { %3516 = vmatmul.msk.f32.vlgmr.msra.gmra.mxu3 %vm2625_vm3, %v4399_v51 }
 0x2a9   : > { %3284 = vmatpush.msrb.mxu3 %v2563_v44  ;;  %v2529_v22 = vpop.f32.mrf.mxu3 }
 0x2aa   : > { %v2530_v25 = vadd.f32 %v2529_v22, %v4374_v10  ;;  %v2710_v10 = vmax.f32 %v2667_v19, 0.0 }
 0x2ab   : > { %3285 = vmatpush.msrb.mxu3 %v2561_v0 }
 0x2ac   : > { %v2562_v29 = vmax.f32 %v2530_v25, 0.0  ;;  %v2717_v36 = vrot.slane %v2710_v10, 4 }
 0x2ad   : > { %3286 = vmatpush.msrb.mxu3 %v2559_v7 }
 0x2ae   : > { %3184 = vmatpush.msra.mxu0 %v2562_v29  ;;  %3207 = vmatpush.msrb.mxu1 %v2562_v29  ;;  %v2719_v37 = vsel %vm766_vm0, %v2709_v34, %v2717_v36 }
 0x2af   : > { %3230 = vmatpush.msrb.mxu2 %v2562_v29  ;;  %2723 = vst [vmem:[%s4681_s17] sm:$0x77] %v2719_v37 }
 0x2b0   : > { %3520 = vmatmul.msk.f32.vlgmr.msrb.gmra.mxu3 %vm2625_vm3, %v4399_v51  ;;  %3185 = vmatpush.msra.mxu0 %v2560_v35 }
 0x2b1   : > { %3208 = vmatpush.msrb.mxu1 %v2560_v35  ;;  %3231 = vmatpush.msrb.mxu2 %v2560_v35 }
 0x2b2   : > { %3186 = vmatpush.msra.mxu0 %v2558_v5 }
 0x2b3   : > { %3209 = vmatpush.msrb.mxu1 %v2558_v5  ;;  %3232 = vmatpush.msrb.mxu2 %v2558_v5  ;;  %v2778_v13 = vpop.f32.mrf.mxu3 }
 0x2b4   : > { %3519 = vmatmul.msk.f32.vlgmr.msrb.gmra.mxu2 %vm2625_vm3, %v4399_v51  ;;  %3187 = vmatpush.msra.mxu0 %v2439_v63  ;;  %v2779_v6 = vadd.f32 %v2778_v13, %v4670_v8 }
 0x2b5   : > { %3210 = vmatpush.msrb.mxu1 %v2439_v63 }
 0x2b6   : > { %3188 = vmatpush.msra.mxu0 %v2435_v4  ;;  %v2841_v47 = vmax.f32 %v2779_v6, 0.0 }
 0x2b7   : > { %3211 = vmatpush.msrb.mxu1 %v2435_v4 }
 0x2b8   : > { %3189 = vmatpush.msra.mxu0 %v2431_v20  ;;  %v2706_v32 = vpop.f32.mrf.mxu2 }
 0x2b9   : > { %3212 = vmatpush.msrb.mxu1 %v2431_v20  ;;  %v2707_v38 = vadd.f32 %v2706_v32, %v4670_v8 }
 0x2ba   : > { %3518 = vmatmul.msk.f32.vlgmr.msrb.gmra.mxu1 %vm2625_vm3, %v4399_v51  ;;  %3190 = vmatpush.msra.mxu0 %v4621_v58 }
 0x2bb   : > { %v2712_v11 = vmax.f32 %v2707_v38, 0.0 }
 0x2bc   : > { %3191 = vmatpush.msra.mxu0 %v4626_v59 }
 0x2bd   : > { %v2718_v27 = vrot.slane %v2712_v11, 4 }
 0x2be   : > { %3192 = vmatpush.msra.mxu0 %v4632_v16 }
 0x2bf   : > { %3517 = vmatmul.msk.f32.vlgmr.msra.gmra.mxu0 %vm2625_vm3, %v4399_v51  ;;  %v2720_v40 = vsel %vm766_vm0, %v2711_v9, %v2718_v27 }
 0x2c0   : > { %3306 = vmatpush.msrb.mxu0 %v3547_v23  ;;  %2724 = vst [vmem:[%s4681_s17 + $0x8] sm:$0x77] %v2720_v40 }
 0x2c7   : > { %3521 = vmatmul.msk.f32.vlgmr.msrb.gmra.mxu0 %vm2625_vm3, %v4399_v51 }
 0x2ca   : > { %v2798_v46 = vpop.f32.mrf.mxu0 }
 0x2cb   : > { %v2799_v17 = vadd.f32 %v2798_v46, %v4670_v8 }
 0x2cd   : > { %v2842_v45 = vmax.f32 %v2799_v17, 0.0 }
 0x2cf   : > { %v2849_v48 = vrot.slane %v2842_v45, 4 }
 0x2d1   : > { %v2851_v23 = vsel %vm766_vm0, %v2841_v47, %v2849_v48  ;;  %v2818_v50 = vpop.f32.mrf.mxu1 }
 0x2d2   : > { %2855 = vst [vmem:[%s4681_s17 + $0x10] sm:$0x77] %v2851_v23  ;;  %v2819_v52 = vadd.f32 %v2818_v50, %v4670_v8 }
 0x2d4   : > { %v2843_v31 = vmax.f32 %v2819_v52, 0.0 }
 0x2d8   : > { %v2838_v33 = vpop.f32.mrf.mxu2 }
 0x2d9   : > { %v2839_v15 = vadd.f32 %v2838_v33, %v4670_v8 }
 0x2db   : > { %v2844_v53 = vmax.f32 %v2839_v15, 0.0 }
 0x2dd   : > { %v2850_v51 = vrot.slane %v2844_v53, 4 }
 0x2df   : > { %v2852_v55 = vsel %vm766_vm0, %v2843_v31, %v2850_v51 }
 0x2e0   : > { %2856 = vst [vmem:[%s4681_s17 + $0x18] sm:$0x77] %v2852_v55 }
 0x2e9   : > { %v2910_v58 = vpop.f32.mrf.mxu3 }
 0x2ea   : > { %v2911_v3 = vadd.f32 %v2910_v58, %v4670_v8 }
 0x2eb   : > { %v2930_v14 = vpop.f32.mrf.mxu0 }
 0x2ec   : > { %v2931_v56 = vadd.f32 %v2930_v14, %v4670_v8  ;;  %v2973_v60 = vmax.f32 %v2911_v3, 0.0 }
 0x2ee   : > { %v2974_v57 = vmax.f32 %v2931_v56, 0.0 }
 0x2f0   : > { %v2981_v59 = vrot.slane %v2974_v57, 4 }
 0x2f1   : > { %v2950_v18 = vpop.f32.mrf.mxu1 }
 0x2f2   : > { %v2983_v16 = vsel %vm766_vm0, %v2973_v60, %v2981_v59  ;;  %v2951_v39 = vadd.f32 %v2950_v18, %v4670_v8 }
 0x2f3   : > { %2987 = vst [vmem:[%s4681_s17 + $0x20] sm:$0x77] %v2983_v16 }
 0x2f4   : > { %v2975_v44 = vmax.f32 %v2951_v39, 0.0 }
 0x2fe   : > { %v2970_v43 = vpop.f32.mrf.mxu2 }
 0x2ff   : > { %v2971_v41 = vadd.f32 %v2970_v43, %v4670_v8 }
 0x301   : > { %v2976_v61 = vmax.f32 %v2971_v41, 0.0 }
 0x303   : > { %v2982_v49 = vrot.slane %v2976_v61, 4 }
 0x305   : > { %v2984_v62 = vsel %vm766_vm0, %v2975_v44, %v2982_v49 }
 0x306   : > { %2988 = vst [vmem:[%s4681_s17 + $0x28] sm:$0x77] %v2984_v62 }
 0x30c   : > { %v3062_v42 = vpop.f32.mrf.mxu0 }
 0x30d   : > { %v3063_v63 = vadd.f32 %v3062_v42, %v4670_v8 }
 0x30f   : > { %v3106_v0 = vmax.f32 %v3063_v63, 0.0 }
 0x311   : > { %v3113_v20 = vrot.slane %v3106_v0, 4 }
 0x312   : > { %v3042_v4 = vpop.f32.mrf.mxu3  ;;  %v3082_v22 = vpop.f32.mrf.mxu1 }
 0x313   : > { %v3043_v7 = vadd.f32 %v3042_v4, %v4670_v8  ;;  %v3083_v24 = vadd.f32 %v3082_v22, %v4670_v8 }
 0x315   : > { %v3105_v21 = vmax.f32 %v3043_v7, 0.0  ;;  %v3107_v29 = vmax.f32 %v3083_v24, 0.0 }
 0x317   : > { %v3115_v54 = vsel %vm766_vm0, %v3105_v21, %v3113_v20 }
 0x318   : > { %3119 = vst [vmem:[%s4681_s17 + $0x30] sm:$0x77] %v3115_v54 }
 0x31e   : > { %v3102_v2 = vpop.f32.mrf.mxu2 }
 0x31f   : > { %v3103_v25 = vadd.f32 %v3102_v2, %v4670_v8 }
 0x321   : > { %v3108_v28 = vmax.f32 %v3103_v25, 0.0 }
 0x323   : > { %v3114_v30 = vrot.slane %v3108_v28, 4 }
 0x325   : > { %v3116_v12 = vsel %vm766_vm0, %v3107_v29, %v3114_v30 }
 0x326   : > { %3120 = vst [vmem:[%s4681_s17 + $0x38] sm:$0x77] %v3116_v12 }
 0x32b   : > { %v3174_v10 = vpop.f32.mrf.mxu3 }
 0x32c   : > { %v3175_v1 = vadd.f32 %v3174_v10, %v4670_v8 }
 0x32e   : > { %v3237_v27 = vmax.f32 %v3175_v1, 0.0 }
 0x333   : > { %v3288_v40 = vpop.f32.mrf.mxu3 }
 0x334   : > { %v3289_v17 = vadd.f32 %v3288_v40, %v4670_v8 }
 0x336   : > { %v3311_v48 = vmax.f32 %v3289_v17, 0.0 }
 0x337   : > { %v3214_v19 = vpop.f32.mrf.mxu1  ;;  %v3234_v35 = vpop.f32.mrf.mxu2 }
 0x338   : > { %v3215_v5 = vadd.f32 %v3214_v19, %v4670_v8  ;;  %v3235_v34 = vadd.f32 %v3234_v35, %v4670_v8 }
 0x33a   : > { %v3240_v36 = vmax.f32 %v3235_v34, 0.0  ;;  %v3239_v37 = vmax.f32 %v3215_v5, 0.0 }
 0x33c   : > { %v3246_v26 = vrot.slane %v3240_v36, 4  ;;  %v3194_v32 = vpop.f32.mrf.mxu0 }
 0x33d   : > { %v3195_v38 = vadd.f32 %v3194_v32, %v4670_v8 }
 0x33e   : > { %v3248_v11 = vsel %vm766_vm0, %v3239_v37, %v3246_v26 }
 0x33f   : > { %3252 = vst [vmem:[%s4681_s17 + $0x48] sm:$0x77] %v3248_v11  ;;  %v3238_v9 = vmax.f32 %v3195_v38, 0.0 }
 0x341   : > { %v3245_v13 = vrot.slane %v3238_v9, 4 }
 0x343   : > { %v3247_v6 = vsel %vm766_vm0, %v3237_v27, %v3245_v13 }
 0x344   : > { %3251 = vst [vmem:[%s4681_s17 + $0x40] sm:$0x77] %v3247_v6  ;;  %v3308_v46 = vpop.f32.mrf.mxu0 }
 0x345   : > { %v3309_v45 = vadd.f32 %v3308_v46, %v4670_v8 }
 0x347   : > { %v3312_v47 = vmax.f32 %v3309_v45, 0.0 }
 0x349   : > { %v3315_v23 = vrot.slane %v3312_v47, 4 }
 0x34b   : > { %v3316_v50 = vsel %vm766_vm0, %v3311_v48, %v3315_v23 }
 0x34c   : > { %3318 = vst [vmem:[%s4681_s17 + $0x50] sm:$0x77] %v3316_v50 }
 0x34d PF: > { %s17_s24 = sadd.s32 1, %s3545_s24  }
 0x34e   : > { %p14_p4 = scmp.ge.s32.totalorder %s17_s24, 4  }
 0x350   :  { %16 = sbr.rel (!%p14_p4) target bundleno = 1 (0x1), region = 102 }

</bundles_post_ra>
